<compile_context>
chip_gen: v5e
topology: v5e:2x2
jax: 0.10.0
libtpu: 0.0.40
codegen_flags: <defaults>
</compile_context>

<pallas_src>
import math
import numpy as np

import jax
import jax.numpy as jnp
from jax.experimental import pallas as pl
from jax.experimental.pallas import tpu as pltpu

WIDTH_MULTS = (0.5, 0.75, 1.0, 1.25, 1.5)
ACT_W = (0.25, 0.25, 0.25, 0.25)   # {relu, leaky_relu(0.2), elu, tanh}
NORM_W = (0.5, 0.5)                # {identity, normalization}
UP_W = (0.5, 0.5)                  # {3x3 conv, 1x1 conv} after nearest x2
SKIP_W = (0.5, 0.5)                # {no-skip, add projected skip}
EPS = 1e-5

VMEM = pltpu.MemorySpace.VMEM
F32 = jnp.float32
BF16 = jnp.bfloat16


# ------------------------------ fused kernel ------------------------------- #

def fused_decoder_kernel(z_ref, fc1w_ref, fc1b_ref, fc2w_ref, fc2b_ref,
                         s1w_ref, s1b_ref, s2w_ref, s2b_ref, s3w_ref, s3b_ref,
                         fmw_ref, fmb_ref, faw_ref, fab_ref, o_ref):
    B = z_ref.shape[0]

    def mixed_act(x):
        relu = jnp.maximum(x, 0.0)
        leaky = jnp.where(x > 0, x, 0.2 * x)
        elu = jnp.where(x > 0, x, jnp.exp(jnp.minimum(x, 0.0)) - 1.0)
        tnh = jnp.tanh(x)
        return ACT_W[0] * relu + ACT_W[1] * leaky + ACT_W[2] * elu + ACT_W[3] * tnh

    def norm_act_feat(x):              # layer-norm over last axis blend + act
        mean = jnp.mean(x, axis=-1, keepdims=True)
        var = jnp.mean(jnp.square(x - mean), axis=-1, keepdims=True)
        xn = (x - mean) * jax.lax.rsqrt(var + EPS)
        return mixed_act(NORM_W[0] * x + NORM_W[1] * xn)

    def row_slab(a, h):
        # a: (B*h, 128) -> (B*h, 384) = [row i-1 | row i | row i+1] per image,
        # with per-image zero halos (== zero padding along H for a 3x3 conv).
        a3 = a.reshape(B, h, 128)
        zrow = jnp.zeros((B, 1, 128), F32)
        up = jnp.concatenate([zrow, a3[:, :h - 1, :]], axis=1)
        dn = jnp.concatenate([a3[:, 1:, :], zrow], axis=1)
        return jnp.concatenate([up, a3, dn], axis=-1).reshape(B * h, 384)

    def lane_fold_sum(v, width, out_width):
        # sum lanes modulo out_width (width, out_width are powers of two)
        while width > out_width:
            width //= 2
            v = v[..., :width] + v[..., width:]
        return v

    def lane_repeat(v, reps):
        # repeat the lane pattern reps times (reps is a power of two)
        while reps > 1:
            v = jnp.concatenate([v, v], axis=-1)
            reps //= 2
        return v

    def stage(a, h, w_in, cout, w_ref, b_ref):
        # a: (B*h, 128) input image, lane = j*cin + c with cin = 128 // w_in.
        # Returns (B*2h, 128) output image, lane = X*cout + c  (2*w_in*cout==128).
        wo = 2 * w_in
        n_sp = (2 * h) * wo                              # spatial size after x2 up
        pat = row_slab(a, h).astype(BF16)                # (B*h, 384)
        res = jnp.dot(pat, w_ref[...], preferred_element_type=F32) + b_ref[...]
        main = res[:, :256]      # folded upsample-conv, lanes = ph*128 + X*cout + c
        skipv = res[:, 256:]     # folded skip projection, lanes = X*cout + c
        # MixedNormalization: instance-norm over all spatial positions per (b, c)
        m3 = main.reshape(B, h, 256)
        ssum = jnp.sum(m3, axis=1, keepdims=True)        # (B,1,256)
        s2 = jnp.sum(m3 * m3, axis=1, keepdims=True)
        gsum = lane_fold_sum(ssum, 256, cout)            # (B,1,cout)
        g2 = lane_fold_sum(s2, 256, cout)
        mean = gsum * (1.0 / n_sp)
        var = jnp.maximum(g2 * (1.0 / n_sp) - mean * mean, 0.0)
        rstd = jax.lax.rsqrt(var + EPS)
        mean_b = lane_repeat(mean, 256 // cout)          # (B,1,256)
        rstd_b = lane_repeat(rstd, 256 // cout)
        xn = (m3 - mean_b) * rstd_b
        y = mixed_act(NORM_W[0] * m3 + NORM_W[1] * xn)   # (B,h,256)
        # add the skip projection (identical for both output row-phases)
        sk3 = skipv.reshape(B, h, 128)
        y = y + jnp.concatenate([sk3, sk3], axis=-1)
        # interleave the two output row-phases -> (B*2h, 128)
        ph0 = y[:, :, :128]
        ph1 = y[:, :, 128:]
        yi = jnp.concatenate([ph0[:, :, None, :], ph1[:, :, None, :]], axis=2)
        return yi.reshape(B * 2 * h, 128)

    # ---- fc1 / fc2 (+ mixed norm/act; MixedDropout == identity in eval) ----
    x = jnp.dot(z_ref[...].astype(BF16), fc1w_ref[...],
                preferred_element_type=F32) + fc1b_ref[...]
    x = norm_act_feat(x)
    x = jnp.dot(x.astype(BF16), fc2w_ref[...],
                preferred_element_type=F32) + fc2b_ref[...]
    x = norm_act_feat(x)                  # (B,256), columns already NHWC-flat (i,j,c)

    # (B,256) -> (B*2, 128): rows (b,i), lanes j*64 + c   (tile-aligned slices only)
    a = jnp.concatenate([x[:, None, :128], x[:, None, 128:]], axis=1).reshape(B * 2, 128)

    # ---- three fused upsample/conv/norm/act/skip stages ----
    a = stage(a, 2, 2, 32, s1w_ref, s1b_ref)   # (B*4,  128): 4x4x32
    a = stage(a, 4, 4, 16, s2w_ref, s2b_ref)   # (B*8,  128): 8x8x16
    a = stage(a, 8, 8, 8, s3w_ref, s3b_ref)    # (B*16, 128): 16x16x8, lane = x*8+c

    # ---- finale: tanh(conv3x3) * sigmoid(conv1x1), two small GEMMs ----
    pat = row_slab(a, 16).astype(BF16)                                  # (B*16, 384)
    res_m = jnp.dot(pat, fmw_ref[...], preferred_element_type=F32) + fmb_ref[...]
    res_a = jnp.dot(a.astype(BF16), faw_ref[...], preferred_element_type=F32) + fab_ref[...]
    outp = jnp.tanh(res_m) * jax.nn.sigmoid(res_a)                      # (B*16, 16)
    # pack into a lane-dense (B*2, 128) output slab: row = b*2 + y//8,
    # lane = (y%8)*16 + x  (full-lane stores, no (rows,1) masked tiles)
    op3 = outp.reshape(B * 2, 8, 16)
    o_ref[...] = jnp.concatenate([op3[:, k, :] for k in range(8)], axis=-1)


# ------------------------------ host-side glue ----------------------------- #

def _uniform_np(key, shape, bound):
    return np.asarray(jax.random.uniform(key, shape, jnp.float32, -bound, bound))


def _conv_init_np(key, K, cin, cout):
    kw, kb = jax.random.split(key)
    lim = 1.0 / math.sqrt(K * K * cin)
    return _uniform_np(kw, (K, K, cin, cout), lim), _uniform_np(kb, (cout,), lim)


def _width_mask(C):
    """MixedChannelWidth: soft per-channel mask, uniform weights over WIDTH_MULTS."""
    m = np.zeros((C,), np.float32)
    w = 1.0 / len(WIDTH_MULTS)
    for mult in WIDTH_MULTS:
        k = min(int(round(C * mult)), C)
        m[:k] += w
    return m


def _stage_params(key, w_in, cin, cout):
    """Folded per-stage weight (384, 384), bf16.

    Rows  : s*128 + j*cin + c        (s = input row i-1+s of the 3-row slab)
    Cols  : [0,256)  = ph*128 + X*cout + cc : sub-pixel-folded MixedUpsampling
                       (nearest x2 + 0.5*conv3x3 + 0.5*conv1x1) for both output
                       row-phases ph and all output columns X = 2*jo + pw
            [256,384)=       X*cout + cc   : folded MixedSkipConnection /
                       MixedChannelWidth 1x1 projection (center slab only)
    """
    k3, k1, ks = jax.random.split(key, 3)
    w3, b3 = _conv_init_np(k3, 3, cin, cout)
    w1, b1 = _conv_init_np(k1, 1, cin, cout)
    wsk, bsk = _conv_init_np(ks, 1, cin, cout)
    mask = _width_mask(cin)

    W = np.zeros((384, 384), np.float32)
    for ph in range(2):
        for pw in range(2):
            for dy in (-1, 0, 1):
                s = 1 + (ph + dy) // 2              # coarse input row offset
                for dx in (-1, 0, 1):
                    dj = (pw + dx) // 2             # coarse input col offset
                    kern = UP_W[0] * w3[dy + 1, dx + 1]          # (cin, cout)
                    for jo in range(w_in):
                        j = jo + dj
                        if j < 0 or j >= w_in:      # zero padding of the upsampled map
                            continue
                        X = 2 * jo + pw
                        W[s * 128 + j * cin:s * 128 + (j + 1) * cin,
                          ph * 128 + X * cout:ph * 128 + (X + 1) * cout] += kern
            for jo in range(w_in):                  # folded 1x1 upsample candidate
                X = 2 * jo + pw
                W[128 + jo * cin:128 + (jo + 1) * cin,
                  ph * 128 + X * cout:ph * 128 + (X + 1) * cout] += UP_W[1] * w1[0, 0]
    # skip projection (depends only on the un-upsampled pixel -> center slab)
    wsk_f = SKIP_W[1] * (mask[:, None] * wsk[0, 0])              # (cin, cout)
    for jo in range(w_in):
        for pw in range(2):
            X = 2 * jo + pw
            W[128 + jo * cin:128 + (jo + 1) * cin,
              256 + X * cout:256 + (X + 1) * cout] = wsk_f

    b_up = UP_W[0] * b3 + UP_W[1] * b1
    b_sk = SKIP_W[1] * bsk
    bias = np.concatenate([np.tile(b_up, 4 * w_in), np.tile(b_sk, 2 * w_in)])
    return jnp.asarray(W, BF16), jnp.asarray(bias.reshape(1, 384), F32)


def _final_params(key):
    """Final 3x3 conv (cout=1) and attention 1x1, in the (B*16, 128) layout."""
    k3, k1 = jax.random.split(key)
    w3, b3 = _conv_init_np(k3, 3, 8, 1)          # (3,3,8,1)
    w1, b1 = _conv_init_np(k1, 1, 8, 1)
    w3 = w3[..., 0]                              # (3,3,8)
    w1v = w1[0, 0, :, 0]                         # (8,)
    Wm = np.zeros((384, 16), np.float32)         # rows: s*128 + x'*8 + c, cols: x
    for x in range(16):
        for s in range(3):
            for dx in (-1, 0, 1):
                xp = x + dx
                if 0 <= xp < 16:
                    Wm[s * 128 + xp * 8:s * 128 + (xp + 1) * 8, x] = w3[s, dx + 1]
    Wa = np.zeros((128, 16), np.float32)
    for x in range(16):
        Wa[x * 8:(x + 1) * 8, x] = w1v
    bm = np.full((1, 16), float(b3[0]), np.float32)
    ba = np.full((1, 16), float(b1[0]), np.float32)
    return (jnp.asarray(Wm, BF16), jnp.asarray(bm, F32),
            jnp.asarray(Wa, BF16), jnp.asarray(ba, F32))


def init_params(key):
    ks = jax.random.split(key, 6)
    p = {}
    lim = 1.0 / math.sqrt(128)
    k = jax.random.split(ks[0])
    fc1_w = _uniform_np(k[0], (128, 128), lim)
    fc1_b = _uniform_np(k[1], (1, 128), lim)
    k = jax.random.split(ks[1])
    fc2_w = _uniform_np(k[0], (128, 256), lim)
    fc2_b = _uniform_np(k[1], (1, 256), lim)
    # Reorder fc2 output features from torch's view(-1, 64, 2, 2) order
    # (f_t = c*4 + i*2 + j) to the NHWC-flat order f_k = i*128 + j*64 + c the
    # kernel consumes.  Valid because the following norm/activation are
    # permutation-invariant / elementwise (no per-feature affine).
    fk = np.arange(256)
    perm = (fk % 64) * 4 + (fk // 64)
    fc2_w, fc2_b = fc2_w[:, perm], fc2_b[:, perm]
    p["fc1_w"], p["fc1_b"] = jnp.asarray(fc1_w, BF16), jnp.asarray(fc1_b, F32)
    p["fc2_w"], p["fc2_b"] = jnp.asarray(fc2_w, BF16), jnp.asarray(fc2_b, F32)
    p["s1_w"], p["s1_b"] = _stage_params(ks[2], 2, 64, 32)
    p["s2_w"], p["s2_b"] = _stage_params(ks[3], 4, 32, 16)
    p["s3_w"], p["s3_b"] = _stage_params(ks[4], 8, 16, 8)
    p["fm_w"], p["fm_b"], p["fa_w"], p["fa_b"] = _final_params(ks[5])
    return p


def forward(p, z):
    B = z.shape[0]
    args = (z,
            p["fc1_w"], p["fc1_b"], p["fc2_w"], p["fc2_b"],
            p["s1_w"], p["s1_b"], p["s2_w"], p["s2_b"], p["s3_w"], p["s3_b"],
            p["fm_w"], p["fm_b"], p["fa_w"], p["fa_b"])
    out = pl.pallas_call(
        fused_decoder_kernel,
        out_shape=jax.ShapeDtypeStruct((B * 2, 128), F32),   # lane-dense slab
        in_specs=[pl.BlockSpec(memory_space=VMEM) for _ in args],
        out_specs=pl.BlockSpec(memory_space=VMEM),
    )(*args)
    # slab row = b*2 + y//8, lane = (y%8)*16 + x  ->  flat order b*256 + y*16 + x
    return out.reshape(B, 1, 16, 16)


if __name__ == "__main__":
    key = jax.random.PRNGKey(0)
    kz, kp = jax.random.split(key)
    z = jax.random.normal(kz, (2, 128), jnp.float32)   # (batch, max_latent_dim)
    params = init_params(kp)

    out = jax.jit(forward)(params, z)
    out = jax.block_until_ready(out)
    assert out.shape == (2, 1, 16, 16), out.shape
    assert out.dtype == jnp.float32
    assert bool(jnp.all(jnp.isfinite(out)))
    print("KERNEL_OK")
</pallas_src>

<mosaic_0001>
module attributes {stable_mosaic.version = 11 : i64} {
  func.func @fused_decoder_kernel(%arg0: memref<2x128xf32, #tpu.memory_space<vmem>>, %arg1: memref<128x128xbf16, #tpu.memory_space<vmem>>, %arg2: memref<1x128xf32, #tpu.memory_space<vmem>>, %arg3: memref<128x256xbf16, #tpu.memory_space<vmem>>, %arg4: memref<1x256xf32, #tpu.memory_space<vmem>>, %arg5: memref<384x384xbf16, #tpu.memory_space<vmem>>, %arg6: memref<1x384xf32, #tpu.memory_space<vmem>>, %arg7: memref<384x384xbf16, #tpu.memory_space<vmem>>, %arg8: memref<1x384xf32, #tpu.memory_space<vmem>>, %arg9: memref<384x384xbf16, #tpu.memory_space<vmem>>, %arg10: memref<1x384xf32, #tpu.memory_space<vmem>>, %arg11: memref<384x16xbf16, #tpu.memory_space<vmem>>, %arg12: memref<1x16xf32, #tpu.memory_space<vmem>>, %arg13: memref<128x16xbf16, #tpu.memory_space<vmem>>, %arg14: memref<1x16xf32, #tpu.memory_space<vmem>>, %arg15: memref<4x128xf32, #tpu.memory_space<vmem>>) attributes {dimension_semantics = [], scalar_prefetch = 0 : i64, scratch_operands = 0 : i64, tpu.core_type = #tpu.core_type<tc>} {
    %c0 = arith.constant 0 : index
    %c0_0 = arith.constant 0 : index
    %0 = vector.load %arg0[%c0, %c0_0] : memref<2x128xf32, #tpu.memory_space<vmem>>, vector<2x128xf32>
    %1 = arith.truncf %0 : vector<2x128xf32> to vector<2x128xbf16>
    %c0_1 = arith.constant 0 : index
    %c0_2 = arith.constant 0 : index
    %2 = vector.load %arg1[%c0_1, %c0_2] : memref<128x128xbf16, #tpu.memory_space<vmem>>, vector<128x128xbf16>
    %cst = arith.constant dense<0.000000e+00> : vector<2x128xf32>
    %3 = tpu.matmul %1, %2, %cst {dimension_numbers = #tpu.dot_dimension_numbers<[1], [0], [0], [1], [0, 0, 1, 1], [], []>} : vector<2x128xbf16>, vector<128x128xbf16>, vector<2x128xf32> -> vector<2x128xf32>
    %c0_3 = arith.constant 0 : index
    %c0_4 = arith.constant 0 : index
    %4 = vector.load %arg2[%c0_3, %c0_4] : memref<1x128xf32, #tpu.memory_space<vmem>>, vector<1x128xf32>
    %5 = vector.broadcast %4 : vector<1x128xf32> to vector<2x128xf32>
    %6 = arith.addf %3, %5 : vector<2x128xf32>
    %cst_5 = arith.constant dense<0.000000e+00> : vector<2xf32>
    %7 = vector.multi_reduction <add>, %6, %cst_5 [1] : vector<2x128xf32> to vector<2xf32>
    %8 = vector.shape_cast %7 : vector<2xf32> to vector<2x1xf32>
    %cst_6 = arith.constant 1.280000e+02 : f32
    %9 = vector.broadcast %cst_6 : f32 to vector<2x1xf32>
    %10 = arith.divf %8, %9 : vector<2x1xf32>
    %11 = vector.broadcast %10 : vector<2x1xf32> to vector<2x128xf32>
    %12 = arith.subf %6, %11 : vector<2x128xf32>
    %13 = arith.mulf %12, %12 : vector<2x128xf32>
    %cst_7 = arith.constant dense<0.000000e+00> : vector<2xf32>
    %14 = vector.multi_reduction <add>, %13, %cst_7 [1] : vector<2x128xf32> to vector<2xf32>
    %15 = vector.shape_cast %14 : vector<2xf32> to vector<2x1xf32>
    %cst_8 = arith.constant 1.280000e+02 : f32
    %16 = vector.broadcast %cst_8 : f32 to vector<2x1xf32>
    %17 = arith.divf %15, %16 : vector<2x1xf32>
    %18 = vector.broadcast %10 : vector<2x1xf32> to vector<2x128xf32>
    %19 = arith.subf %6, %18 : vector<2x128xf32>
    %cst_9 = arith.constant 9.99999974E-6 : f32
    %20 = vector.broadcast %cst_9 : f32 to vector<2x1xf32>
    %21 = arith.addf %17, %20 : vector<2x1xf32>
    %22 = math.rsqrt %21 : vector<2x1xf32>
    %23 = vector.broadcast %22 : vector<2x1xf32> to vector<2x128xf32>
    %24 = arith.mulf %19, %23 : vector<2x128xf32>
    %cst_10 = arith.constant 5.000000e-01 : f32
    %25 = vector.broadcast %cst_10 : f32 to vector<2x128xf32>
    %26 = arith.mulf %25, %6 : vector<2x128xf32>
    %cst_11 = arith.constant 5.000000e-01 : f32
    %27 = vector.broadcast %cst_11 : f32 to vector<2x128xf32>
    %28 = arith.mulf %27, %24 : vector<2x128xf32>
    %29 = arith.addf %26, %28 : vector<2x128xf32>
    %cst_12 = arith.constant 0.000000e+00 : f32
    %30 = vector.broadcast %cst_12 : f32 to vector<2x128xf32>
    %31 = arith.maximumf %29, %30 : vector<2x128xf32>
    %cst_13 = arith.constant 0.000000e+00 : f32
    %32 = vector.broadcast %cst_13 : f32 to vector<2x128xf32>
    %33 = arith.cmpf ogt, %29, %32 : vector<2x128xf32>
    %cst_14 = arith.constant 2.000000e-01 : f32
    %34 = vector.broadcast %cst_14 : f32 to vector<2x128xf32>
    %35 = arith.mulf %34, %29 : vector<2x128xf32>
    %36 = arith.select %33, %29, %35 : vector<2x128xi1>, vector<2x128xf32>
    %cst_15 = arith.constant 0.000000e+00 : f32
    %37 = vector.broadcast %cst_15 : f32 to vector<2x128xf32>
    %38 = arith.cmpf ogt, %29, %37 : vector<2x128xf32>
    %cst_16 = arith.constant 0.000000e+00 : f32
    %39 = vector.broadcast %cst_16 : f32 to vector<2x128xf32>
    %40 = arith.minimumf %29, %39 : vector<2x128xf32>
    %41 = math.exp %40 : vector<2x128xf32>
    %cst_17 = arith.constant 1.000000e+00 : f32
    %42 = vector.broadcast %cst_17 : f32 to vector<2x128xf32>
    %43 = arith.subf %41, %42 : vector<2x128xf32>
    %44 = arith.select %38, %29, %43 : vector<2x128xi1>, vector<2x128xf32>
    %45 = math.tanh %29 : vector<2x128xf32>
    %cst_18 = arith.constant 2.500000e-01 : f32
    %46 = vector.broadcast %cst_18 : f32 to vector<2x128xf32>
    %47 = arith.mulf %46, %31 : vector<2x128xf32>
    %cst_19 = arith.constant 2.500000e-01 : f32
    %48 = vector.broadcast %cst_19 : f32 to vector<2x128xf32>
    %49 = arith.mulf %48, %36 : vector<2x128xf32>
    %50 = arith.addf %47, %49 : vector<2x128xf32>
    %cst_20 = arith.constant 2.500000e-01 : f32
    %51 = vector.broadcast %cst_20 : f32 to vector<2x128xf32>
    %52 = arith.mulf %51, %44 : vector<2x128xf32>
    %53 = arith.addf %50, %52 : vector<2x128xf32>
    %cst_21 = arith.constant 2.500000e-01 : f32
    %54 = vector.broadcast %cst_21 : f32 to vector<2x128xf32>
    %55 = arith.mulf %54, %45 : vector<2x128xf32>
    %56 = arith.addf %53, %55 : vector<2x128xf32>
    %57 = arith.truncf %56 : vector<2x128xf32> to vector<2x128xbf16>
    %c0_22 = arith.constant 0 : index
    %c0_23 = arith.constant 0 : index
    %58 = vector.load %arg3[%c0_22, %c0_23] : memref<128x256xbf16, #tpu.memory_space<vmem>>, vector<128x256xbf16>
    %cst_24 = arith.constant dense<0.000000e+00> : vector<2x256xf32>
    %59 = tpu.matmul %57, %58, %cst_24 {dimension_numbers = #tpu.dot_dimension_numbers<[1], [0], [0], [1], [0, 0, 1, 1], [], []>} : vector<2x128xbf16>, vector<128x256xbf16>, vector<2x256xf32> -> vector<2x256xf32>
    %c0_25 = arith.constant 0 : index
    %c0_26 = arith.constant 0 : index
    %60 = vector.load %arg4[%c0_25, %c0_26] : memref<1x256xf32, #tpu.memory_space<vmem>>, vector<1x256xf32>
    %61 = vector.broadcast %60 : vector<1x256xf32> to vector<2x256xf32>
    %62 = arith.addf %59, %61 : vector<2x256xf32>
    %cst_27 = arith.constant dense<0.000000e+00> : vector<2xf32>
    %63 = vector.multi_reduction <add>, %62, %cst_27 [1] : vector<2x256xf32> to vector<2xf32>
    %64 = vector.shape_cast %63 : vector<2xf32> to vector<2x1xf32>
    %cst_28 = arith.constant 2.560000e+02 : f32
    %65 = vector.broadcast %cst_28 : f32 to vector<2x1xf32>
    %66 = arith.divf %64, %65 : vector<2x1xf32>
    %67 = vector.broadcast %66 : vector<2x1xf32> to vector<2x256xf32>
    %68 = arith.subf %62, %67 : vector<2x256xf32>
    %69 = arith.mulf %68, %68 : vector<2x256xf32>
    %cst_29 = arith.constant dense<0.000000e+00> : vector<2xf32>
    %70 = vector.multi_reduction <add>, %69, %cst_29 [1] : vector<2x256xf32> to vector<2xf32>
    %71 = vector.shape_cast %70 : vector<2xf32> to vector<2x1xf32>
    %cst_30 = arith.constant 2.560000e+02 : f32
    %72 = vector.broadcast %cst_30 : f32 to vector<2x1xf32>
    %73 = arith.divf %71, %72 : vector<2x1xf32>
    %74 = vector.broadcast %66 : vector<2x1xf32> to vector<2x256xf32>
    %75 = arith.subf %62, %74 : vector<2x256xf32>
    %cst_31 = arith.constant 9.99999974E-6 : f32
    %76 = vector.broadcast %cst_31 : f32 to vector<2x1xf32>
    %77 = arith.addf %73, %76 : vector<2x1xf32>
    %78 = math.rsqrt %77 : vector<2x1xf32>
    %79 = vector.broadcast %78 : vector<2x1xf32> to vector<2x256xf32>
    %80 = arith.mulf %75, %79 : vector<2x256xf32>
    %cst_32 = arith.constant 5.000000e-01 : f32
    %81 = vector.broadcast %cst_32 : f32 to vector<2x256xf32>
    %82 = arith.mulf %81, %62 : vector<2x256xf32>
    %cst_33 = arith.constant 5.000000e-01 : f32
    %83 = vector.broadcast %cst_33 : f32 to vector<2x256xf32>
    %84 = arith.mulf %83, %80 : vector<2x256xf32>
    %85 = arith.addf %82, %84 : vector<2x256xf32>
    %cst_34 = arith.constant 0.000000e+00 : f32
    %86 = vector.broadcast %cst_34 : f32 to vector<2x256xf32>
    %87 = arith.maximumf %85, %86 : vector<2x256xf32>
    %cst_35 = arith.constant 0.000000e+00 : f32
    %88 = vector.broadcast %cst_35 : f32 to vector<2x256xf32>
    %89 = arith.cmpf ogt, %85, %88 : vector<2x256xf32>
    %cst_36 = arith.constant 2.000000e-01 : f32
    %90 = vector.broadcast %cst_36 : f32 to vector<2x256xf32>
    %91 = arith.mulf %90, %85 : vector<2x256xf32>
    %92 = arith.select %89, %85, %91 : vector<2x256xi1>, vector<2x256xf32>
    %cst_37 = arith.constant 0.000000e+00 : f32
    %93 = vector.broadcast %cst_37 : f32 to vector<2x256xf32>
    %94 = arith.cmpf ogt, %85, %93 : vector<2x256xf32>
    %cst_38 = arith.constant 0.000000e+00 : f32
    %95 = vector.broadcast %cst_38 : f32 to vector<2x256xf32>
    %96 = arith.minimumf %85, %95 : vector<2x256xf32>
    %97 = math.exp %96 : vector<2x256xf32>
    %cst_39 = arith.constant 1.000000e+00 : f32
    %98 = vector.broadcast %cst_39 : f32 to vector<2x256xf32>
    %99 = arith.subf %97, %98 : vector<2x256xf32>
    %100 = arith.select %94, %85, %99 : vector<2x256xi1>, vector<2x256xf32>
    %101 = math.tanh %85 : vector<2x256xf32>
    %cst_40 = arith.constant 2.500000e-01 : f32
    %102 = vector.broadcast %cst_40 : f32 to vector<2x256xf32>
    %103 = arith.mulf %102, %87 : vector<2x256xf32>
    %cst_41 = arith.constant 2.500000e-01 : f32
    %104 = vector.broadcast %cst_41 : f32 to vector<2x256xf32>
    %105 = arith.mulf %104, %92 : vector<2x256xf32>
    %106 = arith.addf %103, %105 : vector<2x256xf32>
    %cst_42 = arith.constant 2.500000e-01 : f32
    %107 = vector.broadcast %cst_42 : f32 to vector<2x256xf32>
    %108 = arith.mulf %107, %100 : vector<2x256xf32>
    %109 = arith.addf %106, %108 : vector<2x256xf32>
    %cst_43 = arith.constant 2.500000e-01 : f32
    %110 = vector.broadcast %cst_43 : f32 to vector<2x256xf32>
    %111 = arith.mulf %110, %101 : vector<2x256xf32>
    %112 = arith.addf %109, %111 : vector<2x256xf32>
    %113 = vector.extract_strided_slice %112 {offsets = [0, 0], sizes = [2, 128], strides = [1, 1]} : vector<2x256xf32> to vector<2x128xf32>
    %114 = vector.shape_cast %113 : vector<2x128xf32> to vector<2x1x128xf32>
    %115 = vector.extract_strided_slice %112 {offsets = [0, 128], sizes = [2, 128], strides = [1, 1]} : vector<2x256xf32> to vector<2x128xf32>
    %116 = vector.shape_cast %115 : vector<2x128xf32> to vector<2x1x128xf32>
    %117 = tpu.concatenate %114, %116 in 1 : vector<2x1x128xf32>, vector<2x1x128xf32> -> vector<2x2x128xf32>
    %118 = vector.shape_cast %117 : vector<2x2x128xf32> to vector<4x128xf32>
    %119 = vector.shape_cast %118 : vector<4x128xf32> to vector<2x2x128xf32>
    %cst_44 = arith.constant 0.000000e+00 : f32
    %120 = vector.broadcast %cst_44 : f32 to vector<2x1x128xf32>
    %121 = vector.extract_strided_slice %119 {offsets = [0, 0, 0], sizes = [2, 1, 128], strides = [1, 1, 1]} : vector<2x2x128xf32> to vector<2x1x128xf32>
    %122 = tpu.concatenate %120, %121 in 1 : vector<2x1x128xf32>, vector<2x1x128xf32> -> vector<2x2x128xf32>
    %123 = vector.extract_strided_slice %119 {offsets = [0, 1, 0], sizes = [2, 1, 128], strides = [1, 1, 1]} : vector<2x2x128xf32> to vector<2x1x128xf32>
    %124 = tpu.concatenate %123, %120 in 1 : vector<2x1x128xf32>, vector<2x1x128xf32> -> vector<2x2x128xf32>
    %125 = tpu.concatenate %122, %119, %124 in 2 : vector<2x2x128xf32>, vector<2x2x128xf32>, vector<2x2x128xf32> -> vector<2x2x384xf32>
    %126 = vector.shape_cast %125 : vector<2x2x384xf32> to vector<4x384xf32>
    %127 = arith.truncf %126 : vector<4x384xf32> to vector<4x384xbf16>
    %c0_45 = arith.constant 0 : index
    %c0_46 = arith.constant 0 : index
    %128 = vector.load %arg5[%c0_45, %c0_46] : memref<384x384xbf16, #tpu.memory_space<vmem>>, vector<384x384xbf16>
    %cst_47 = arith.constant dense<0.000000e+00> : vector<4x384xf32>
    %129 = tpu.matmul %127, %128, %cst_47 {dimension_numbers = #tpu.dot_dimension_numbers<[1], [0], [0], [1], [0, 0, 1, 1], [], []>} : vector<4x384xbf16>, vector<384x384xbf16>, vector<4x384xf32> -> vector<4x384xf32>
    %c0_48 = arith.constant 0 : index
    %c0_49 = arith.constant 0 : index
    %130 = vector.load %arg6[%c0_48, %c0_49] : memref<1x384xf32, #tpu.memory_space<vmem>>, vector<1x384xf32>
    %131 = vector.broadcast %130 : vector<1x384xf32> to vector<4x384xf32>
    %132 = arith.addf %129, %131 : vector<4x384xf32>
    %133 = vector.extract_strided_slice %132 {offsets = [0, 0], sizes = [4, 256], strides = [1, 1]} : vector<4x384xf32> to vector<4x256xf32>
    %134 = vector.extract_strided_slice %132 {offsets = [0, 256], sizes = [4, 128], strides = [1, 1]} : vector<4x384xf32> to vector<4x128xf32>
    %135 = vector.shape_cast %133 : vector<4x256xf32> to vector<2x2x256xf32>
    %cst_50 = arith.constant dense<0.000000e+00> : vector<2x256xf32>
    %136 = vector.multi_reduction <add>, %135, %cst_50 [1] : vector<2x2x256xf32> to vector<2x256xf32>
    %137 = vector.shape_cast %136 : vector<2x256xf32> to vector<2x1x256xf32>
    %138 = arith.mulf %135, %135 : vector<2x2x256xf32>
    %cst_51 = arith.constant dense<0.000000e+00> : vector<2x256xf32>
    %139 = vector.multi_reduction <add>, %138, %cst_51 [1] : vector<2x2x256xf32> to vector<2x256xf32>
    %140 = vector.shape_cast %139 : vector<2x256xf32> to vector<2x1x256xf32>
    %141 = vector.extract_strided_slice %137 {offsets = [0, 0, 0], sizes = [2, 1, 128], strides = [1, 1, 1]} : vector<2x1x256xf32> to vector<2x1x128xf32>
    %142 = vector.extract_strided_slice %137 {offsets = [0, 0, 128], sizes = [2, 1, 128], strides = [1, 1, 1]} : vector<2x1x256xf32> to vector<2x1x128xf32>
    %143 = arith.addf %141, %142 : vector<2x1x128xf32>
    %144 = vector.extract_strided_slice %143 {offsets = [0, 0, 0], sizes = [2, 1, 64], strides = [1, 1, 1]} : vector<2x1x128xf32> to vector<2x1x64xf32>
    %145 = vector.extract_strided_slice %143 {offsets = [0, 0, 64], sizes = [2, 1, 64], strides = [1, 1, 1]} : vector<2x1x128xf32> to vector<2x1x64xf32>
    %146 = arith.addf %144, %145 : vector<2x1x64xf32>
    %147 = vector.extract_strided_slice %146 {offsets = [0, 0, 0], sizes = [2, 1, 32], strides = [1, 1, 1]} : vector<2x1x64xf32> to vector<2x1x32xf32>
    %148 = vector.extract_strided_slice %146 {offsets = [0, 0, 32], sizes = [2, 1, 32], strides = [1, 1, 1]} : vector<2x1x64xf32> to vector<2x1x32xf32>
    %149 = arith.addf %147, %148 : vector<2x1x32xf32>
    %150 = vector.extract_strided_slice %140 {offsets = [0, 0, 0], sizes = [2, 1, 128], strides = [1, 1, 1]} : vector<2x1x256xf32> to vector<2x1x128xf32>
    %151 = vector.extract_strided_slice %140 {offsets = [0, 0, 128], sizes = [2, 1, 128], strides = [1, 1, 1]} : vector<2x1x256xf32> to vector<2x1x128xf32>
    %152 = arith.addf %150, %151 : vector<2x1x128xf32>
    %153 = vector.extract_strided_slice %152 {offsets = [0, 0, 0], sizes = [2, 1, 64], strides = [1, 1, 1]} : vector<2x1x128xf32> to vector<2x1x64xf32>
    %154 = vector.extract_strided_slice %152 {offsets = [0, 0, 64], sizes = [2, 1, 64], strides = [1, 1, 1]} : vector<2x1x128xf32> to vector<2x1x64xf32>
    %155 = arith.addf %153, %154 : vector<2x1x64xf32>
    %156 = vector.extract_strided_slice %155 {offsets = [0, 0, 0], sizes = [2, 1, 32], strides = [1, 1, 1]} : vector<2x1x64xf32> to vector<2x1x32xf32>
    %157 = vector.extract_strided_slice %155 {offsets = [0, 0, 32], sizes = [2, 1, 32], strides = [1, 1, 1]} : vector<2x1x64xf32> to vector<2x1x32xf32>
    %158 = arith.addf %156, %157 : vector<2x1x32xf32>
    %cst_52 = arith.constant 6.250000e-02 : f32
    %159 = vector.broadcast %cst_52 : f32 to vector<2x1x32xf32>
    %160 = arith.mulf %149, %159 : vector<2x1x32xf32>
    %cst_53 = arith.constant 6.250000e-02 : f32
    %161 = vector.broadcast %cst_53 : f32 to vector<2x1x32xf32>
    %162 = arith.mulf %158, %161 : vector<2x1x32xf32>
    %163 = arith.mulf %160, %160 : vector<2x1x32xf32>
    %164 = arith.subf %162, %163 : vector<2x1x32xf32>
    %cst_54 = arith.constant 0.000000e+00 : f32
    %165 = vector.broadcast %cst_54 : f32 to vector<2x1x32xf32>
    %166 = arith.maximumf %164, %165 : vector<2x1x32xf32>
    %cst_55 = arith.constant 9.99999974E-6 : f32
    %167 = vector.broadcast %cst_55 : f32 to vector<2x1x32xf32>
    %168 = arith.addf %166, %167 : vector<2x1x32xf32>
    %169 = math.rsqrt %168 : vector<2x1x32xf32>
    %170 = tpu.concatenate %160, %160 in 2 : vector<2x1x32xf32>, vector<2x1x32xf32> -> vector<2x1x64xf32>
    %171 = tpu.concatenate %170, %170 in 2 : vector<2x1x64xf32>, vector<2x1x64xf32> -> vector<2x1x128xf32>
    %172 = tpu.concatenate %171, %171 in 2 : vector<2x1x128xf32>, vector<2x1x128xf32> -> vector<2x1x256xf32>
    %173 = tpu.concatenate %169, %169 in 2 : vector<2x1x32xf32>, vector<2x1x32xf32> -> vector<2x1x64xf32>
    %174 = tpu.concatenate %173, %173 in 2 : vector<2x1x64xf32>, vector<2x1x64xf32> -> vector<2x1x128xf32>
    %175 = tpu.concatenate %174, %174 in 2 : vector<2x1x128xf32>, vector<2x1x128xf32> -> vector<2x1x256xf32>
    %176 = vector.broadcast %172 : vector<2x1x256xf32> to vector<2x2x256xf32>
    %177 = arith.subf %135, %176 : vector<2x2x256xf32>
    %178 = vector.broadcast %175 : vector<2x1x256xf32> to vector<2x2x256xf32>
    %179 = arith.mulf %177, %178 : vector<2x2x256xf32>
    %cst_56 = arith.constant 5.000000e-01 : f32
    %180 = vector.broadcast %cst_56 : f32 to vector<2x2x256xf32>
    %181 = arith.mulf %180, %135 : vector<2x2x256xf32>
    %cst_57 = arith.constant 5.000000e-01 : f32
    %182 = vector.broadcast %cst_57 : f32 to vector<2x2x256xf32>
    %183 = arith.mulf %182, %179 : vector<2x2x256xf32>
    %184 = arith.addf %181, %183 : vector<2x2x256xf32>
    %cst_58 = arith.constant 0.000000e+00 : f32
    %185 = vector.broadcast %cst_58 : f32 to vector<2x2x256xf32>
    %186 = arith.maximumf %184, %185 : vector<2x2x256xf32>
    %cst_59 = arith.constant 0.000000e+00 : f32
    %187 = vector.broadcast %cst_59 : f32 to vector<2x2x256xf32>
    %188 = arith.cmpf ogt, %184, %187 : vector<2x2x256xf32>
    %cst_60 = arith.constant 2.000000e-01 : f32
    %189 = vector.broadcast %cst_60 : f32 to vector<2x2x256xf32>
    %190 = arith.mulf %189, %184 : vector<2x2x256xf32>
    %191 = arith.select %188, %184, %190 : vector<2x2x256xi1>, vector<2x2x256xf32>
    %cst_61 = arith.constant 0.000000e+00 : f32
    %192 = vector.broadcast %cst_61 : f32 to vector<2x2x256xf32>
    %193 = arith.cmpf ogt, %184, %192 : vector<2x2x256xf32>
    %cst_62 = arith.constant 0.000000e+00 : f32
    %194 = vector.broadcast %cst_62 : f32 to vector<2x2x256xf32>
    %195 = arith.minimumf %184, %194 : vector<2x2x256xf32>
    %196 = math.exp %195 : vector<2x2x256xf32>
    %cst_63 = arith.constant 1.000000e+00 : f32
    %197 = vector.broadcast %cst_63 : f32 to vector<2x2x256xf32>
    %198 = arith.subf %196, %197 : vector<2x2x256xf32>
    %199 = arith.select %193, %184, %198 : vector<2x2x256xi1>, vector<2x2x256xf32>
    %200 = math.tanh %184 : vector<2x2x256xf32>
    %cst_64 = arith.constant 2.500000e-01 : f32
    %201 = vector.broadcast %cst_64 : f32 to vector<2x2x256xf32>
    %202 = arith.mulf %201, %186 : vector<2x2x256xf32>
    %cst_65 = arith.constant 2.500000e-01 : f32
    %203 = vector.broadcast %cst_65 : f32 to vector<2x2x256xf32>
    %204 = arith.mulf %203, %191 : vector<2x2x256xf32>
    %205 = arith.addf %202, %204 : vector<2x2x256xf32>
    %cst_66 = arith.constant 2.500000e-01 : f32
    %206 = vector.broadcast %cst_66 : f32 to vector<2x2x256xf32>
    %207 = arith.mulf %206, %199 : vector<2x2x256xf32>
    %208 = arith.addf %205, %207 : vector<2x2x256xf32>
    %cst_67 = arith.constant 2.500000e-01 : f32
    %209 = vector.broadcast %cst_67 : f32 to vector<2x2x256xf32>
    %210 = arith.mulf %209, %200 : vector<2x2x256xf32>
    %211 = arith.addf %208, %210 : vector<2x2x256xf32>
    %212 = vector.shape_cast %134 : vector<4x128xf32> to vector<2x2x128xf32>
    %213 = tpu.concatenate %212, %212 in 2 : vector<2x2x128xf32>, vector<2x2x128xf32> -> vector<2x2x256xf32>
    %214 = arith.addf %211, %213 : vector<2x2x256xf32>
    %215 = vector.extract_strided_slice %214 {offsets = [0, 0, 0], sizes = [2, 2, 128], strides = [1, 1, 1]} : vector<2x2x256xf32> to vector<2x2x128xf32>
    %216 = vector.extract_strided_slice %214 {offsets = [0, 0, 128], sizes = [2, 2, 128], strides = [1, 1, 1]} : vector<2x2x256xf32> to vector<2x2x128xf32>
    %217 = vector.shape_cast %215 : vector<2x2x128xf32> to vector<2x2x1x128xf32>
    %218 = vector.shape_cast %216 : vector<2x2x128xf32> to vector<2x2x1x128xf32>
    %219 = tpu.concatenate %217, %218 in 2 : vector<2x2x1x128xf32>, vector<2x2x1x128xf32> -> vector<2x2x2x128xf32>
    %220 = vector.shape_cast %219 : vector<2x2x2x128xf32> to vector<8x128xf32>
    %221 = vector.shape_cast %220 : vector<8x128xf32> to vector<2x4x128xf32>
    %cst_68 = arith.constant 0.000000e+00 : f32
    %222 = vector.broadcast %cst_68 : f32 to vector<2x1x128xf32>
    %223 = vector.extract_strided_slice %221 {offsets = [0, 0, 0], sizes = [2, 3, 128], strides = [1, 1, 1]} : vector<2x4x128xf32> to vector<2x3x128xf32>
    %224 = tpu.concatenate %222, %223 in 1 : vector<2x1x128xf32>, vector<2x3x128xf32> -> vector<2x4x128xf32>
    %225 = vector.extract_strided_slice %221 {offsets = [0, 1, 0], sizes = [2, 3, 128], strides = [1, 1, 1]} : vector<2x4x128xf32> to vector<2x3x128xf32>
    %226 = tpu.concatenate %225, %222 in 1 : vector<2x3x128xf32>, vector<2x1x128xf32> -> vector<2x4x128xf32>
    %227 = tpu.concatenate %224, %221, %226 in 2 : vector<2x4x128xf32>, vector<2x4x128xf32>, vector<2x4x128xf32> -> vector<2x4x384xf32>
    %228 = vector.shape_cast %227 : vector<2x4x384xf32> to vector<8x384xf32>
    %229 = arith.truncf %228 : vector<8x384xf32> to vector<8x384xbf16>
    %c0_69 = arith.constant 0 : index
    %c0_70 = arith.constant 0 : index
    %230 = vector.load %arg7[%c0_69, %c0_70] : memref<384x384xbf16, #tpu.memory_space<vmem>>, vector<384x384xbf16>
    %cst_71 = arith.constant dense<0.000000e+00> : vector<8x384xf32>
    %231 = tpu.matmul %229, %230, %cst_71 {dimension_numbers = #tpu.dot_dimension_numbers<[1], [0], [0], [1], [0, 0, 1, 1], [], []>} : vector<8x384xbf16>, vector<384x384xbf16>, vector<8x384xf32> -> vector<8x384xf32>
    %c0_72 = arith.constant 0 : index
    %c0_73 = arith.constant 0 : index
    %232 = vector.load %arg8[%c0_72, %c0_73] : memref<1x384xf32, #tpu.memory_space<vmem>>, vector<1x384xf32>
    %233 = vector.broadcast %232 : vector<1x384xf32> to vector<8x384xf32>
    %234 = arith.addf %231, %233 : vector<8x384xf32>
    %235 = vector.extract_strided_slice %234 {offsets = [0, 0], sizes = [8, 256], strides = [1, 1]} : vector<8x384xf32> to vector<8x256xf32>
    %236 = vector.extract_strided_slice %234 {offsets = [0, 256], sizes = [8, 128], strides = [1, 1]} : vector<8x384xf32> to vector<8x128xf32>
    %237 = vector.shape_cast %235 : vector<8x256xf32> to vector<2x4x256xf32>
    %cst_74 = arith.constant dense<0.000000e+00> : vector<2x256xf32>
    %238 = vector.multi_reduction <add>, %237, %cst_74 [1] : vector<2x4x256xf32> to vector<2x256xf32>
    %239 = vector.shape_cast %238 : vector<2x256xf32> to vector<2x1x256xf32>
    %240 = arith.mulf %237, %237 : vector<2x4x256xf32>
    %cst_75 = arith.constant dense<0.000000e+00> : vector<2x256xf32>
    %241 = vector.multi_reduction <add>, %240, %cst_75 [1] : vector<2x4x256xf32> to vector<2x256xf32>
    %242 = vector.shape_cast %241 : vector<2x256xf32> to vector<2x1x256xf32>
    %243 = vector.extract_strided_slice %239 {offsets = [0, 0, 0], sizes = [2, 1, 128], strides = [1, 1, 1]} : vector<2x1x256xf32> to vector<2x1x128xf32>
    %244 = vector.extract_strided_slice %239 {offsets = [0, 0, 128], sizes = [2, 1, 128], strides = [1, 1, 1]} : vector<2x1x256xf32> to vector<2x1x128xf32>
    %245 = arith.addf %243, %244 : vector<2x1x128xf32>
    %246 = vector.extract_strided_slice %245 {offsets = [0, 0, 0], sizes = [2, 1, 64], strides = [1, 1, 1]} : vector<2x1x128xf32> to vector<2x1x64xf32>
    %247 = vector.extract_strided_slice %245 {offsets = [0, 0, 64], sizes = [2, 1, 64], strides = [1, 1, 1]} : vector<2x1x128xf32> to vector<2x1x64xf32>
    %248 = arith.addf %246, %247 : vector<2x1x64xf32>
    %249 = vector.extract_strided_slice %248 {offsets = [0, 0, 0], sizes = [2, 1, 32], strides = [1, 1, 1]} : vector<2x1x64xf32> to vector<2x1x32xf32>
    %250 = vector.extract_strided_slice %248 {offsets = [0, 0, 32], sizes = [2, 1, 32], strides = [1, 1, 1]} : vector<2x1x64xf32> to vector<2x1x32xf32>
    %251 = arith.addf %249, %250 : vector<2x1x32xf32>
    %252 = vector.extract_strided_slice %251 {offsets = [0, 0, 0], sizes = [2, 1, 16], strides = [1, 1, 1]} : vector<2x1x32xf32> to vector<2x1x16xf32>
    %253 = vector.extract_strided_slice %251 {offsets = [0, 0, 16], sizes = [2, 1, 16], strides = [1, 1, 1]} : vector<2x1x32xf32> to vector<2x1x16xf32>
    %254 = arith.addf %252, %253 : vector<2x1x16xf32>
    %255 = vector.extract_strided_slice %242 {offsets = [0, 0, 0], sizes = [2, 1, 128], strides = [1, 1, 1]} : vector<2x1x256xf32> to vector<2x1x128xf32>
    %256 = vector.extract_strided_slice %242 {offsets = [0, 0, 128], sizes = [2, 1, 128], strides = [1, 1, 1]} : vector<2x1x256xf32> to vector<2x1x128xf32>
    %257 = arith.addf %255, %256 : vector<2x1x128xf32>
    %258 = vector.extract_strided_slice %257 {offsets = [0, 0, 0], sizes = [2, 1, 64], strides = [1, 1, 1]} : vector<2x1x128xf32> to vector<2x1x64xf32>
    %259 = vector.extract_strided_slice %257 {offsets = [0, 0, 64], sizes = [2, 1, 64], strides = [1, 1, 1]} : vector<2x1x128xf32> to vector<2x1x64xf32>
    %260 = arith.addf %258, %259 : vector<2x1x64xf32>
    %261 = vector.extract_strided_slice %260 {offsets = [0, 0, 0], sizes = [2, 1, 32], strides = [1, 1, 1]} : vector<2x1x64xf32> to vector<2x1x32xf32>
    %262 = vector.extract_strided_slice %260 {offsets = [0, 0, 32], sizes = [2, 1, 32], strides = [1, 1, 1]} : vector<2x1x64xf32> to vector<2x1x32xf32>
    %263 = arith.addf %261, %262 : vector<2x1x32xf32>
    %264 = vector.extract_strided_slice %263 {offsets = [0, 0, 0], sizes = [2, 1, 16], strides = [1, 1, 1]} : vector<2x1x32xf32> to vector<2x1x16xf32>
    %265 = vector.extract_strided_slice %263 {offsets = [0, 0, 16], sizes = [2, 1, 16], strides = [1, 1, 1]} : vector<2x1x32xf32> to vector<2x1x16xf32>
    %266 = arith.addf %264, %265 : vector<2x1x16xf32>
    %cst_76 = arith.constant 1.562500e-02 : f32
    %267 = vector.broadcast %cst_76 : f32 to vector<2x1x16xf32>
    %268 = arith.mulf %254, %267 : vector<2x1x16xf32>
    %cst_77 = arith.constant 1.562500e-02 : f32
    %269 = vector.broadcast %cst_77 : f32 to vector<2x1x16xf32>
    %270 = arith.mulf %266, %269 : vector<2x1x16xf32>
    %271 = arith.mulf %268, %268 : vector<2x1x16xf32>
    %272 = arith.subf %270, %271 : vector<2x1x16xf32>
    %cst_78 = arith.constant 0.000000e+00 : f32
    %273 = vector.broadcast %cst_78 : f32 to vector<2x1x16xf32>
    %274 = arith.maximumf %272, %273 : vector<2x1x16xf32>
    %cst_79 = arith.constant 9.99999974E-6 : f32
    %275 = vector.broadcast %cst_79 : f32 to vector<2x1x16xf32>
    %276 = arith.addf %274, %275 : vector<2x1x16xf32>
    %277 = math.rsqrt %276 : vector<2x1x16xf32>
    %278 = tpu.concatenate %268, %268 in 2 : vector<2x1x16xf32>, vector<2x1x16xf32> -> vector<2x1x32xf32>
    %279 = tpu.concatenate %278, %278 in 2 : vector<2x1x32xf32>, vector<2x1x32xf32> -> vector<2x1x64xf32>
    %280 = tpu.concatenate %279, %279 in 2 : vector<2x1x64xf32>, vector<2x1x64xf32> -> vector<2x1x128xf32>
    %281 = tpu.concatenate %280, %280 in 2 : vector<2x1x128xf32>, vector<2x1x128xf32> -> vector<2x1x256xf32>
    %282 = tpu.concatenate %277, %277 in 2 : vector<2x1x16xf32>, vector<2x1x16xf32> -> vector<2x1x32xf32>
    %283 = tpu.concatenate %282, %282 in 2 : vector<2x1x32xf32>, vector<2x1x32xf32> -> vector<2x1x64xf32>
    %284 = tpu.concatenate %283, %283 in 2 : vector<2x1x64xf32>, vector<2x1x64xf32> -> vector<2x1x128xf32>
    %285 = tpu.concatenate %284, %284 in 2 : vector<2x1x128xf32>, vector<2x1x128xf32> -> vector<2x1x256xf32>
    %286 = vector.broadcast %281 : vector<2x1x256xf32> to vector<2x4x256xf32>
    %287 = arith.subf %237, %286 : vector<2x4x256xf32>
    %288 = vector.broadcast %285 : vector<2x1x256xf32> to vector<2x4x256xf32>
    %289 = arith.mulf %287, %288 : vector<2x4x256xf32>
    %cst_80 = arith.constant 5.000000e-01 : f32
    %290 = vector.broadcast %cst_80 : f32 to vector<2x4x256xf32>
    %291 = arith.mulf %290, %237 : vector<2x4x256xf32>
    %cst_81 = arith.constant 5.000000e-01 : f32
    %292 = vector.broadcast %cst_81 : f32 to vector<2x4x256xf32>
    %293 = arith.mulf %292, %289 : vector<2x4x256xf32>
    %294 = arith.addf %291, %293 : vector<2x4x256xf32>
    %cst_82 = arith.constant 0.000000e+00 : f32
    %295 = vector.broadcast %cst_82 : f32 to vector<2x4x256xf32>
    %296 = arith.maximumf %294, %295 : vector<2x4x256xf32>
    %cst_83 = arith.constant 0.000000e+00 : f32
    %297 = vector.broadcast %cst_83 : f32 to vector<2x4x256xf32>
    %298 = arith.cmpf ogt, %294, %297 : vector<2x4x256xf32>
    %cst_84 = arith.constant 2.000000e-01 : f32
    %299 = vector.broadcast %cst_84 : f32 to vector<2x4x256xf32>
    %300 = arith.mulf %299, %294 : vector<2x4x256xf32>
    %301 = arith.select %298, %294, %300 : vector<2x4x256xi1>, vector<2x4x256xf32>
    %cst_85 = arith.constant 0.000000e+00 : f32
    %302 = vector.broadcast %cst_85 : f32 to vector<2x4x256xf32>
    %303 = arith.cmpf ogt, %294, %302 : vector<2x4x256xf32>
    %cst_86 = arith.constant 0.000000e+00 : f32
    %304 = vector.broadcast %cst_86 : f32 to vector<2x4x256xf32>
    %305 = arith.minimumf %294, %304 : vector<2x4x256xf32>
    %306 = math.exp %305 : vector<2x4x256xf32>
    %cst_87 = arith.constant 1.000000e+00 : f32
    %307 = vector.broadcast %cst_87 : f32 to vector<2x4x256xf32>
    %308 = arith.subf %306, %307 : vector<2x4x256xf32>
    %309 = arith.select %303, %294, %308 : vector<2x4x256xi1>, vector<2x4x256xf32>
    %310 = math.tanh %294 : vector<2x4x256xf32>
    %cst_88 = arith.constant 2.500000e-01 : f32
    %311 = vector.broadcast %cst_88 : f32 to vector<2x4x256xf32>
    %312 = arith.mulf %311, %296 : vector<2x4x256xf32>
    %cst_89 = arith.constant 2.500000e-01 : f32
    %313 = vector.broadcast %cst_89 : f32 to vector<2x4x256xf32>
    %314 = arith.mulf %313, %301 : vector<2x4x256xf32>
    %315 = arith.addf %312, %314 : vector<2x4x256xf32>
    %cst_90 = arith.constant 2.500000e-01 : f32
    %316 = vector.broadcast %cst_90 : f32 to vector<2x4x256xf32>
    %317 = arith.mulf %316, %309 : vector<2x4x256xf32>
    %318 = arith.addf %315, %317 : vector<2x4x256xf32>
    %cst_91 = arith.constant 2.500000e-01 : f32
    %319 = vector.broadcast %cst_91 : f32 to vector<2x4x256xf32>
    %320 = arith.mulf %319, %310 : vector<2x4x256xf32>
    %321 = arith.addf %318, %320 : vector<2x4x256xf32>
    %322 = vector.shape_cast %236 : vector<8x128xf32> to vector<2x4x128xf32>
    %323 = tpu.concatenate %322, %322 in 2 : vector<2x4x128xf32>, vector<2x4x128xf32> -> vector<2x4x256xf32>
    %324 = arith.addf %321, %323 : vector<2x4x256xf32>
    %325 = vector.extract_strided_slice %324 {offsets = [0, 0, 0], sizes = [2, 4, 128], strides = [1, 1, 1]} : vector<2x4x256xf32> to vector<2x4x128xf32>
    %326 = vector.extract_strided_slice %324 {offsets = [0, 0, 128], sizes = [2, 4, 128], strides = [1, 1, 1]} : vector<2x4x256xf32> to vector<2x4x128xf32>
    %327 = vector.shape_cast %325 : vector<2x4x128xf32> to vector<2x4x1x128xf32>
    %328 = vector.shape_cast %326 : vector<2x4x128xf32> to vector<2x4x1x128xf32>
    %329 = tpu.concatenate %327, %328 in 2 : vector<2x4x1x128xf32>, vector<2x4x1x128xf32> -> vector<2x4x2x128xf32>
    %330 = vector.shape_cast %329 : vector<2x4x2x128xf32> to vector<16x128xf32>
    %331 = vector.shape_cast %330 : vector<16x128xf32> to vector<2x8x128xf32>
    %cst_92 = arith.constant 0.000000e+00 : f32
    %332 = vector.broadcast %cst_92 : f32 to vector<2x1x128xf32>
    %333 = vector.extract_strided_slice %331 {offsets = [0, 0, 0], sizes = [2, 7, 128], strides = [1, 1, 1]} : vector<2x8x128xf32> to vector<2x7x128xf32>
    %334 = tpu.concatenate %332, %333 in 1 : vector<2x1x128xf32>, vector<2x7x128xf32> -> vector<2x8x128xf32>
    %335 = vector.extract_strided_slice %331 {offsets = [0, 1, 0], sizes = [2, 7, 128], strides = [1, 1, 1]} : vector<2x8x128xf32> to vector<2x7x128xf32>
    %336 = tpu.concatenate %335, %332 in 1 : vector<2x7x128xf32>, vector<2x1x128xf32> -> vector<2x8x128xf32>
    %337 = tpu.concatenate %334, %331, %336 in 2 : vector<2x8x128xf32>, vector<2x8x128xf32>, vector<2x8x128xf32> -> vector<2x8x384xf32>
    %338 = vector.shape_cast %337 : vector<2x8x384xf32> to vector<16x384xf32>
    %339 = arith.truncf %338 : vector<16x384xf32> to vector<16x384xbf16>
    %c0_93 = arith.constant 0 : index
    %c0_94 = arith.constant 0 : index
    %340 = vector.load %arg9[%c0_93, %c0_94] : memref<384x384xbf16, #tpu.memory_space<vmem>>, vector<384x384xbf16>
    %cst_95 = arith.constant dense<0.000000e+00> : vector<16x384xf32>
    %341 = tpu.matmul %339, %340, %cst_95 {dimension_numbers = #tpu.dot_dimension_numbers<[1], [0], [0], [1], [0, 0, 1, 1], [], []>} : vector<16x384xbf16>, vector<384x384xbf16>, vector<16x384xf32> -> vector<16x384xf32>
    %c0_96 = arith.constant 0 : index
    %c0_97 = arith.constant 0 : index
    %342 = vector.load %arg10[%c0_96, %c0_97] : memref<1x384xf32, #tpu.memory_space<vmem>>, vector<1x384xf32>
    %343 = vector.broadcast %342 : vector<1x384xf32> to vector<16x384xf32>
    %344 = arith.addf %341, %343 : vector<16x384xf32>
    %345 = vector.extract_strided_slice %344 {offsets = [0, 0], sizes = [16, 256], strides = [1, 1]} : vector<16x384xf32> to vector<16x256xf32>
    %346 = vector.extract_strided_slice %344 {offsets = [0, 256], sizes = [16, 128], strides = [1, 1]} : vector<16x384xf32> to vector<16x128xf32>
    %347 = vector.shape_cast %345 : vector<16x256xf32> to vector<2x8x256xf32>
    %cst_98 = arith.constant dense<0.000000e+00> : vector<2x256xf32>
    %348 = vector.multi_reduction <add>, %347, %cst_98 [1] : vector<2x8x256xf32> to vector<2x256xf32>
    %349 = vector.shape_cast %348 : vector<2x256xf32> to vector<2x1x256xf32>
    %350 = arith.mulf %347, %347 : vector<2x8x256xf32>
    %cst_99 = arith.constant dense<0.000000e+00> : vector<2x256xf32>
    %351 = vector.multi_reduction <add>, %350, %cst_99 [1] : vector<2x8x256xf32> to vector<2x256xf32>
    %352 = vector.shape_cast %351 : vector<2x256xf32> to vector<2x1x256xf32>
    %353 = vector.extract_strided_slice %349 {offsets = [0, 0, 0], sizes = [2, 1, 128], strides = [1, 1, 1]} : vector<2x1x256xf32> to vector<2x1x128xf32>
    %354 = vector.extract_strided_slice %349 {offsets = [0, 0, 128], sizes = [2, 1, 128], strides = [1, 1, 1]} : vector<2x1x256xf32> to vector<2x1x128xf32>
    %355 = arith.addf %353, %354 : vector<2x1x128xf32>
    %356 = vector.extract_strided_slice %355 {offsets = [0, 0, 0], sizes = [2, 1, 64], strides = [1, 1, 1]} : vector<2x1x128xf32> to vector<2x1x64xf32>
    %357 = vector.extract_strided_slice %355 {offsets = [0, 0, 64], sizes = [2, 1, 64], strides = [1, 1, 1]} : vector<2x1x128xf32> to vector<2x1x64xf32>
    %358 = arith.addf %356, %357 : vector<2x1x64xf32>
    %359 = vector.extract_strided_slice %358 {offsets = [0, 0, 0], sizes = [2, 1, 32], strides = [1, 1, 1]} : vector<2x1x64xf32> to vector<2x1x32xf32>
    %360 = vector.extract_strided_slice %358 {offsets = [0, 0, 32], sizes = [2, 1, 32], strides = [1, 1, 1]} : vector<2x1x64xf32> to vector<2x1x32xf32>
    %361 = arith.addf %359, %360 : vector<2x1x32xf32>
    %362 = vector.extract_strided_slice %361 {offsets = [0, 0, 0], sizes = [2, 1, 16], strides = [1, 1, 1]} : vector<2x1x32xf32> to vector<2x1x16xf32>
    %363 = vector.extract_strided_slice %361 {offsets = [0, 0, 16], sizes = [2, 1, 16], strides = [1, 1, 1]} : vector<2x1x32xf32> to vector<2x1x16xf32>
    %364 = arith.addf %362, %363 : vector<2x1x16xf32>
    %365 = vector.extract_strided_slice %364 {offsets = [0, 0, 0], sizes = [2, 1, 8], strides = [1, 1, 1]} : vector<2x1x16xf32> to vector<2x1x8xf32>
    %366 = vector.extract_strided_slice %364 {offsets = [0, 0, 8], sizes = [2, 1, 8], strides = [1, 1, 1]} : vector<2x1x16xf32> to vector<2x1x8xf32>
    %367 = arith.addf %365, %366 : vector<2x1x8xf32>
    %368 = vector.extract_strided_slice %352 {offsets = [0, 0, 0], sizes = [2, 1, 128], strides = [1, 1, 1]} : vector<2x1x256xf32> to vector<2x1x128xf32>
    %369 = vector.extract_strided_slice %352 {offsets = [0, 0, 128], sizes = [2, 1, 128], strides = [1, 1, 1]} : vector<2x1x256xf32> to vector<2x1x128xf32>
    %370 = arith.addf %368, %369 : vector<2x1x128xf32>
    %371 = vector.extract_strided_slice %370 {offsets = [0, 0, 0], sizes = [2, 1, 64], strides = [1, 1, 1]} : vector<2x1x128xf32> to vector<2x1x64xf32>
    %372 = vector.extract_strided_slice %370 {offsets = [0, 0, 64], sizes = [2, 1, 64], strides = [1, 1, 1]} : vector<2x1x128xf32> to vector<2x1x64xf32>
    %373 = arith.addf %371, %372 : vector<2x1x64xf32>
    %374 = vector.extract_strided_slice %373 {offsets = [0, 0, 0], sizes = [2, 1, 32], strides = [1, 1, 1]} : vector<2x1x64xf32> to vector<2x1x32xf32>
    %375 = vector.extract_strided_slice %373 {offsets = [0, 0, 32], sizes = [2, 1, 32], strides = [1, 1, 1]} : vector<2x1x64xf32> to vector<2x1x32xf32>
    %376 = arith.addf %374, %375 : vector<2x1x32xf32>
    %377 = vector.extract_strided_slice %376 {offsets = [0, 0, 0], sizes = [2, 1, 16], strides = [1, 1, 1]} : vector<2x1x32xf32> to vector<2x1x16xf32>
    %378 = vector.extract_strided_slice %376 {offsets = [0, 0, 16], sizes = [2, 1, 16], strides = [1, 1, 1]} : vector<2x1x32xf32> to vector<2x1x16xf32>
    %379 = arith.addf %377, %378 : vector<2x1x16xf32>
    %380 = vector.extract_strided_slice %379 {offsets = [0, 0, 0], sizes = [2, 1, 8], strides = [1, 1, 1]} : vector<2x1x16xf32> to vector<2x1x8xf32>
    %381 = vector.extract_strided_slice %379 {offsets = [0, 0, 8], sizes = [2, 1, 8], strides = [1, 1, 1]} : vector<2x1x16xf32> to vector<2x1x8xf32>
    %382 = arith.addf %380, %381 : vector<2x1x8xf32>
    %cst_100 = arith.constant 3.906250e-03 : f32
    %383 = vector.broadcast %cst_100 : f32 to vector<2x1x8xf32>
    %384 = arith.mulf %367, %383 : vector<2x1x8xf32>
    %cst_101 = arith.constant 3.906250e-03 : f32
    %385 = vector.broadcast %cst_101 : f32 to vector<2x1x8xf32>
    %386 = arith.mulf %382, %385 : vector<2x1x8xf32>
    %387 = arith.mulf %384, %384 : vector<2x1x8xf32>
    %388 = arith.subf %386, %387 : vector<2x1x8xf32>
    %cst_102 = arith.constant 0.000000e+00 : f32
    %389 = vector.broadcast %cst_102 : f32 to vector<2x1x8xf32>
    %390 = arith.maximumf %388, %389 : vector<2x1x8xf32>
    %cst_103 = arith.constant 9.99999974E-6 : f32
    %391 = vector.broadcast %cst_103 : f32 to vector<2x1x8xf32>
    %392 = arith.addf %390, %391 : vector<2x1x8xf32>
    %393 = math.rsqrt %392 : vector<2x1x8xf32>
    %394 = tpu.concatenate %384, %384 in 2 : vector<2x1x8xf32>, vector<2x1x8xf32> -> vector<2x1x16xf32>
    %395 = tpu.concatenate %394, %394 in 2 : vector<2x1x16xf32>, vector<2x1x16xf32> -> vector<2x1x32xf32>
    %396 = tpu.concatenate %395, %395 in 2 : vector<2x1x32xf32>, vector<2x1x32xf32> -> vector<2x1x64xf32>
    %397 = tpu.concatenate %396, %396 in 2 : vector<2x1x64xf32>, vector<2x1x64xf32> -> vector<2x1x128xf32>
    %398 = tpu.concatenate %397, %397 in 2 : vector<2x1x128xf32>, vector<2x1x128xf32> -> vector<2x1x256xf32>
    %399 = tpu.concatenate %393, %393 in 2 : vector<2x1x8xf32>, vector<2x1x8xf32> -> vector<2x1x16xf32>
    %400 = tpu.concatenate %399, %399 in 2 : vector<2x1x16xf32>, vector<2x1x16xf32> -> vector<2x1x32xf32>
    %401 = tpu.concatenate %400, %400 in 2 : vector<2x1x32xf32>, vector<2x1x32xf32> -> vector<2x1x64xf32>
    %402 = tpu.concatenate %401, %401 in 2 : vector<2x1x64xf32>, vector<2x1x64xf32> -> vector<2x1x128xf32>
    %403 = tpu.concatenate %402, %402 in 2 : vector<2x1x128xf32>, vector<2x1x128xf32> -> vector<2x1x256xf32>
    %404 = vector.broadcast %398 : vector<2x1x256xf32> to vector<2x8x256xf32>
    %405 = arith.subf %347, %404 : vector<2x8x256xf32>
    %406 = vector.broadcast %403 : vector<2x1x256xf32> to vector<2x8x256xf32>
    %407 = arith.mulf %405, %406 : vector<2x8x256xf32>
    %cst_104 = arith.constant 5.000000e-01 : f32
    %408 = vector.broadcast %cst_104 : f32 to vector<2x8x256xf32>
    %409 = arith.mulf %408, %347 : vector<2x8x256xf32>
    %cst_105 = arith.constant 5.000000e-01 : f32
    %410 = vector.broadcast %cst_105 : f32 to vector<2x8x256xf32>
    %411 = arith.mulf %410, %407 : vector<2x8x256xf32>
    %412 = arith.addf %409, %411 : vector<2x8x256xf32>
    %cst_106 = arith.constant 0.000000e+00 : f32
    %413 = vector.broadcast %cst_106 : f32 to vector<2x8x256xf32>
    %414 = arith.maximumf %412, %413 : vector<2x8x256xf32>
    %cst_107 = arith.constant 0.000000e+00 : f32
    %415 = vector.broadcast %cst_107 : f32 to vector<2x8x256xf32>
    %416 = arith.cmpf ogt, %412, %415 : vector<2x8x256xf32>
    %cst_108 = arith.constant 2.000000e-01 : f32
    %417 = vector.broadcast %cst_108 : f32 to vector<2x8x256xf32>
    %418 = arith.mulf %417, %412 : vector<2x8x256xf32>
    %419 = arith.select %416, %412, %418 : vector<2x8x256xi1>, vector<2x8x256xf32>
    %cst_109 = arith.constant 0.000000e+00 : f32
    %420 = vector.broadcast %cst_109 : f32 to vector<2x8x256xf32>
    %421 = arith.cmpf ogt, %412, %420 : vector<2x8x256xf32>
    %cst_110 = arith.constant 0.000000e+00 : f32
    %422 = vector.broadcast %cst_110 : f32 to vector<2x8x256xf32>
    %423 = arith.minimumf %412, %422 : vector<2x8x256xf32>
    %424 = math.exp %423 : vector<2x8x256xf32>
    %cst_111 = arith.constant 1.000000e+00 : f32
    %425 = vector.broadcast %cst_111 : f32 to vector<2x8x256xf32>
    %426 = arith.subf %424, %425 : vector<2x8x256xf32>
    %427 = arith.select %421, %412, %426 : vector<2x8x256xi1>, vector<2x8x256xf32>
    %428 = math.tanh %412 : vector<2x8x256xf32>
    %cst_112 = arith.constant 2.500000e-01 : f32
    %429 = vector.broadcast %cst_112 : f32 to vector<2x8x256xf32>
    %430 = arith.mulf %429, %414 : vector<2x8x256xf32>
    %cst_113 = arith.constant 2.500000e-01 : f32
    %431 = vector.broadcast %cst_113 : f32 to vector<2x8x256xf32>
    %432 = arith.mulf %431, %419 : vector<2x8x256xf32>
    %433 = arith.addf %430, %432 : vector<2x8x256xf32>
    %cst_114 = arith.constant 2.500000e-01 : f32
    %434 = vector.broadcast %cst_114 : f32 to vector<2x8x256xf32>
    %435 = arith.mulf %434, %427 : vector<2x8x256xf32>
    %436 = arith.addf %433, %435 : vector<2x8x256xf32>
    %cst_115 = arith.constant 2.500000e-01 : f32
    %437 = vector.broadcast %cst_115 : f32 to vector<2x8x256xf32>
    %438 = arith.mulf %437, %428 : vector<2x8x256xf32>
    %439 = arith.addf %436, %438 : vector<2x8x256xf32>
    %440 = vector.shape_cast %346 : vector<16x128xf32> to vector<2x8x128xf32>
    %441 = tpu.concatenate %440, %440 in 2 : vector<2x8x128xf32>, vector<2x8x128xf32> -> vector<2x8x256xf32>
    %442 = arith.addf %439, %441 : vector<2x8x256xf32>
    %443 = vector.extract_strided_slice %442 {offsets = [0, 0, 0], sizes = [2, 8, 128], strides = [1, 1, 1]} : vector<2x8x256xf32> to vector<2x8x128xf32>
    %444 = vector.extract_strided_slice %442 {offsets = [0, 0, 128], sizes = [2, 8, 128], strides = [1, 1, 1]} : vector<2x8x256xf32> to vector<2x8x128xf32>
    %445 = vector.shape_cast %443 : vector<2x8x128xf32> to vector<2x8x1x128xf32>
    %446 = vector.shape_cast %444 : vector<2x8x128xf32> to vector<2x8x1x128xf32>
    %447 = tpu.concatenate %445, %446 in 2 : vector<2x8x1x128xf32>, vector<2x8x1x128xf32> -> vector<2x8x2x128xf32>
    %448 = vector.shape_cast %447 : vector<2x8x2x128xf32> to vector<32x128xf32>
    %449 = vector.shape_cast %448 : vector<32x128xf32> to vector<2x16x128xf32>
    %cst_116 = arith.constant 0.000000e+00 : f32
    %450 = vector.broadcast %cst_116 : f32 to vector<2x1x128xf32>
    %451 = vector.extract_strided_slice %449 {offsets = [0, 0, 0], sizes = [2, 15, 128], strides = [1, 1, 1]} : vector<2x16x128xf32> to vector<2x15x128xf32>
    %452 = tpu.concatenate %450, %451 in 1 : vector<2x1x128xf32>, vector<2x15x128xf32> -> vector<2x16x128xf32>
    %453 = vector.extract_strided_slice %449 {offsets = [0, 1, 0], sizes = [2, 15, 128], strides = [1, 1, 1]} : vector<2x16x128xf32> to vector<2x15x128xf32>
    %454 = tpu.concatenate %453, %450 in 1 : vector<2x15x128xf32>, vector<2x1x128xf32> -> vector<2x16x128xf32>
    %455 = tpu.concatenate %452, %449, %454 in 2 : vector<2x16x128xf32>, vector<2x16x128xf32>, vector<2x16x128xf32> -> vector<2x16x384xf32>
    %456 = vector.shape_cast %455 : vector<2x16x384xf32> to vector<32x384xf32>
    %457 = arith.truncf %456 : vector<32x384xf32> to vector<32x384xbf16>
    %c0_117 = arith.constant 0 : index
    %c0_118 = arith.constant 0 : index
    %458 = vector.load %arg11[%c0_117, %c0_118] : memref<384x16xbf16, #tpu.memory_space<vmem>>, vector<384x16xbf16>
    %cst_119 = arith.constant dense<0.000000e+00> : vector<32x16xf32>
    %459 = tpu.matmul %457, %458, %cst_119 {dimension_numbers = #tpu.dot_dimension_numbers<[1], [0], [0], [1], [0, 0, 1, 1], [], []>} : vector<32x384xbf16>, vector<384x16xbf16>, vector<32x16xf32> -> vector<32x16xf32>
    %c0_120 = arith.constant 0 : index
    %c0_121 = arith.constant 0 : index
    %460 = vector.load %arg12[%c0_120, %c0_121] : memref<1x16xf32, #tpu.memory_space<vmem>>, vector<1x16xf32>
    %461 = vector.broadcast %460 : vector<1x16xf32> to vector<32x16xf32>
    %462 = arith.addf %459, %461 : vector<32x16xf32>
    %463 = arith.truncf %448 : vector<32x128xf32> to vector<32x128xbf16>
    %c0_122 = arith.constant 0 : index
    %c0_123 = arith.constant 0 : index
    %464 = vector.load %arg13[%c0_122, %c0_123] : memref<128x16xbf16, #tpu.memory_space<vmem>>, vector<128x16xbf16>
    %cst_124 = arith.constant dense<0.000000e+00> : vector<32x16xf32>
    %465 = tpu.matmul %463, %464, %cst_124 {dimension_numbers = #tpu.dot_dimension_numbers<[1], [0], [0], [1], [0, 0, 1, 1], [], []>} : vector<32x128xbf16>, vector<128x16xbf16>, vector<32x16xf32> -> vector<32x16xf32>
    %c0_125 = arith.constant 0 : index
    %c0_126 = arith.constant 0 : index
    %466 = vector.load %arg14[%c0_125, %c0_126] : memref<1x16xf32, #tpu.memory_space<vmem>>, vector<1x16xf32>
    %467 = vector.broadcast %466 : vector<1x16xf32> to vector<32x16xf32>
    %468 = arith.addf %465, %467 : vector<32x16xf32>
    %469 = math.tanh %462 : vector<32x16xf32>
    %470 = arith.negf %468 : vector<32x16xf32>
    %471 = math.exp %470 : vector<32x16xf32>
    %cst_127 = arith.constant 1.000000e+00 : f32
    %472 = vector.broadcast %cst_127 : f32 to vector<32x16xf32>
    %473 = arith.addf %472, %471 : vector<32x16xf32>
    %474 = arith.divf %472, %473 : vector<32x16xf32>
    %475 = arith.mulf %469, %474 : vector<32x16xf32>
    %476 = vector.shape_cast %475 : vector<32x16xf32> to vector<4x8x16xf32>
    %477 = vector.extract_strided_slice %476 {offsets = [0, 0, 0], sizes = [4, 1, 16], strides = [1, 1, 1]} : vector<4x8x16xf32> to vector<4x1x16xf32>
    %478 = vector.shape_cast %477 : vector<4x1x16xf32> to vector<4x16xf32>
    %479 = vector.extract_strided_slice %476 {offsets = [0, 1, 0], sizes = [4, 1, 16], strides = [1, 1, 1]} : vector<4x8x16xf32> to vector<4x1x16xf32>
    %480 = vector.shape_cast %479 : vector<4x1x16xf32> to vector<4x16xf32>
    %481 = vector.extract_strided_slice %476 {offsets = [0, 2, 0], sizes = [4, 1, 16], strides = [1, 1, 1]} : vector<4x8x16xf32> to vector<4x1x16xf32>
    %482 = vector.shape_cast %481 : vector<4x1x16xf32> to vector<4x16xf32>
    %483 = vector.extract_strided_slice %476 {offsets = [0, 3, 0], sizes = [4, 1, 16], strides = [1, 1, 1]} : vector<4x8x16xf32> to vector<4x1x16xf32>
    %484 = vector.shape_cast %483 : vector<4x1x16xf32> to vector<4x16xf32>
    %485 = vector.extract_strided_slice %476 {offsets = [0, 4, 0], sizes = [4, 1, 16], strides = [1, 1, 1]} : vector<4x8x16xf32> to vector<4x1x16xf32>
    %486 = vector.shape_cast %485 : vector<4x1x16xf32> to vector<4x16xf32>
    %487 = vector.extract_strided_slice %476 {offsets = [0, 5, 0], sizes = [4, 1, 16], strides = [1, 1, 1]} : vector<4x8x16xf32> to vector<4x1x16xf32>
    %488 = vector.shape_cast %487 : vector<4x1x16xf32> to vector<4x16xf32>
    %489 = vector.extract_strided_slice %476 {offsets = [0, 6, 0], sizes = [4, 1, 16], strides = [1, 1, 1]} : vector<4x8x16xf32> to vector<4x1x16xf32>
    %490 = vector.shape_cast %489 : vector<4x1x16xf32> to vector<4x16xf32>
    %491 = vector.extract_strided_slice %476 {offsets = [0, 7, 0], sizes = [4, 1, 16], strides = [1, 1, 1]} : vector<4x8x16xf32> to vector<4x1x16xf32>
    %492 = vector.shape_cast %491 : vector<4x1x16xf32> to vector<4x16xf32>
    %493 = tpu.concatenate %478, %480, %482, %484, %486, %488, %490, %492 in 1 : vector<4x16xf32>, vector<4x16xf32>, vector<4x16xf32>, vector<4x16xf32>, vector<4x16xf32>, vector<4x16xf32>, vector<4x16xf32>, vector<4x16xf32> -> vector<4x128xf32>
    %c0_128 = arith.constant 0 : index
    %c0_129 = arith.constant 0 : index
    %494 = vector.load %arg15[%c0_128, %c0_129] : memref<4x128xf32, #tpu.memory_space<vmem>>, vector<4x128xf32>
    tpu.vector_store %arg15[%c0_128, %c0_129], %493 {strides = array<i32>} : memref<4x128xf32, #tpu.memory_space<vmem>>, vector<4x128xf32>,
    return
  }
}

</mosaic_0001>

<bundles_post_ra>
// kernel: forward.1
= control target key start
LH: loop header
LB: loop body
LE: loop exit
PB: predicated region body
PF: predicated region fallthrough
CT: control target
= control target key end

     0   :  { %20 = vsyncpa [#allocation3], 0  ;;  %s7039_s0 = inlined_call_operand.vmem [shape: f32[2,128], index: 0, kind: input, shape index: {}]   ;;  %s7040_s1 = inlined_call_operand.vmem [shape: bf16[128,128], index: 1, kind: input, shape index: {}]   ;;  %s7041_s2 = inlined_call_operand.vmem [shape: f32[1,128], index: 2, kind: input, shape index: {}]   ;;  %s7042_s3 = inlined_call_operand.vmem [shape: bf16[128,256], index: 3, kind: input, shape index: {}]   ;;  %s7043_s4 = inlined_call_operand.vmem [shape: f32[1,256], index: 4, kind: input, shape index: {}]   ;;  %s7044_s5 = inlined_call_operand.hbm [shape: bf16[384,384], index: 5, kind: input, shape index: {}]   ;;  %s7045_s6 = inlined_call_operand.vmem [shape: f32[1,384], index: 6, kind: input, shape index: {}]   ;;  %s7046_s7 = inlined_call_operand.hbm [shape: bf16[384,384], index: 7, kind: input, shape index: {}]   ;;  %s7047_s8 = inlined_call_operand.vmem [shape: f32[1,384], index: 8, kind: input, shape index: {}]   ;;  %s7048_s9 = inlined_call_operand.hbm [shape: bf16[384,384], index: 9, kind: input, shape index: {}]   ;;  %s7049_s10 = inlined_call_operand.vmem [shape: f32[1,384], index: 10, kind: input, shape index: {}]   ;;  %s7050_s11 = inlined_call_operand.vmem [shape: bf16[384,16], index: 11, kind: input, shape index: {}]   ;;  %s7051_s12 = inlined_call_operand.vmem [shape: f32[1,16], index: 12, kind: input, shape index: {}]   ;;  %s7052_s13 = inlined_call_operand.vmem [shape: bf16[128,16], index: 13, kind: input, shape index: {}]   ;;  %s7053_s14 = inlined_call_operand.vmem [shape: f32[1,16], index: 14, kind: input, shape index: {}]   ;;  %s7054_s15 = inlined_call_operand.vmem [shape: f32[4,128], index: 15, kind: output, shape index: {}]  }
   0x1   :  { %21 = vsyncpa [#allocation5], 0  ;;  %s51_s20 = sshll.u32 %s7046_s7, 4  ;;  %s5898_s21 = smov [#allocation4]   ;;  %s52_s20 = int_to_ptr.hbm [resolvable:$true] %s51_s20 }
   0x2   :  { %s53_s22 = sshll.u32 %s5898_s21, 4  ;;  %s36_s25 = sshll.u32 %s7044_s5, 4  ;;  %s54_s22 = int_to_ptr.vmem [resolvable:$true] %s53_s22  ;;  %s37_s25 = int_to_ptr.hbm [resolvable:$true] %s36_s25 }
   0x3   :  { %s5899_s26 = smov 192   ;;  %s5900_s27 = smov 12  }
   0x4   :  { %59 = dma.hbm_to_vmem [thread:$0]  %s52_s20, 9216, %s54_s22, [#allocation5], %s5899_s26, %s5899_s26, %s5900_s27  }
   0x5   :  { %s5901_s28 = smov [#allocation2]   ;;  %s66_s17 = sshll.u32 %s7048_s9, 4  ;;  %s67_s17 = int_to_ptr.hbm [resolvable:$true] %s66_s17 }
   0x6   :  { %s38_s29 = sshll.u32 %s5901_s28, 4  ;;  %s5902_s7 = smov [#allocation6]   ;;  %s39_s29 = int_to_ptr.vmem [resolvable:$true] %s38_s29 }
   0x7   :  { %44 = dma.hbm_to_vmem [thread:$0]  %s37_s25, 9216, %s39_s29, [#allocation3], %s5899_s26, %s5899_s26, %s5900_s27  }
   0x8   :  { %s68_s18 = sshll.u32 %s5902_s7, 4  ;;  %s69_s18 = int_to_ptr.vmem [resolvable:$true] %s68_s18 }
   0x9   :  { %74 = dma.hbm_to_vmem [thread:$0]  %s67_s17, 9216, %s69_s18, [#allocation5], %s5899_s26, %s5899_s26, %s5900_s27  }
   0xa   :  { %5894 = dma.done.wait [#allocation3], 9216  }
   0xb   :  { %5895 = vsyncadd [#allocation3], 4294958080 }
   0xc   :  { %5896 = dma.done.wait [#allocation5], 18432  }
   0xd   :  { %5897 = vsyncadd [#allocation5], 4294948864  ;;  %v5433_v0 = vld [vmem:[%s7040_s1 + $0x38] sm:$0xff]  ;;  %v5432_v1 = vld [vmem:[%s7040_s1 + $0x30] sm:$0xff]  ;;  %vm180_vm0 = vcmask 1041408   ;;  %v5903_v15 = vmov 128.0  }
   0xe   :  { %167 = vmatpush.bf16.msra.mxu0 %v5433_v0  ;;  %v5431_v2 = vld [vmem:[%s7040_s1 + $0x28] sm:$0xff]  ;;  %v5430_v3 = vld [vmem:[%s7040_s1 + $0x20] sm:$0xff]  ;;  %v5429_v4 = vld [vmem:[%s7040_s1 + $0x18] sm:$0xff]  ;;  %5734 = vrcp.f32 %v5903_v15  ;;  %vm444_vm12 = vcmask 1040384   ;;  %vm470_vm13 = vcmask 1043456   ;;  %vm1095_vm14 = vcmask 1043458  }
   0xf   :  { %v5428_v5 = vld [vmem:[%s7040_s1 + $0x10] sm:$0xff]  ;;  %v5427_v6 = vld [vmem:[%s7040_s1 + $0x8] sm:$0xff]  ;;  %v5426_v7 = vld [vmem:[%s7040_s1] sm:$0xff]  ;;  %s5906_s20 = smov 96   ;;  %s5907_s21 = smov 32  }
  0x10   :  { %v97_v8 = vld [vmem:[%s7039_s0] sm:$0x3]  ;;  %v4376_v27 = vld [vmem:[%s7042_s3 + $0x70] sm:$0xf]  ;;  %v5449_v28 = vld [vmem:[%s7042_s3 + $0x74] sm:$0xf0] }
  0x11   :  { %v98_v9 = vpack.c.bf16 %v97_v8, %v97_v8  ;;  %v5731_v10 = vld [vmem:[%s7041_s2] ss:$0 sm:$0xff]  ;;  %v5448_v29 = vld [vmem:[%s7042_s3 + $0x74] sm:$0xf]  ;;  %v4377_v30 = vor.u32 %v5449_v28, %v4376_v27  ;;  %v4378_v31 = vld [vmem:[%s7042_s3 + $0x78] sm:$0xf0] }
  0x12   :  { %168 = vmatpush.bf16.msra.mxu0 %v5432_v1  ;;  %v4381_v32 = vor.u32 %v5448_v29, %v4378_v31  ;;  %v4368_v33 = vld [vmem:[%s7042_s3 + $0x60] sm:$0xf]  ;;  %v5447_v34 = vld [vmem:[%s7042_s3 + $0x64] sm:$0xf0]  ;;  %v5446_v35 = vld [vmem:[%s7042_s3 + $0x64] sm:$0xf] }
  0x13   :  { %333 = vmatpush.bf16.msra.mxu1 %v4377_v30  ;;  %v4369_v36 = vor.u32 %v5447_v34, %v4368_v33  ;;  %v4370_v37 = vld [vmem:[%s7042_s3 + $0x68] sm:$0xf0]  ;;  %v4360_v39 = vld [vmem:[%s7042_s3 + $0x50] sm:$0xf]  ;;  %v5445_v40 = vld [vmem:[%s7042_s3 + $0x54] sm:$0xf0] }
  0x14   :  { %v5735_v16 = vpop.eup %5734  ;;  %346 = vmatpush.bf16.msra.mxu2 %v4381_v32  ;;  %v4373_v38 = vor.u32 %v5446_v35, %v4370_v37  ;;  %v5444_v41 = vld [vmem:[%s7042_s3 + $0x54] sm:$0xf]  ;;  %v4361_v42 = vor.u32 %v5445_v40, %v4360_v39  ;;  %v4362_v43 = vld [vmem:[%s7042_s3 + $0x58] sm:$0xf0]  ;;  %v4352_v45 = vld [vmem:[%s7042_s3 + $0x40] sm:$0xf] }
  0x15   :  { %v185_v17 = vmul.f32 128.0, %v5735_v16  ;;  %vm189_vm1 = vweird.f32 %v5735_v16  ;;  %v4365_v44 = vor.u32 %v5444_v41, %v4362_v43  ;;  %v5443_v46 = vld [vmem:[%s7042_s3 + $0x44] sm:$0xf0]  ;;  %v5442_v47 = vld [vmem:[%s7042_s3 + $0x44] sm:$0xf]  ;;  %s5909_s23 = smov 16  }
  0x16   :  { %169 = vmatpush.bf16.msra.mxu0 %v5431_v2  ;;  %v4353_v48 = vor.u32 %v5443_v46, %v4352_v45  ;;  %v4354_v49 = vld [vmem:[%s7042_s3 + $0x48] sm:$0xf0]  ;;  %v4344_v51 = vld [vmem:[%s7042_s3 + $0x30] sm:$0xf]  ;;  %v5441_v52 = vld [vmem:[%s7042_s3 + $0x34] sm:$0xf0] }
  0x17   :  { %v186_v18 = vsub.f32 1.0, %v185_v17  ;;  %334 = vmatpush.bf16.msra.mxu1 %v4369_v36  ;;  %v4357_v50 = vor.u32 %v5442_v47, %v4354_v49  ;;  %v5440_v53 = vld [vmem:[%s7042_s3 + $0x34] sm:$0xf]  ;;  %v4346_v54 = vld [vmem:[%s7042_s3 + $0x38] sm:$0xf0]  ;;  %v4345_v56 = vor.u32 %v5441_v52, %v4344_v51  ;;  %s5911_s26 = smov 8  }
  0x18   :  { %347 = vmatpush.bf16.msra.mxu2 %v4373_v38  ;;  %v4349_v58 = vor.u32 %v5440_v53, %v4346_v54  ;;  %v4336_v59 = vld [vmem:[%s7042_s3 + $0x20] sm:$0xf]  ;;  %v5439_v60 = vld [vmem:[%s7042_s3 + $0x24] sm:$0xf0]  ;;  %v5438_v61 = vld [vmem:[%s7042_s3 + $0x24] sm:$0xf] }
  0x19   :  { %v187_v19 = vmul.f32 %v5735_v16, %v186_v18  ;;  %v4338_v62 = vld [vmem:[%s7042_s3 + $0x28] sm:$0xf0]  ;;  %v4337_v0 = vor.u32 %v5439_v60, %v4336_v59  ;;  %v4328_v2 = vld [vmem:[%s7042_s3 + $0x10] sm:$0xf]  ;;  %v4320_v8 = vld [vmem:[%s7042_s3] sm:$0xf] }
  0x1a   :  { %170 = vmatpush.bf16.msra.mxu0 %v5430_v3  ;;  %v4341_v1 = vor.u32 %v5438_v61, %v4338_v62  ;;  %v5437_v3 = vld [vmem:[%s7042_s3 + $0x14] sm:$0xf0]  ;;  %v5904_v54 = vmov 256.0  }
  0x1b   :  { %v188_v20 = vadd.f32 %v5735_v16, %v187_v19  ;;  %335 = vmatpush.bf16.msra.mxu1 %v4361_v42  ;;  %v247_v42 = vld [vmem:[%s7043_s4] sm:$0x3] }
  0x1c   :  { %348 = vmatpush.bf16.msra.mxu2 %v4365_v44  ;;  %v249_v44 = vperm.slane %v247_v42, 0  ;;  %v250_v45 = vperm.slane %v247_v42, 1  ;;  %v5457_v42 = vld [vmem:[#allocation2 + $0x38] sm:$0xf0] }
  0x1d   :  { %v190_v21 = vsel %vm189_vm1, %v5735_v16, %v188_v20 }
  0x1e   :  { %171 = vmatpush.bf16.msra.mxu0 %v5429_v4  ;;  %v5436_v4 = vld [vmem:[%s7042_s3 + $0x14] sm:$0xf] }
  0x1f   :  { %336 = vmatpush.bf16.msra.mxu1 %v4353_v48 }
  0x20   :  { %349 = vmatpush.bf16.msra.mxu2 %v4357_v50 }
  0x22   :  { %172 = vmatpush.bf16.msra.mxu0 %v5428_v5  ;;  %v4330_v5 = vld [vmem:[%s7042_s3 + $0x18] sm:$0xf0] }
  0x23   :  { %337 = vmatpush.bf16.msra.mxu1 %v4345_v56 }
  0x24   :  { %350 = vmatpush.bf16.msra.mxu2 %v4349_v58 }
  0x26   :  { %173 = vmatpush.bf16.msra.mxu0 %v5427_v6  ;;  %v4329_v6 = vor.u32 %v5437_v3, %v4328_v2 }
  0x27   :  { %338 = vmatpush.bf16.msra.mxu1 %v4337_v0 }
  0x28   :  { %351 = vmatpush.bf16.msra.mxu2 %v4341_v1 }
  0x2a   :  { %174 = vmatpush.bf16.msra.mxu0 %v5426_v7  ;;  %v4333_v7 = vor.u32 %v5436_v4, %v4330_v5 }
  0x2b   :  { %339 = vmatpush.bf16.msra.mxu1 %v4329_v6  ;;  %v4470_v6 = vld [vmem:[#allocation2 + $0xa8] sm:$0xf] }
  0x2c   :  { %352 = vmatpush.bf16.msra.mxu2 %v4333_v7  ;;  %v5472_v7 = vld [vmem:[#allocation2 + $0xb0] sm:$0xf0] }
  0x2d   :  { %175 = vmatmul.bf16.vlgmr.msra.gmra.mxu0 %v98_v9  ;;  %v5435_v9 = vld [vmem:[%s7042_s3 + $0x4] sm:$0xf0] }
  0x2e   :  { %v4321_v15 = vor.u32 %v5435_v9, %v4320_v8  ;;  %v4471_v8 = vor.u32 %v5472_v7, %v4470_v6  ;;  %v4458_v9 = vld [vmem:[#allocation2 + $0x90] sm:$0xf]  ;;  %v4386_v6 = vld [vmem:[#allocation2] sm:$0xf]  ;;  %v5451_v7 = vld [vmem:[#allocation2 + $0x8] sm:$0xf0] }
  0x30   :  { %340 = vmatpush.bf16.msra.mxu1 %v4321_v15  ;;  %974 = vmatpush.bf16.msra.mxu3 %v4471_v8 }
  0xaa   :  { %v176_v11 = vpop.f32.mrf.mxu0 }
  0xab   :  { %v6034_v12 = vadd.f32 %v5731_v10, %v176_v11  ;;  %v5434_v10 = vld [vmem:[%s7042_s3 + $0x4] sm:$0xf]  ;;  %v4322_v11 = vld [vmem:[%s7042_s3 + $0x8] sm:$0xf0] }
  0xac   :  { %v4325_v16 = vor.u32 %v5434_v10, %v4322_v11  ;;  %v5469_v10 = vld [vmem:[#allocation2 + $0x98] sm:$0xf0] }
  0xad   :  { %v181_v13 = vsel %vm180_vm0, %v6034_v12, 0.0  ;;  %v4459_v11 = vor.u32 %v5469_v10, %v4458_v9  ;;  %v4387_v9 = vor.u32 %v5451_v7, %v4386_v6  ;;  %v4518_v10 = vld [vmem:[#allocation2 + $0x108] sm:$0xf]  ;;  %v4532_v6 = vld [vmem:[#allocation2 + $0x12c] sm:$0xf0] }
  0xae   :  { %182 = vadd.xlane.f32.xlu0 %v181_v13  ;;  %353 = vmatpush.bf16.msra.mxu2 %v4325_v16  ;;  %v4434_v16 = vld [vmem:[#allocation2 + $0x60] sm:$0xf]  ;;  %v5519_v7 = vld [vmem:[#allocation2 + $0x22c] sm:$0xf] }
  0xaf   :  { %975 = vmatpush.bf16.msra.mxu3 %v4459_v11  ;;  %v5484_v11 = vld [vmem:[#allocation2 + $0x110] sm:$0xf0] }
  0xb2   :  { %v178_v14 = vpop.f32.mrf.mxu0 }
 0x121   :  { %v183_v22 = vpop.xlane.xlu0 %182 }
 0x122   :  { %v191_v23 = vmul.f32 %v190_v21, %v183_v22 }
 0x124   :  { %v6039_v24 = vsub.f32 %v6034_v12, %v191_v23  ;;  %v210_v23 = vmul.f32 0.5, %v6034_v12 }
 0x126   :  { %v193_v25 = vmul.f32 %v6039_v24, %v6039_v24 }
 0x128   :  { %v194_v26 = vsel %vm180_vm0, %v193_v25, 0.0 }
 0x129   :  { %195 = vadd.xlane.f32.xlu0 %v194_v26 }
 0x19c   :  { %v196_v55 = vpop.xlane.xlu0 %195 }
 0x19d   :  { %v197_v57 = vmul.f32 %v196_v55, %v190_v21 }
 0x19f   :  { %v198_v63 = vadd.f32 1e-05, %v197_v57 }
 0x1a1   :  { %5736 = vrsqrt.f32 %v198_v63  ;;  %vm205_vm3 = vweird.f32 %v198_v63 }
 0x1a7   :  { %v5737_v13 = vpop.eup %5736 }
 0x1a8   :  { %v200_v14 = vmul.f32 %v5737_v13, %v198_v63  ;;  %vm206_vm2 = vweird.f32 %v5737_v13 }
 0x1a9   :  { %vm207_vm4 = vmor %vm205_vm3, %vm206_vm2 }
 0x1aa   :  { %v201_v17 = vmul.f32 %v5737_v13, %v200_v14  ;;  %v5466_v14 = vld [vmem:[#allocation2 + $0x80] sm:$0xf0] }
 0x1ac   :  { %v202_v18 = vmul.f32 0.5, %v201_v17  ;;  %v5463_v17 = vld [vmem:[#allocation2 + $0x68] sm:$0xf0] }
 0x1ae   :  { %v203_v19 = vsub.f32 1.5, %v202_v18  ;;  %v4435_v18 = vor.u32 %v5463_v17, %v4434_v16  ;;  %v5508_v16 = vld [vmem:[#allocation2 + $0x1d0] sm:$0xf0]  ;;  %v5459_v17 = vld [vmem:[#allocation2 + $0x4c] sm:$0xf] }
 0x1b0   :  { %v204_v20 = vmul.f32 %v5737_v13, %v203_v19  ;;  %v4566_v19 = vld [vmem:[#allocation2 + $0x168] sm:$0xf] }
 0x1b2   :  { %v208_v21 = vsel %vm207_vm4, %v5737_v13, %v204_v20  ;;  %v4446_v13 = vld [vmem:[#allocation2 + $0x78] sm:$0xf]  ;;  %v5496_v20 = vld [vmem:[#allocation2 + $0x170] sm:$0xf0] }
 0x1b3   :  { %v209_v22 = vmul.f32 %v208_v21, %v6039_v24  ;;  %v4447_v15 = vor.u32 %v5466_v14, %v4446_v13  ;;  %v4662_v21 = vld [vmem:[#allocation2 + $0x228] sm:$0xf] }
 0x1b4   :  { %v4614_v13 = vld [vmem:[#allocation2 + $0x1c8] sm:$0xf] }
 0x1b5   :  { %v211_v25 = vmul.f32 0.5, %v209_v22  ;;  %976 = vmatpush.bf16.msra.mxu3 %v4447_v15  ;;  %v4567_v22 = vor.u32 %v5496_v20, %v4566_v19  ;;  %v4519_v15 = vor.u32 %v5484_v11, %v4518_v10  ;;  %v4615_v19 = vor.u32 %v5508_v16, %v4614_v13  ;;  %v5473_v13 = vld [vmem:[#allocation2 + $0xb8] sm:$0xf0] }
 0x1b7   :  { %v212_v26 = vadd.f32 %v211_v25, %v210_v23  ;;  %v5520_v23 = vld [vmem:[#allocation2 + $0x230] sm:$0xf0]  ;;  %v5471_v25 = vld [vmem:[#allocation2 + $0xac] sm:$0xf]  ;;  %987 = vmatpush.bf16.msrb.mxu0 %v4567_v22  ;;  %v4568_v22 = vld [vmem:[#allocation2 + $0x174] sm:$0xf0] }
 0x1b9   :  { %v217_v27 = vmin.f32 %v212_v26, 0.0  ;;  %v215_v29 = vmul.f32 0.2, %v212_v26  ;;  %vm214_vm5 = vcmp.gt.f32.partialorder %v212_v26, 0.0  ;;  %v213_v30 = vmax.f32 %v212_v26, 0.0  ;;  %977 = vmatpush.bf16.msra.mxu3 %v4435_v18 }
 0x1ba   :  { %v4424_v18 = vld [vmem:[#allocation2 + $0x54] sm:$0xf0] }
 0x1bb   :  { %v218_v28 = vmul.f32 1.442695, %v217_v27  ;;  %v216_v31 = vsel %vm214_vm5, %v212_v26, %v215_v29  ;;  %v223_v33 = vmul.f32 0.25, %v213_v30  ;;  %v4663_v27 = vor.u32 %v5520_v23, %v4662_v21  ;;  %v4422_v29 = vld [vmem:[#allocation2 + $0x48] sm:$0xf] }
 0x1bc   :  { %v224_v34 = vmul.f32 0.25, %v216_v31  ;;  %v5460_v30 = vld [vmem:[#allocation2 + $0x50] sm:$0xf0]  ;;  %v4427_v20 = vor.u32 %v5459_v17, %v4424_v18  ;;  %v5495_v21 = vld [vmem:[#allocation2 + $0x16c] sm:$0xf] }
 0x1bd   :  { %5738 = vpow2.f32 %v218_v28  ;;  %1000 = vmatpush.bf16.msrb.mxu1 %v4663_v27  ;;  %v4423_v31 = vor.u32 %v5460_v30, %v4422_v29  ;;  %v5481_v27 = vld [vmem:[#allocation2 + $0xf8] sm:$0xf0]  ;;  %v5483_v18 = vld [vmem:[#allocation2 + $0x10c] sm:$0xf] }
 0x1be   :  { %5740 = vtanh.f32 %v212_v26  ;;  %v225_v38 = vadd.f32 %v224_v34, %v223_v33  ;;  %v5493_v33 = vld [vmem:[#allocation2 + $0x158] sm:$0xf0]  ;;  %v4650_v34 = vld [vmem:[#allocation2 + $0x210] sm:$0xf] }
 0x1bf   :  { %5742 = vrcp.f32 %v5904_v54  ;;  %978 = vmatpush.bf16.msra.mxu3 %v4423_v31  ;;  %v4448_v54 = vld [vmem:[#allocation2 + $0x84] sm:$0xf0]  ;;  %v5505_v31 = vld [vmem:[#allocation2 + $0x1b8] sm:$0xf0] }
 0x1c3   :  { %v5739_v32 = vpop.eup %5738 }
 0x1c4   :  { %v4317_v35 = vadd.f32 -1.0, %v5739_v32  ;;  %v5741_v36 = vpop.eup %5740  ;;  %v4554_v32 = vld [vmem:[#allocation2 + $0x150] sm:$0xf] }
 0x1c5   :  { %v228_v12 = vmul.f32 0.25, %v5741_v36  ;;  %v5743_v55 = vpop.eup %5742  ;;  %v4555_v36 = vor.u32 %v5493_v33, %v4554_v32  ;;  %v5456_v32 = vld [vmem:[#allocation2 + $0x34] sm:$0xf] }
 0x1c6   :  { %v221_v37 = vsel %vm214_vm5, %v212_v26, %v4317_v35  ;;  %v365_v56 = vmul.f32 256.0, %v5743_v55  ;;  %vm369_vm6 = vweird.f32 %v5743_v55  ;;  %v4472_v26 = vld [vmem:[#allocation2 + $0xb4] sm:$0xf0] }
 0x1c7   :  { %v226_v24 = vmul.f32 0.25, %v221_v37  ;;  %v4475_v28 = vor.u32 %v5471_v25, %v4472_v26  ;;  %v5517_v37 = vld [vmem:[#allocation2 + $0x218] sm:$0xf0]  ;;  %988 = vmatpush.bf16.msrb.mxu0 %v4555_v36  ;;  %v4571_v25 = vor.u32 %v5495_v21, %v4568_v22  ;;  %v4506_v26 = vld [vmem:[#allocation2 + $0xf0] sm:$0xf] }
 0x1c8   :  { %v366_v57 = vsub.f32 1.0, %v365_v56  ;;  %v4398_v56 = vld [vmem:[#allocation2 + $0x18] sm:$0xf]  ;;  %v4507_v30 = vor.u32 %v5481_v27, %v4506_v26  ;;  %v4556_v36 = vld [vmem:[#allocation2 + $0x15c] sm:$0xf0] }
 0x1c9   :  { %v227_v39 = vadd.f32 %v226_v24, %v225_v38  ;;  %1013 = vmatpush.bf16.msrb.mxu2 %v4475_v28  ;;  %v5468_v38 = vld [vmem:[#allocation2 + $0x94] sm:$0xf]  ;;  %v4460_v24 = vld [vmem:[#allocation2 + $0x9c] sm:$0xf0]  ;;  %v4602_v28 = vld [vmem:[#allocation2 + $0x1b0] sm:$0xf] }
 0x1ca   :  { %v367_v58 = vmul.f32 %v5743_v55, %v366_v57  ;;  %v5454_v57 = vld [vmem:[#allocation2 + $0x20] sm:$0xf0]  ;;  %v4603_v33 = vor.u32 %v5505_v31, %v4602_v28  ;;  %v5516_v22 = vld [vmem:[#allocation2 + $0x214] sm:$0xf]  ;;  %v4652_v26 = vld [vmem:[#allocation2 + $0x21c] sm:$0xf0] }
 0x1cb   :  { %v229_v40 = vadd.f32 %v228_v12, %v227_v39  ;;  %v4651_v12 = vor.u32 %v5517_v37, %v4650_v34  ;;  %v4412_v34 = vld [vmem:[#allocation2 + $0x3c] sm:$0xf0] }
 0x1cc   :  { %v368_v59 = vadd.f32 %v5743_v55, %v367_v58  ;;  %v4399_v58 = vor.u32 %v5454_v57, %v4398_v56 }
 0x1cd   :  { %v230_v41 = vpack.c.bf16 %v229_v40, %v229_v40  ;;  %v4463_v40 = vor.u32 %v5468_v38, %v4460_v24  ;;  %1001 = vmatpush.bf16.msrb.mxu1 %v4651_v12  ;;  %v4415_v38 = vor.u32 %v5456_v32, %v4412_v34  ;;  %v5478_v12 = vld [vmem:[#allocation2 + $0xe0] sm:$0xf0] }
 0x1ce   :  { %v370_v60 = vsel %vm369_vm6, %v5743_v55, %v368_v59  ;;  %v4530_v59 = vld [vmem:[#allocation2 + $0x120] sm:$0xf]  ;;  %vm1266_vm6 = vcmask 261120  }
 0x1cf   :  { %341 = vmatmul.bf16.vlgmr.msra.gmra.mxu1 %v230_v41  ;;  %354 = vmatmul.bf16.vlgmr.msra.gmra.mxu2 %v230_v41  ;;  %v4410_v41 = vld [vmem:[#allocation2 + $0x30] sm:$0xf] }
 0x1d0   :  { %1014 = vmatpush.bf16.msrb.mxu2 %v4463_v40  ;;  %v4590_v40 = vld [vmem:[#allocation2 + $0x198] sm:$0xf] }
 0x24c   :  { %v342_v43 = vpop.f32.mrf.mxu1 }
 0x24d   :  { %v6145_v46 = vadd.f32 %v342_v43, %v249_v44  ;;  %v4411_v44 = vor.u32 %v5457_v42, %v4410_v41 }
 0x24f   :  { %v359_v50 = vsel %vm180_vm0, %v6145_v46, 0.0  ;;  %979 = vmatpush.bf16.msra.mxu3 %v4411_v44  ;;  %v5502_v44 = vld [vmem:[#allocation2 + $0x1a0] sm:$0xf0] }
 0x252   :  { %v355_v47 = vpop.f32.mrf.mxu2 }
 0x253   :  { %v6147_v48 = vadd.f32 %v355_v47, %v250_v45  ;;  %v4542_v45 = vld [vmem:[#allocation2 + $0x138] sm:$0xf]  ;;  %v5490_v47 = vld [vmem:[#allocation2 + $0x140] sm:$0xf0]  ;;  %980 = vmatpush.bf16.msra.mxu3 %v4399_v58  ;;  %v4482_v58 = vld [vmem:[#allocation2 + $0xc0] sm:$0xf] }
 0x254   :  { %v344_v49 = vpop.f32.mrf.mxu1 }
 0x255   :  { %v360_v51 = vsel %vm180_vm0, %v6147_v48, 0.0  ;;  %v4543_v49 = vor.u32 %v5490_v47, %v4542_v45  ;;  %v5453_v45 = vld [vmem:[#allocation2 + $0x1c] sm:$0xf]  ;;  %v4400_v47 = vld [vmem:[#allocation2 + $0x24] sm:$0xf0] }
 0x256   :  { %v361_v52 = vadd.f32 %v360_v51, %v359_v50  ;;  %v4638_v50 = vld [vmem:[#allocation2 + $0x1f8] sm:$0xf]  ;;  %v5514_v51 = vld [vmem:[#allocation2 + $0x200] sm:$0xf0] }
 0x257   :  { %989 = vmatpush.bf16.msrb.mxu0 %v4543_v49  ;;  %981 = vmatpush.bf16.msra.mxu3 %v4387_v9  ;;  %v4591_v49 = vor.u32 %v5502_v44, %v4590_v40  ;;  %v4640_v40 = vld [vmem:[#allocation2 + $0x204] sm:$0xf0]  ;;  %v4454_v44 = vld [vmem:[#allocation2 + $0x80] sm:$0xf] }
 0x258   :  { %362 = vadd.xlane.f32.xlu1 %v361_v52  ;;  %v5465_v52 = vld [vmem:[#allocation2 + $0x7c] sm:$0xf] }
 0x259   :  { %v4451_v55 = vor.u32 %v5465_v52, %v4448_v54  ;;  %v4544_v52 = vld [vmem:[#allocation2 + $0x144] sm:$0xf0]  ;;  %v396_v54 = vmul.f32 0.5, %v6147_v48 }
 0x25a   :  { %v357_v53 = vpop.f32.mrf.mxu2 }
 0x25b   :  { %v4639_v53 = vor.u32 %v5514_v51, %v4638_v50  ;;  %1015 = vmatpush.bf16.msrb.mxu2 %v4451_v55  ;;  %1026 = vmatpush.bf16.msrb.mxu3 %v4571_v25  ;;  %v4403_v50 = vor.u32 %v5453_v45, %v4400_v47  ;;  %v5489_v51 = vld [vmem:[#allocation2 + $0x13c] sm:$0xf]  ;;  %v5467_v45 = vld [vmem:[#allocation2 + $0x88] sm:$0xf0]  ;;  %v4550_v47 = vld [vmem:[#allocation2 + $0x140] sm:$0xf] }
 0x25c   :  { %v4547_v56 = vor.u32 %v5489_v51, %v4544_v52  ;;  %v5491_v51 = vld [vmem:[#allocation2 + $0x148] sm:$0xf0]  ;;  %v5477_v52 = vld [vmem:[#allocation2 + $0xdc] sm:$0xf] }
 0x25d   :  { %1002 = vmatpush.bf16.msrb.mxu1 %v4639_v53  ;;  %v395_v53 = vmul.f32 0.5, %v6145_v46 }
 0x2cb   :  { %v363_v61 = vpop.xlane.xlu1 %362 }
 0x2cc   :  { %v371_v62 = vmul.f32 %v370_v60, %v363_v61  ;;  %v4626_v61 = vld [vmem:[#allocation2 + $0x1e0] sm:$0xf] }
 0x2ce   :  { %v6154_v63 = vsub.f32 %v6145_v46, %v371_v62  ;;  %v6157_v0 = vsub.f32 %v6147_v48, %v371_v62 }
 0x2d0   :  { %v374_v1 = vmul.f32 %v6154_v63, %v6154_v63  ;;  %v375_v2 = vmul.f32 %v6157_v0, %v6157_v0 }
 0x2d2   :  { %v376_v3 = vsel %vm180_vm0, %v374_v1, 0.0  ;;  %v377_v4 = vsel %vm180_vm0, %v375_v2, 0.0  ;;  %v5511_v1 = vld [vmem:[#allocation2 + $0x1e8] sm:$0xf0]  ;;  %v5462_v2 = vld [vmem:[#allocation2 + $0x64] sm:$0xf] }
 0x2d3   :  { %v378_v5 = vadd.f32 %v377_v4, %v376_v3  ;;  %v4436_v3 = vld [vmem:[#allocation2 + $0x6c] sm:$0xf0]  ;;  %v4627_v4 = vor.u32 %v5511_v1, %v4626_v61  ;;  %v5450_v1 = vld [vmem:[#allocation2 + $0x4] sm:$0xf] }
 0x2d5   :  { %379 = vadd.xlane.f32.xlu1 %v378_v5  ;;  %v4439_v5 = vor.u32 %v5462_v2, %v4436_v3  ;;  %1003 = vmatpush.bf16.msrb.mxu1 %v4627_v4  ;;  %v4388_v2 = vld [vmem:[#allocation2 + $0xc] sm:$0xf0] }
 0x2d6   :  { %v4391_v4 = vor.u32 %v5450_v1, %v4388_v2  ;;  %v5488_v2 = vld [vmem:[#allocation2 + $0x130] sm:$0xf0] }
 0x2d7   :  { %1016 = vmatpush.bf16.msrb.mxu2 %v4439_v5  ;;  %v5486_v5 = vld [vmem:[#allocation2 + $0x124] sm:$0xf] }
 0x2d9   :  { %1004 = vmatpush.bf16.msrb.mxu1 %v4615_v19  ;;  %v4520_v19 = vld [vmem:[#allocation2 + $0x114] sm:$0xf0] }
 0x2da   :  { %v4523_v28 = vor.u32 %v5483_v18, %v4520_v19  ;;  %v5485_v18 = vld [vmem:[#allocation2 + $0x118] sm:$0xf0] }
 0x2db   :  { %1017 = vmatpush.bf16.msrb.mxu2 %v4427_v20 }
 0x2dd   :  { %1005 = vmatpush.bf16.msrb.mxu1 %v4603_v33  ;;  %v4562_v33 = vld [vmem:[#allocation2 + $0x158] sm:$0xf] }
 0x2df   :  { %1018 = vmatpush.bf16.msrb.mxu2 %v4415_v38 }
 0x2e1   :  { %1006 = vmatpush.bf16.msrb.mxu1 %v4591_v49 }
 0x2e3   :  { %1019 = vmatpush.bf16.msrb.mxu2 %v4403_v50  ;;  %v4455_v50 = vor.u32 %v5467_v45, %v4454_v44 }
 0x2e7   :  { %1020 = vmatpush.bf16.msrb.mxu2 %v4391_v4 }
 0x348   :  { %v380_v35 = vpop.xlane.xlu1 %379 }
 0x349   :  { %v381_v39 = vmul.f32 %v380_v35, %v370_v60  ;;  %v5487_v60 = vld [vmem:[#allocation2 + $0x128] sm:$0xf0]  ;;  %v5492_v35 = vld [vmem:[#allocation2 + $0x154] sm:$0xf] }
 0x34a   :  { %v4531_v62 = vor.u32 %v5487_v60, %v4530_v59  ;;  %v4559_v24 = vor.u32 %v5492_v35, %v4556_v36  ;;  %v5475_v59 = vld [vmem:[#allocation2 + $0xc8] sm:$0xf0]  ;;  %v4578_v60 = vld [vmem:[#allocation2 + $0x180] sm:$0xf]  ;;  %v4655_v35 = vor.u32 %v5516_v22, %v4652_v26  ;;  %v5494_v36 = vld [vmem:[#allocation2 + $0x160] sm:$0xf0] }
 0x34b   :  { %v6165_v43 = vadd.f32 1e-05, %v381_v39  ;;  %v4494_v39 = vld [vmem:[#allocation2 + $0xd8] sm:$0xf]  ;;  %v4483_v61 = vor.u32 %v5475_v59, %v4482_v58 }
 0x34c   :  { %990 = vmatpush.bf16.msrb.mxu0 %v4531_v62  ;;  %1027 = vmatpush.bf16.msrb.mxu3 %v4559_v24  ;;  %v4495_v42 = vor.u32 %v5478_v12, %v4494_v39  ;;  %v5499_v62 = vld [vmem:[#allocation2 + $0x188] sm:$0xf0]  ;;  %v4563_v24 = vor.u32 %v5494_v36, %v4562_v33  ;;  %v4508_v39 = vld [vmem:[#allocation2 + $0xfc] sm:$0xf0]  ;;  %v5513_v12 = vld [vmem:[#allocation2 + $0x1fc] sm:$0xf] }
 0x34d   :  { %5744 = vrsqrt.f32 %v6165_v43  ;;  %vm389_vm8 = vweird.f32 %v6165_v43  ;;  %v4579_v48 = vor.u32 %v5499_v62, %v4578_v60  ;;  %v4643_v49 = vor.u32 %v5513_v12, %v4640_v40  ;;  %v4538_v62 = vld [vmem:[#allocation2 + $0x128] sm:$0xf]  ;;  %v5482_v36 = vld [vmem:[#allocation2 + $0x100] sm:$0xf0]  ;;  %v5501_v40 = vld [vmem:[#allocation2 + $0x19c] sm:$0xf] }
 0x34f   :  { %1007 = vmatpush.bf16.msrb.mxu1 %v4579_v48 }
 0x350   :  { %991 = vmatpush.bf16.msrb.mxu0 %v4519_v15  ;;  %1028 = vmatpush.bf16.msrb.mxu3 %v4547_v56  ;;  %v5497_v15 = vld [vmem:[#allocation2 + $0x178] sm:$0xf0]  ;;  %v5510_v56 = vld [vmem:[#allocation2 + $0x1e4] sm:$0xf] }
 0x353   :  { %v5745_v8 = vpop.eup %5744 }
 0x354   :  { %v384_v14 = vmul.f32 %v5745_v8, %v6165_v43  ;;  %vm390_vm7 = vweird.f32 %v5745_v8  ;;  %992 = vmatpush.bf16.msrb.mxu0 %v4507_v30  ;;  %v5470_v30 = vld [vmem:[#allocation2 + $0xa0] sm:$0xf0] }
 0x355   :  { %vm391_vm9 = vmor %vm389_vm8, %vm390_vm7  ;;  %vm1277_vm7 = vcmask 523264  }
 0x356   :  { %v385_v23 = vmul.f32 %v5745_v8, %v384_v14  ;;  %v4574_v14 = vld [vmem:[#allocation2 + $0x170] sm:$0xf] }
 0x357   :  { %v4575_v17 = vor.u32 %v5497_v15, %v4574_v14  ;;  %v4430_v14 = vld [vmem:[#allocation2 + $0x50] sm:$0xf]  ;;  %v5461_v15 = vld [vmem:[#allocation2 + $0x58] sm:$0xf0] }
 0x358   :  { %v386_v29 = vmul.f32 0.5, %v385_v23  ;;  %993 = vmatpush.bf16.msrb.mxu0 %v4495_v42 }
 0x359   :  { %1065 = vmatpush.bf16.msra.mxu2 %v4575_v17  ;;  %v4526_v17 = vld [vmem:[#allocation2 + $0x110] sm:$0xf] }
 0x35a   :  { %v387_v37 = vsub.f32 1.5, %v386_v29  ;;  %v4466_v29 = vld [vmem:[#allocation2 + $0x98] sm:$0xf] }
 0x35b   :  { %v4467_v38 = vor.u32 %v5470_v30, %v4466_v29  ;;  %v4527_v29 = vor.u32 %v5485_v18, %v4526_v17  ;;  %v4604_v30 = vld [vmem:[#allocation2 + $0x1bc] sm:$0xf0] }
 0x35c   :  { %v388_v41 = vmul.f32 %v5745_v8, %v387_v37  ;;  %994 = vmatpush.bf16.msrb.mxu0 %v4483_v61  ;;  %v5480_v37 = vld [vmem:[#allocation2 + $0xf4] sm:$0xf] }
 0x35d   :  { %v4511_v42 = vor.u32 %v5480_v37, %v4508_v39  ;;  %1066 = vmatpush.bf16.msra.mxu2 %v4563_v24  ;;  %v5464_v61 = vld [vmem:[#allocation2 + $0x70] sm:$0xf0] }
 0x35e   :  { %v392_v55 = vsel %vm391_vm9, %v5745_v8, %v388_v41  ;;  %v4478_v8 = vld [vmem:[#allocation2 + $0xb0] sm:$0xf]  ;;  %vm1383_vm9 = vcmask 1042434  }
 0x35f   :  { %v393_v43 = vmul.f32 %v392_v55, %v6154_v63  ;;  %v394_v57 = vmul.f32 %v392_v55, %v6157_v0  ;;  %v4535_v63 = vor.u32 %v5486_v5, %v4532_v6  ;;  %v4664_v0 = vld [vmem:[#allocation2 + $0x234] sm:$0xf0]  ;;  %v4479_v16 = vor.u32 %v5473_v13, %v4478_v8 }
 0x360   :  { %v4667_v11 = vor.u32 %v5519_v7, %v4664_v0  ;;  %v4539_v6 = vor.u32 %v5488_v2, %v4538_v62  ;;  %v4616_v7 = vld [vmem:[#allocation2 + $0x1d4] sm:$0xf0] }
 0x361   :  { %v397_v46 = vmul.f32 0.5, %v393_v43  ;;  %v398_v3 = vmul.f32 0.5, %v394_v57  ;;  %1029 = vmatpush.bf16.msrb.mxu3 %v4535_v63  ;;  %1052 = vmatpush.bf16.msra.mxu1 %v4479_v16  ;;  %v4628_v43 = vld [vmem:[#allocation2 + $0x1ec] sm:$0xf0]  ;;  %v4442_v57 = vld [vmem:[#allocation2 + $0x68] sm:$0xf] }
 0x362   :  { %1039 = vmatpush.bf16.msra.mxu0 %v4667_v11  ;;  %v4631_v1 = vor.u32 %v5510_v56, %v4628_v43  ;;  %v4443_v5 = vor.u32 %v5464_v61, %v4442_v57  ;;  %v5507_v63 = vld [vmem:[#allocation2 + $0x1cc] sm:$0xf]  ;;  %v4394_v56 = vld [vmem:[#allocation2 + $0x8] sm:$0xf] }
 0x363   :  { %v6175_v9 = vadd.f32 %v397_v46, %v395_v53  ;;  %v6177_v10 = vadd.f32 %v398_v3, %v396_v54  ;;  %v4496_v53 = vld [vmem:[#allocation2 + $0xe4] sm:$0xf0]  ;;  %v4551_v54 = vor.u32 %v5491_v51, %v4550_v47  ;;  %v5474_v46 = vld [vmem:[#allocation2 + $0xc4] sm:$0xf]  ;;  %v4484_v3 = vld [vmem:[#allocation2 + $0xcc] sm:$0xf0]  ;;  %v4619_v22 = vor.u32 %v5507_v63, %v4616_v7 }
 0x364   :  { %v4499_v55 = vor.u32 %v5477_v52, %v4496_v53  ;;  %v4487_v13 = vor.u32 %v5474_v46, %v4484_v3  ;;  %v5455_v47 = vld [vmem:[#allocation2 + $0x28] sm:$0xf0]  ;;  %v5498_v51 = vld [vmem:[#allocation2 + $0x184] sm:$0xf] }
 0x365   :  { %v401_v20 = vmax.f32 %v6175_v9, 0.0  ;;  %v402_v21 = vmax.f32 %v6177_v10, 0.0  ;;  %vm403_vm10 = vcmp.gt.f32.partialorder %v6175_v9, 0.0  ;;  %vm404_vm11 = vcmp.gt.f32.partialorder %v6177_v10, 0.0  ;;  %1030 = vmatpush.bf16.msrb.mxu3 %v4523_v28  ;;  %1053 = vmatpush.bf16.msra.mxu1 %v4467_v38 }
 0x366   :  { %v409_v23 = vmin.f32 %v6175_v9, 0.0  ;;  %v410_v25 = vmin.f32 %v6177_v10, 0.0  ;;  %v405_v27 = vmul.f32 0.2, %v6175_v9  ;;  %v406_v34 = vmul.f32 0.2, %v6177_v10  ;;  %1040 = vmatpush.bf16.msra.mxu0 %v4655_v35  ;;  %1067 = vmatpush.bf16.msra.mxu2 %v4551_v54 }
 0x367   :  { %v421_v59 = vmul.f32 0.25, %v401_v20  ;;  %v422_v4 = vmul.f32 0.25, %v402_v21  ;;  %v4431_v28 = vor.u32 %v5461_v15, %v4430_v14 }
 0x368   :  { %v411_v31 = vmul.f32 1.442695, %v409_v23  ;;  %v413_v32 = vmul.f32 1.442695, %v410_v25  ;;  %v407_v41 = vsel %vm403_vm10, %v6175_v9, %v405_v27  ;;  %v408_v58 = vsel %vm404_vm11, %v6177_v10, %v406_v34  ;;  %v5504_v23 = vld [vmem:[#allocation2 + $0x1b4] sm:$0xf] }
 0x369   :  { %1031 = vmatpush.bf16.msrb.mxu3 %v4511_v42  ;;  %v423_v60 = vmul.f32 0.25, %v407_v41  ;;  %1054 = vmatpush.bf16.msra.mxu1 %v4455_v50  ;;  %v424_v11 = vmul.f32 0.25, %v408_v58  ;;  %v4514_v34 = vld [vmem:[#allocation2 + $0xf8] sm:$0xf]  ;;  %v4607_v39 = vor.u32 %v5504_v23, %v4604_v30  ;;  %v4592_v41 = vld [vmem:[#allocation2 + $0x1a4] sm:$0xf0] }
 0x36a   :  { %5746 = vpow2.f32 %v411_v31  ;;  %1041 = vmatpush.bf16.msra.mxu0 %v4643_v49  ;;  %1068 = vmatpush.bf16.msra.mxu2 %v4539_v6  ;;  %v4418_v31 = vld [vmem:[#allocation2 + $0x38] sm:$0xf]  ;;  %v4515_v12 = vor.u32 %v5482_v36, %v4514_v34  ;;  %v4406_v42 = vld [vmem:[#allocation2 + $0x20] sm:$0xf]  ;;  %v5479_v50 = vld [vmem:[#allocation2 + $0xe8] sm:$0xf0]  ;;  %v4595_v54 = vor.u32 %v5501_v40, %v4592_v41 }
 0x36b   :  { %5748 = vpow2.f32 %v413_v32  ;;  %v425_v21 = vadd.f32 %v423_v60, %v421_v59  ;;  %v426_v32 = vadd.f32 %v424_v11, %v422_v4  ;;  %v4502_v49 = vld [vmem:[#allocation2 + $0xe0] sm:$0xf]  ;;  %v4407_v43 = vor.u32 %v5455_v47, %v4406_v42  ;;  %v5452_v58 = vld [vmem:[#allocation2 + $0x10] sm:$0xf0]  ;;  %v4490_v59 = vld [vmem:[#allocation2 + $0xc8] sm:$0xf] }
 0x36c   :  { %5750 = vtanh.f32 %v6175_v9  ;;  %v4503_v57 = vor.u32 %v5479_v50, %v4502_v49  ;;  %v5476_v60 = vld [vmem:[#allocation2 + $0xd0] sm:$0xf0]  ;;  %v5515_v34 = vld [vmem:[#allocation2 + $0x208] sm:$0xf0]  ;;  %v4634_v36 = vld [vmem:[#allocation2 + $0x1e8] sm:$0xf] }
 0x36d   :  { %5752 = vtanh.f32 %v6177_v10  ;;  %1032 = vmatpush.bf16.msrb.mxu3 %v4499_v55  ;;  %1055 = vmatpush.bf16.msra.mxu1 %v4443_v5  ;;  %v4580_v55 = vld [vmem:[#allocation2 + $0x18c] sm:$0xf0]  ;;  %v4395_v5 = vor.u32 %v5452_v58, %v4394_v56  ;;  %v4491_v6 = vor.u32 %v5476_v60, %v4490_v59  ;;  %v5506_v40 = vld [vmem:[#allocation2 + $0x1c0] sm:$0xf0]  ;;  %v4598_v42 = vld [vmem:[#allocation2 + $0x1a0] sm:$0xf] }
 0x36e   :  { %1042 = vmatpush.bf16.msra.mxu0 %v4631_v1  ;;  %1069 = vmatpush.bf16.msra.mxu2 %v4527_v29  ;;  %v4583_v4 = vor.u32 %v5498_v51, %v4580_v55  ;;  %v4586_v47 = vld [vmem:[#allocation2 + $0x188] sm:$0xf]  ;;  %v5500_v49 = vld [vmem:[#allocation2 + $0x190] sm:$0xf0] }
 0x36f   :  { %v4587_v50 = vor.u32 %v5500_v49, %v4586_v47 }
 0x370   :  { %v5747_v48 = vpop.eup %5746 }
 0x371   :  { %v5749_v0 = vpop.eup %5748  ;;  %v4382_v8 = vadd.f32 -1.0, %v5747_v48  ;;  %1033 = vmatpush.bf16.msrb.mxu3 %v4487_v13  ;;  %1056 = vmatpush.bf16.msra.mxu1 %v4431_v28 }
 0x372   :  { %v4383_v16 = vadd.f32 -1.0, %v5749_v0  ;;  %v5751_v19 = vpop.eup %5750  ;;  %1043 = vmatpush.bf16.msra.mxu0 %v4619_v22  ;;  %1070 = vmatpush.bf16.msra.mxu2 %v4515_v12  ;;  %v5521_v22 = vld [vmem:[#allocation2 + $0x238] sm:$0xf0]  ;;  %v4610_v12 = vld [vmem:[#allocation2 + $0x1b8] sm:$0xf] }
 0x373   :  { %v417_v20 = vsel %vm403_vm10, %v6175_v9, %v4382_v8  ;;  %v5753_v25 = vpop.eup %5752  ;;  %v5458_v9 = vld [vmem:[#allocation2 + $0x40] sm:$0xf0]  ;;  %v431_v38 = vmul.f32 0.25, %v5751_v19  ;;  %v4611_v41 = vor.u32 %v5506_v40, %v4610_v12  ;;  %vm1386_vm10 = vcmask 1041409  }
 0x374   :  { %v418_v26 = vsel %vm404_vm11, %v6177_v10, %v4383_v16  ;;  %v427_v27 = vmul.f32 0.25, %v417_v20  ;;  %v432_v24 = vmul.f32 0.25, %v5753_v25  ;;  %v4419_v10 = vor.u32 %v5458_v9, %v4418_v31  ;;  %v4658_v31 = vld [vmem:[#allocation2 + $0x218] sm:$0xf]  ;;  %v4646_v9 = vld [vmem:[#allocation2 + $0x200] sm:$0xf] }
 0x375   :  { %v428_v33 = vmul.f32 0.25, %v418_v26  ;;  %vm1388_vm11 = vcmask 1043459  }
 0x376   :  { %v429_v35 = vadd.f32 %v427_v27, %v425_v21  ;;  %1044 = vmatpush.bf16.msra.mxu0 %v4607_v39  ;;  %1057 = vmatpush.bf16.msra.mxu1 %v4419_v10  ;;  %v4670_v21 = vld [vmem:[#allocation2 + $0x230] sm:$0xf]  ;;  %v5509_v39 = vld [vmem:[#allocation2 + $0x1d8] sm:$0xf0] }
 0x377   :  { %v430_v37 = vadd.f32 %v428_v33, %v426_v32  ;;  %1071 = vmatpush.bf16.msra.mxu2 %v4503_v57  ;;  %v4671_v29 = vor.u32 %v5521_v22, %v4670_v21  ;;  %v5518_v32 = vld [vmem:[#allocation2 + $0x220] sm:$0xf0] }
 0x378   :  { %v433_v44 = vadd.f32 %v431_v38, %v429_v35  ;;  %v4659_v33 = vor.u32 %v5518_v32, %v4658_v31  ;;  %v4647_v35 = vor.u32 %v5515_v34, %v4646_v9 }
 0x379   :  { %v434_v45 = vadd.f32 %v432_v24, %v430_v37  ;;  %v5512_v37 = vld [vmem:[#allocation2 + $0x1f0] sm:$0xf0]  ;;  %v4622_v24 = vld [vmem:[#allocation2 + $0x1d0] sm:$0xf] }
 0x37a   :  { %v436_v61 = vrot.slane %v433_v44, 1  ;;  %1045 = vmatpush.bf16.msra.mxu0 %v4595_v54  ;;  %1058 = vmatpush.bf16.msra.mxu1 %v4407_v43  ;;  %v4635_v38 = vor.u32 %v5512_v37, %v4634_v36  ;;  %v4623_v10 = vor.u32 %v5509_v39, %v4622_v24  ;;  %v582_v43 = vld [vmem:[%s7045_s6] sm:$0x7]  ;;  %s5905_s6 = smov 64  }
 0x37b   :  { %v439_v52 = vrot.slane %v434_v45, 1  ;;  %v440_v53 = vperm.slane %v434_v45, 0  ;;  %1072 = vmatpush.bf16.msra.mxu2 %v4491_v6  ;;  %v586_v58 = vperm.slane %v582_v43, 2  ;;  %v584_v59 = vperm.slane %v582_v43, 0 }
 0x37d   :  { %v441_v62 = vperm.slane %v439_v52, 0  ;;  %v445_v1 = vsel %vm444_vm12, %v433_v44, %v440_v53  ;;  %v5503_v44 = vld [vmem:[#allocation2 + $0x1a8] sm:$0xf0] }
 0x37e   :  { %v449_v2 = vrot.slane %v445_v1, 7  ;;  %v455_v46 = vrot.slane %v445_v1, 1  ;;  %v465_v3 = vrot.slane %v445_v1, 6  ;;  %1046 = vmatpush.bf16.msra.mxu0 %v4583_v4  ;;  %1059 = vmatpush.bf16.msra.mxu1 %v4395_v5  ;;  %v4599_v45 = vor.u32 %v5503_v44, %v4598_v42 }
 0x37f   :  { %v446_v48 = vsel %vm444_vm12, %v436_v61, %v441_v62  ;;  %v585_v62 = vperm.slane %v582_v43, 1 }
 0x380   :  { %v450_v63 = vrot.slane %v446_v48, 7  ;;  %v453_v7 = vsel %vm444_vm12, 0.0, %v449_v2  ;;  %v456_v0 = vrot.slane %v446_v48, 1  ;;  %v459_v8 = vsel %vm444_vm12, %v455_v46, 0.0 }
 0x381   :  { %v466_v11 = vrot.slane %v459_v8, 4  ;;  %v467_v13 = vrot.slane %v446_v48, 6  ;;  %v469_v14 = vsel %vm180_vm0, %v453_v7, %v465_v3 }
 0x382   :  { %v454_v15 = vsel %vm444_vm12, 0.0, %v450_v63  ;;  %v460_v16 = vsel %vm444_vm12, %v456_v0, 0.0 }
 0x383   :  { %v468_v17 = vrot.slane %v460_v16, 4  ;;  %v471_v18 = vsel %vm470_vm13, %v469_v14, %v466_v11  ;;  %v472_v19 = vsel %vm180_vm0, %v454_v15, %v467_v13 }
 0x384   :  { %474 = vst [vmem:[#allocation1] ss:$4 sm:$0xff] %v471_v18 }
 0x385   :  { %v473_v20 = vsel %vm470_vm13, %v472_v19, %v468_v17 }
 0x386   :  { %476 = vst [vmem:[#allocation1 + $0x1] ss:$4 sm:$0xff] %v473_v20 }
 0x38d   :  { %v477_v23 = vld.sshfl [vmem:[#allocation1] sm:$0xff pattern:$0x73625140]  ;;  %v478_v25 = vld.sshfl [vmem:[#allocation1 + $0x8] sm:$0xff pattern:$0x73625140] }
 0x38e   :  { %v479_v26 = vld.sshfl [vmem:[#allocation1 + $0x10] sm:$0xff pattern:$0x73625140]  ;;  %v483_v27 = vpack.c.bf16 %v477_v23, %v477_v23  ;;  %v484_v28 = vpack.c.bf16 %v478_v25, %v478_v25 }
 0x38f   :  { %v485_v30 = vpack.c.bf16 %v479_v26, %v479_v26 }
 0x390   :  { %982 = vmatmul.bf16.vlgmr.msra.gmra.mxu3 %v483_v27  ;;  %995 = vmatmul.bf16.vlgmr.msrb.gmra.mxu0 %v484_v28 }
 0x391   :  { %1008 = vmatmul.bf16.vlgmr.msrb.gmra.mxu1 %v485_v30  ;;  %1021 = vmatmul.bf16.vlgmr.msrb.gmra.mxu2 %v483_v27 }
 0x392   :  { %1078 = vmatpush.bf16.msra.mxu3 %v4671_v29 }
 0x396   :  { %1079 = vmatpush.bf16.msra.mxu3 %v4659_v33 }
 0x39a   :  { %1080 = vmatpush.bf16.msra.mxu3 %v4647_v35 }
 0x39e   :  { %1081 = vmatpush.bf16.msra.mxu3 %v4635_v38 }
 0x3a0   :  { %1034 = vmatmul.bf16.vlgmr.msrb.gmra.mxu3 %v484_v28  ;;  %1047 = vmatmul.bf16.vlgmr.msra.gmra.mxu0 %v485_v30 }
 0x3a1   :  { %1060 = vmatmul.bf16.vlgmr.msra.gmra.mxu1 %v483_v27  ;;  %1073 = vmatmul.bf16.vlgmr.msra.gmra.mxu2 %v484_v28 }
 0x3a2   :  { %1082 = vmatpush.bf16.msra.mxu3 %v4623_v10 }
 0x3a6   :  { %1083 = vmatpush.bf16.msra.mxu3 %v4611_v41 }
 0x3aa   :  { %1084 = vmatpush.bf16.msra.mxu3 %v4599_v45 }
 0x3ae   :  { %1085 = vmatpush.bf16.msra.mxu3 %v4587_v50 }
 0x3b1   :  { %1086 = vmatmul.bf16.vlgmr.msra.gmra.mxu3 %v485_v30 }
 0x40d   :  { %v996_v51 = vpop.f32.mrf.mxu0 }
 0x40e   :  { %v1009_v52 = vpop.f32.mrf.mxu1 }
 0x413   :  { %v983_v53 = vpop.f32.mrf.mxu3 }
 0x414   :  { %v1022_v54 = vpop.f32.mrf.mxu2  ;;  %v984_v46 = vadd.f32 %v983_v53, %v584_v59 }
 0x415   :  { %v998_v55 = vpop.f32.mrf.mxu0  ;;  %v1023_v3 = vadd.f32 %v1022_v54, %v585_v62 }
 0x416   :  { %v1011_v56 = vpop.f32.mrf.mxu1  ;;  %v997_v4 = vadd.f32 %v996_v51, %v984_v46 }
 0x418   :  { %v1010_v11 = vadd.f32 %v1009_v52, %v997_v4 }
 0x41b   :  { %v985_v57 = vpop.f32.mrf.mxu3 }
 0x41c   :  { %v1024_v60 = vpop.f32.mrf.mxu2 }
 0x41d   :  { %v1048_v61 = vpop.f32.mrf.mxu0 }
 0x41e   :  { %v1061_v1 = vpop.f32.mrf.mxu1 }
 0x41f   :  { %v1062_v2 = vadd.f32 %v1061_v1, %v586_v58 }
 0x423   :  { %v1035_v48 = vpop.f32.mrf.mxu3 }
 0x424   :  { %v1036_v5 = vadd.f32 %v1035_v48, %v1023_v3  ;;  %v1074_v6 = vpop.f32.mrf.mxu2 }
 0x425   :  { %v1075_v63 = vadd.f32 %v1074_v6, %v1062_v2  ;;  %v1050_v7 = vpop.f32.mrf.mxu0 }
 0x426   :  { %v1049_v0 = vadd.f32 %v1048_v61, %v1036_v5  ;;  %v1063_v8 = vpop.f32.mrf.mxu1 }
 0x428   :  { %v1093_v13 = vrot.slane %v1049_v0, 6 }
 0x42a   :  { %v6215_v14 = vsel %vm180_vm0, %v1010_v11, %v1093_v13  ;;  %v1096_v15 = vsel %vm1095_vm14, %v1010_v11, %v1093_v13  ;;  %vm1390_vm14 = vcmask 1042433  }
 0x42b   :  { %v6217_v16 = vrot.slane %v1096_v15, 2  ;;  %1100 = vst [vmem:[#allocation1] ss:$4 sm:$0xff] %v6215_v14  ;;  %v1037_v17 = vpop.f32.mrf.mxu3  ;;  %v1139_v19 = vmul.f32 %v6215_v14, %v6215_v14 }
 0x42c   :  { %v1076_v18 = vpop.f32.mrf.mxu2 }
 0x42d   :  { %1104 = vst [vmem:[#allocation1 + $0x20] ss:$4 sm:$0xff] %v6217_v16  ;;  %v1140_v22 = vmul.f32 %v6217_v16, %v6217_v16 }
 0x432   :  { %v1101_v20 = vld.sshfl [vmem:[#allocation1] sm:$0xff pattern:$0x73625140]  ;;  %v1102_v21 = vld.sshfl [vmem:[#allocation1 + $0x8] sm:$0xff pattern:$0x73625140] }
 0x433   :  { %1143 = vst [vmem:[#allocation1] ss:$4 sm:$0xff] %v1139_v19  ;;  %v1111_v23 = vsel %vm180_vm0, %v1101_v20, 0.0  ;;  %v1118_v25 = vsel %vm180_vm0, %v1102_v21, 0.0 }
 0x434   :  { %v1105_v26 = vld.sshfl [vmem:[#allocation1 + $0x20] sm:$0xff pattern:$0x73625140]  ;;  %v1106_v27 = vld.sshfl [vmem:[#allocation1 + $0x28] sm:$0xff pattern:$0x73625140]  ;;  %v1087_v28 = vpop.f32.mrf.mxu3 }
 0x435   :  { %1147 = vst [vmem:[#allocation1 + $0x20] ss:$4 sm:$0xff] %v1140_v22  ;;  %v6227_v29 = vadd.f32 %v1087_v28, %v1075_v63  ;;  %v1112_v30 = vrot.slane %v1111_v23, 4  ;;  %v1119_v31 = vrot.slane %v1118_v25, 4  ;;  %v1125_v32 = vsel %vm180_vm0, %v1105_v26, 0.0 }
 0x436   :  { %v1126_v33 = vrot.slane %v1125_v32, 4  ;;  %v1132_v9 = vsel %vm180_vm0, %v1106_v27, 0.0 }
 0x437   :  { %v1113_v34 = vadd.f32 %v1112_v30, %v1111_v23  ;;  %v1120_v35 = vadd.f32 %v1119_v31, %v1118_v25  ;;  %v1133_v36 = vrot.slane %v1132_v9, 4 }
 0x438   :  { %v1127_v10 = vadd.f32 %v1126_v33, %v1125_v32 }
 0x439   :  { %v1114_v37 = vrot.slane %v1113_v34, 2  ;;  %v1121_v38 = vrot.slane %v1120_v35, 2  ;;  %v1134_v12 = vadd.f32 %v1133_v36, %v1132_v9 }
 0x43a   :  { %v1144_v24 = vld.sshfl [vmem:[#allocation1] sm:$0xff pattern:$0x73625140]  ;;  %v1145_v39 = vld.sshfl [vmem:[#allocation1 + $0x8] sm:$0xff pattern:$0x73625140] }
 0x43b   :  { %v1115_v40 = vadd.f32 %v1114_v37, %v1113_v34  ;;  %v1122_v41 = vadd.f32 %v1121_v38, %v1120_v35  ;;  %v1154_v42 = vsel %vm180_vm0, %v1144_v24, 0.0  ;;  %v1161_v52 = vsel %vm180_vm0, %v1145_v39, 0.0 }
 0x43c   :  { %v1148_v44 = vld.sshfl [vmem:[#allocation1 + $0x20] sm:$0xff pattern:$0x73625140]  ;;  %v1149_v45 = vld.sshfl [vmem:[#allocation1 + $0x28] sm:$0xff pattern:$0x73625140]  ;;  %v1089_v47 = vpop.f32.mrf.mxu3 }
 0x43d   :  { %v1116_v49 = vrot.slane %v1115_v40, 1  ;;  %v1123_v50 = vrot.slane %v1122_v41, 1  ;;  %v1155_v51 = vrot.slane %v1154_v42, 4  ;;  %v1162_v53 = vrot.slane %v1161_v52, 4 }
 0x43e   :  { %v1128_v54 = vrot.slane %v1127_v10, 2  ;;  %v1135_v55 = vrot.slane %v1134_v12, 2  ;;  %v1168_v56 = vsel %vm180_vm0, %v1148_v44, 0.0  ;;  %v1175_v1 = vsel %vm180_vm0, %v1149_v45, 0.0 }
 0x43f   :  { %v1117_v43 = vadd.f32 %v1116_v49, %v1115_v40  ;;  %v1124_v57 = vadd.f32 %v1123_v50, %v1122_v41  ;;  %v1156_v58 = vadd.f32 %v1155_v51, %v1154_v42  ;;  %v1169_v59 = vrot.slane %v1168_v56, 4 }
 0x440   :  { %v1163_v60 = vadd.f32 %v1162_v53, %v1161_v52  ;;  %v1129_v61 = vadd.f32 %v1128_v54, %v1127_v10  ;;  %v1136_v62 = vadd.f32 %v1135_v55, %v1134_v12  ;;  %v1176_v48 = vrot.slane %v1175_v1, 4 }
 0x441   :  { %v1182_v2 = vadd.f32 %v1124_v57, %v1117_v43  ;;  %v1157_v46 = vrot.slane %v1156_v58, 2  ;;  %v1170_v3 = vadd.f32 %v1169_v59, %v1168_v56 }
 0x442   :  { %v1164_v4 = vrot.slane %v1163_v60, 2  ;;  %v1130_v5 = vrot.slane %v1129_v61, 1  ;;  %v1137_v6 = vrot.slane %v1136_v62, 1  ;;  %v1177_v0 = vadd.f32 %v1176_v48, %v1175_v1 }
 0x443   :  { %1186 = vrot.lane.b32.xlu2 %v1182_v2, %s5905_s6  ;;  %v1158_v63 = vadd.f32 %v1157_v46, %v1156_v58  ;;  %v1171_v7 = vrot.slane %v1170_v3, 2 }
 0x444   :  { %v1165_v8 = vadd.f32 %v1164_v4, %v1163_v60  ;;  %v1131_v11 = vadd.f32 %v1130_v5, %v1129_v61  ;;  %v1138_v15 = vadd.f32 %v1137_v6, %v1136_v62  ;;  %v1178_v18 = vrot.slane %v1177_v0, 2 }
 0x445   :  { %v1159_v13 = vrot.slane %v1158_v63, 1  ;;  %v1172_v17 = vadd.f32 %v1171_v7, %v1170_v3 }
 0x446   :  { %v1166_v19 = vrot.slane %v1165_v8, 1  ;;  %v1179_v22 = vadd.f32 %v1178_v18, %v1177_v0  ;;  %v1183_v25 = vadd.f32 %v1138_v15, %v1131_v11 }
 0x447   :  { %v1160_v20 = vadd.f32 %v1159_v13, %v1158_v63  ;;  %v1173_v21 = vrot.slane %v1172_v17, 1 }
 0x448   :  { %v1167_v23 = vadd.f32 %v1166_v19, %v1165_v8  ;;  %v1180_v27 = vrot.slane %v1179_v22, 1 }
 0x449   :  { %v1174_v26 = vadd.f32 %v1173_v21, %v1172_v17 }
 0x44a   :  { %v1204_v28 = vadd.f32 %v1167_v23, %v1160_v20  ;;  %v1181_v30 = vadd.f32 %v1180_v27, %v1179_v22 }
 0x44b   :  { %1188 = vrot.lane.b32.xlu2 %v1183_v25, %s5905_s6 }
 0x44c   :  { %1208 = vrot.lane.b32.xlu0 %v1204_v28, %s5905_s6  ;;  %v1205_v31 = vadd.f32 %v1181_v30, %v1174_v26 }
 0x44e   :  { %1210 = vrot.lane.b32.xlu1 %v1205_v31, %s5905_s6 }
 0x49d   :  { %v1187_v32 = vpop.permute.xlu2 %1186 }
 0x49e   :  { %v1192_v33 = vadd.f32 %v1187_v32, %v1182_v2 }
 0x4a0   :  { %1196 = vrot.lane.b32.xlu2 %v1192_v33, %s5906_s20 }
 0x4a5   :  { %v1189_v9 = vpop.permute.xlu2 %1188 }
 0x4a6   :  { %v1193_v34 = vadd.f32 %v1189_v9, %v1183_v25 }
 0x4a8   :  { %1198 = vrot.lane.b32.xlu2 %v1193_v34, %s5906_s20 }
 0x4be   :  { %v1209_v35 = vpop.permute.xlu0 %1208 }
 0x4bf   :  { %v1214_v36 = vadd.f32 %v1209_v35, %v1204_v28 }
 0x4c0   :  { %v1211_v37 = vpop.permute.xlu1 %1210 }
 0x4c1   :  { %1218 = vrot.lane.b32.xlu2 %v1214_v36, %s5906_s20  ;;  %v1215_v38 = vadd.f32 %v1211_v37, %v1205_v31 }
 0x4c3   :  { %1220 = vrot.lane.b32.xlu0 %v1215_v38, %s5906_s20 }
 0x4fa   :  { %v1197_v24 = vpop.permute.xlu2 %1196 }
 0x4fb   :  { %v1202_v39 = vadd.f32 %v1197_v24, %v1192_v33  ;;  %v1324_v33 = vmul.f32 0.5, %v6215_v14 }
 0x4fd   :  { %v1226_v10 = vmul.f32 0.0625, %v1202_v39 }
 0x4ff   :  { %1260 = vrot.lane.b32.xlu2 %v1226_v10, %s5907_s21  ;;  %v1230_v45 = vmul.f32 %v1226_v10, %v1226_v10 }
 0x502   :  { %v1199_v12 = vpop.permute.xlu2 %1198 }
 0x503   :  { %v1203_v40 = vadd.f32 %v1199_v12, %v1193_v34 }
 0x505   :  { %v1227_v41 = vmul.f32 0.0625, %v1203_v40  ;;  %v4760_v40 = vld [vmem:[#allocation4 + $0xa8] sm:$0xf] }
 0x507   :  { %1262 = vrot.lane.b32.xlu1 %v1227_v41, %s5907_s21  ;;  %v1231_v61 = vmul.f32 %v1227_v41, %v1227_v41 }
 0x51b   :  { %v1219_v42 = vpop.permute.xlu2 %1218 }
 0x51c   :  { %v1224_v44 = vadd.f32 %v1219_v42, %v1214_v36 }
 0x51e   :  { %v1228_v47 = vmul.f32 0.0625, %v1224_v44 }
 0x520   :  { %v1232_v49 = vsub.f32 %v1228_v47, %v1230_v45 }
 0x522   :  { %v1234_v50 = vmax.f32 %v1232_v49, 0.0 }
 0x524   :  { %v1236_v51 = vadd.f32 1e-05, %v1234_v50  ;;  %v4748_v50 = vld [vmem:[#allocation4 + $0x90] sm:$0xf] }
 0x526   :  { %5754 = vrsqrt.f32 %v1236_v51  ;;  %vm1244_vm1 = vweird.f32 %v1236_v51 }
 0x52c   :  { %v5755_v52 = vpop.eup %5754 }
 0x52d   :  { %v1239_v53 = vmul.f32 %v5755_v52, %v1236_v51  ;;  %vm1245_vm15 = vweird.f32 %v5755_v52  ;;  %v5541_v51 = vld [vmem:[#allocation4 + $0x98] sm:$0xf0] }
 0x52e   :  { %vm1246_vm2 = vmor %vm1244_vm1, %vm1245_vm15  ;;  %vm1452_vm1 = vcmask 1042432  }
 0x52f   :  { %v1240_v54 = vmul.f32 %v5755_v52, %v1239_v53  ;;  %v4952_v53 = vld [vmem:[#allocation4 + $0x228] sm:$0xf] }
 0x531   :  { %v1241_v55 = vmul.f32 0.5, %v1240_v54  ;;  %v5592_v54 = vld [vmem:[#allocation4 + $0x230] sm:$0xf0] }
 0x533   :  { %v1242_v56 = vsub.f32 1.5, %v1241_v55 }
 0x535   :  { %v1243_v43 = vmul.f32 %v5755_v52, %v1242_v56  ;;  %v1221_v57 = vpop.permute.xlu0 %1220 }
 0x536   :  { %v1225_v58 = vadd.f32 %v1221_v57, %v1215_v38 }
 0x537   :  { %v1247_v59 = vsel %vm1246_vm2, %v5755_v52, %v1243_v43  ;;  %v4749_v52 = vor.u32 %v5541_v51, %v4748_v50  ;;  %v4953_v43 = vor.u32 %v5592_v54, %v4952_v53 }
 0x538   :  { %1282 = vrot.lane.b32.xlu0 %v1247_v59, %s5907_s21  ;;  %v1229_v60 = vmul.f32 0.0625, %v1225_v58 }
 0x539   :  { %2002 = vmatpush.bf16.msrb.mxu2 %v4953_v43 }
 0x53a   :  { %v1233_v62 = vsub.f32 %v1229_v60, %v1231_v61  ;;  %v1366_v60 = vrot.slane %v6227_v29, 6 }
 0x53c   :  { %v1235_v1 = vmax.f32 %v1233_v62, 0.0 }
 0x53e   :  { %v1237_v2 = vadd.f32 1e-05, %v1235_v1  ;;  %v4736_v1 = vld [vmem:[#allocation4 + $0x78] sm:$0xf] }
 0x540   :  { %5756 = vrsqrt.f32 %v1237_v2  ;;  %vm1254_vm4 = vweird.f32 %v1237_v2 }
 0x546   :  { %v5757_v46 = vpop.eup %5756 }
 0x547   :  { %v1249_v3 = vmul.f32 %v5757_v46, %v1237_v2  ;;  %vm1255_vm3 = vweird.f32 %v5757_v46  ;;  %v5538_v2 = vld [vmem:[#allocation4 + $0x80] sm:$0xf0] }
 0x548   :  { %vm1256_vm5 = vmor %vm1254_vm4, %vm1255_vm3 }
 0x549   :  { %v1250_v48 = vmul.f32 %v5757_v46, %v1249_v3 }
 0x54b   :  { %v1251_v4 = vmul.f32 0.5, %v1250_v48 }
 0x54d   :  { %v1252_v5 = vsub.f32 1.5, %v1251_v4  ;;  %v4737_v4 = vor.u32 %v5538_v2, %v4736_v1  ;;  %v4832_v1 = vld [vmem:[#allocation4 + $0x138] sm:$0xf] }
 0x54f   :  { %v1253_v6 = vmul.f32 %v5757_v46, %v1252_v5  ;;  %v4940_v5 = vld [vmem:[#allocation4 + $0x210] sm:$0xf] }
 0x551   :  { %v1257_v63 = vsel %vm1256_vm5, %v5757_v46, %v1253_v6  ;;  %v5589_v6 = vld [vmem:[#allocation4 + $0x218] sm:$0xf0] }
 0x552   :  { %1284 = vrot.lane.b32.xlu2 %v1257_v63, %s5907_s21 }
 0x559   :  { %v1261_v7 = vpop.permute.xlu2 %1260 }
 0x55a   :  { %v1267_v0 = vsel %vm1266_vm6, %v1226_v10, %v1261_v7 }
 0x55b   :  { %1271 = vrot.lane.b32.xlu1 %v1267_v0, %s5905_s6 }
 0x579   :  { %v1263_v8 = vpop.permute.xlu1 %1262 }
 0x57a   :  { %v1268_v11 = vsel %vm1266_vm6, %v1227_v41, %v1263_v8  ;;  %v5544_v41 = vld [vmem:[#allocation4 + $0xb0] sm:$0xf0]  ;;  %v1368_v8 = vsel %vm180_vm0, %v6227_v29, %v1366_v60  ;;  %v1365_v60 = vrot.slane %v6227_v29, 2  ;;  %v5547_v29 = vld [vmem:[#allocation4 + $0xc8] sm:$0xf0] }
 0x57b   :  { %1273 = vrot.lane.b32.xlu0 %v1268_v11, %s5905_s6  ;;  %v4761_v42 = vor.u32 %v5544_v41, %v4760_v40  ;;  %v5565_v40 = vld [vmem:[#allocation4 + $0x158] sm:$0xf0]  ;;  %v4916_v41 = vld [vmem:[#allocation4 + $0x1e0] sm:$0xf] }
 0x57d   :  { %1976 = vmatpush.bf16.msrb.mxu0 %v4761_v42 }
 0x581   :  { %1977 = vmatpush.bf16.msrb.mxu0 %v4749_v52 }
 0x585   :  { %1978 = vmatpush.bf16.msrb.mxu0 %v4737_v4  ;;  %v4904_v4 = vld [vmem:[#allocation4 + $0x1c8] sm:$0xf] }
 0x5aa   :  { %v1283_v13 = vpop.permute.xlu0 %1282 }
 0x5ab   :  { %v1288_v15 = vsel %vm1266_vm6, %v1247_v59, %v1283_v13  ;;  %v4724_v13 = vld [vmem:[#allocation4 + $0x60] sm:$0xf] }
 0x5ac   :  { %1292 = vrot.lane.b32.xlu2 %v1288_v15, %s5905_s6  ;;  %v1285_v17 = vpop.permute.xlu2 %1284 }
 0x5ad   :  { %v1289_v18 = vsel %vm1266_vm6, %v1257_v63, %v1285_v17  ;;  %v4941_v63 = vor.u32 %v5589_v6, %v4940_v5  ;;  %v5580_v6 = vld [vmem:[#allocation4 + $0x1d0] sm:$0xf0] }
 0x5ae   :  { %1294 = vrot.lane.b32.xlu1 %v1289_v18, %s5905_s6 }
 0x5af   :  { %2003 = vmatpush.bf16.msrb.mxu2 %v4941_v63  ;;  %v5537_v63 = vld [vmem:[#allocation4 + $0x7c] sm:$0xf] }
 0x5cd   :  { %v1272_v19 = vpop.permute.xlu1 %1271 }
 0x5ce   :  { %v1278_v20 = vsel %vm1277_vm7, %v1267_v0, %v1272_v19 }
 0x5cf   :  { %v1300_v21 = vperm.slane %v1278_v20, 0  ;;  %v4856_v20 = vld [vmem:[#allocation4 + $0x168] sm:$0xf] }
 0x5d1   :  { %v1304_v22 = vrot.slane %v1300_v21, 6 }
 0x5d3   :  { %v1306_v26 = vsel %vm180_vm0, %v1300_v21, %v1304_v22  ;;  %v5568_v21 = vld [vmem:[#allocation4 + $0x170] sm:$0xf0]  ;;  %v4928_v22 = vld [vmem:[#allocation4 + $0x1f8] sm:$0xf] }
 0x5d4   :  { %v1310_v30 = vsub.f32 %v6215_v14, %v1306_v26  ;;  %v5586_v26 = vld [vmem:[#allocation4 + $0x200] sm:$0xf0] }
 0x5ed   :  { %v1274_v36 = vpop.permute.xlu0 %1273 }
 0x5ee   :  { %v1279_v24 = vsel %vm1277_vm7, %v1268_v11, %v1274_v36  ;;  %v4712_v36 = vld [vmem:[#allocation4 + $0x48] sm:$0xf] }
 0x5ef   :  { %v1301_v10 = vperm.slane %v1279_v24, 0 }
 0x5f1   :  { %v1305_v47 = vrot.slane %v1301_v10, 6 }
 0x5f3   :  { %v1307_v61 = vsel %vm180_vm0, %v1301_v10, %v1305_v47  ;;  %v5540_v47 = vld [vmem:[#allocation4 + $0x94] sm:$0xf] }
 0x5f4   :  { %v1311_v11 = vsub.f32 %v6217_v16, %v1307_v61 }
 0x606   :  { %v1293_v23 = vpop.permute.xlu2 %1292 }
 0x607   :  { %v1298_v25 = vsel %vm1277_vm7, %v1288_v15, %v1293_v23  ;;  %v5535_v15 = vld [vmem:[#allocation4 + $0x68] sm:$0xf0] }
 0x608   :  { %v1312_v27 = vperm.slane %v1298_v25, 0  ;;  %v4725_v19 = vor.u32 %v5535_v15, %v4724_v13  ;;  %v4857_v25 = vor.u32 %v5568_v21, %v4856_v20  ;;  %v4688_v13 = vld [vmem:[#allocation4 + $0x18] sm:$0xf]  ;;  %v5526_v15 = vld [vmem:[#allocation4 + $0x20] sm:$0xf0] }
 0x609   :  { %v5559_v20 = vld [vmem:[#allocation4 + $0x128] sm:$0xf0] }
 0x60a   :  { %v1316_v28 = vrot.slane %v1312_v27, 6  ;;  %1979 = vmatpush.bf16.msrb.mxu0 %v4725_v19  ;;  %1989 = vmatpush.bf16.msrb.mxu1 %v4857_v25  ;;  %v4820_v19 = vld [vmem:[#allocation4 + $0x120] sm:$0xf]  ;;  %v5534_v25 = vld [vmem:[#allocation4 + $0x64] sm:$0xf] }
 0x60b   :  { %v4821_v21 = vor.u32 %v5559_v20, %v4820_v19  ;;  %v4834_v19 = vld [vmem:[#allocation4 + $0x144] sm:$0xf0]  ;;  %v4756_v20 = vld [vmem:[#allocation4 + $0x98] sm:$0xf] }
 0x60c   :  { %v1318_v31 = vsel %vm180_vm0, %v1312_v27, %v1316_v28  ;;  %v5543_v27 = vld [vmem:[#allocation4 + $0xac] sm:$0xf]  ;;  %v4762_v28 = vld [vmem:[#allocation4 + $0xb4] sm:$0xf0] }
 0x60d   :  { %v1322_v32 = vmul.f32 %v1318_v31, %v1310_v30 }
 0x60f   :  { %v1326_v9 = vmul.f32 0.5, %v1322_v32 }
 0x611   :  { %v1328_v34 = vadd.f32 %v1326_v9, %v1324_v33  ;;  %v4929_v33 = vor.u32 %v5586_v26, %v4928_v22  ;;  %v1325_v9 = vmul.f32 0.5, %v6217_v16  ;;  %v4892_v22 = vld [vmem:[#allocation4 + $0x1b0] sm:$0xf] }
 0x613   :  { %v1338_v35 = vmin.f32 %v1328_v34, 0.0  ;;  %v1334_v38 = vmul.f32 0.2, %v1328_v34  ;;  %vm1332_vm8 = vcmp.gt.f32.partialorder %v1328_v34, 0.0  ;;  %v1330_v39 = vmax.f32 %v1328_v34, 0.0  ;;  %2004 = vmatpush.bf16.msrb.mxu2 %v4929_v33 }
 0x614   :  { %v5523_v33 = vld [vmem:[#allocation4 + $0x8] sm:$0xf0] }
 0x615   :  { %v1340_v37 = vmul.f32 1.442695, %v1338_v35  ;;  %v1336_v12 = vsel %vm1332_vm8, %v1328_v34, %v1334_v38  ;;  %v1350_v14 = vmul.f32 0.25, %v1330_v39  ;;  %v4765_v35 = vor.u32 %v5543_v27, %v4762_v28 }
 0x616   :  { %v1352_v45 = vmul.f32 0.25, %v1336_v12  ;;  %v4844_v12 = vld [vmem:[#allocation4 + $0x150] sm:$0xf] }
 0x617   :  { %5758 = vpow2.f32 %v1340_v37  ;;  %v5532_v37 = vld [vmem:[#allocation4 + $0x50] sm:$0xf0]  ;;  %2015 = vmatpush.bf16.msrb.mxu3 %v4765_v35  ;;  %v4845_v52 = vor.u32 %v5565_v40, %v4844_v12  ;;  %v4714_v40 = vld [vmem:[#allocation4 + $0x54] sm:$0xf0] }
 0x618   :  { %5760 = vtanh.f32 %v1328_v34  ;;  %v1354_v57 = vadd.f32 %v1352_v45, %v1350_v14  ;;  %v4713_v14 = vor.u32 %v5532_v37, %v4712_v36  ;;  %v5583_v45 = vld [vmem:[#allocation4 + $0x1e8] sm:$0xf0] }
 0x619   :  { %v4917_v53 = vor.u32 %v5583_v45, %v4916_v41  ;;  %1990 = vmatpush.bf16.msrb.mxu1 %v4845_v52  ;;  %v5567_v41 = vld [vmem:[#allocation4 + $0x16c] sm:$0xf] }
 0x61a   :  { %1980 = vmatpush.bf16.msrb.mxu0 %v4713_v14 }
 0x61b   :  { %2005 = vmatpush.bf16.msrb.mxu2 %v4917_v53 }
 0x61d   :  { %v5759_v44 = vpop.eup %5758 }
 0x61e   :  { %v4672_v49 = vadd.f32 -1.0, %v5759_v44  ;;  %v5761_v55 = vpop.eup %5760 }
 0x61f   :  { %v1360_v3 = vmul.f32 0.25, %v5761_v55 }
 0x620   :  { %v1346_v56 = vsel %vm1332_vm8, %v1328_v34, %v4672_v49  ;;  %v1295_v59 = vpop.permute.xlu1 %1294  ;;  %v4750_v49 = vld [vmem:[#allocation4 + $0x9c] sm:$0xf0] }
 0x621   :  { %v1356_v58 = vmul.f32 0.25, %v1346_v56  ;;  %v1299_v62 = vsel %vm1277_vm7, %v1289_v18, %v1295_v59  ;;  %v5529_v59 = vld [vmem:[#allocation4 + $0x38] sm:$0xf0] }
 0x622   :  { %v1313_v48 = vperm.slane %v1299_v62, 0 }
 0x623   :  { %v1358_v46 = vadd.f32 %v1356_v58, %v1354_v57  ;;  %v4753_v57 = vor.u32 %v5540_v47, %v4750_v49  ;;  %v4700_v58 = vld [vmem:[#allocation4 + $0x30] sm:$0xf] }
 0x624   :  { %v1317_v0 = vrot.slane %v1313_v48, 6  ;;  %v4701_v62 = vor.u32 %v5529_v59, %v4700_v58  ;;  %v5528_v59 = vld [vmem:[#allocation4 + $0x34] sm:$0xf] }
 0x625   :  { %v1362_v7 = vadd.f32 %v1360_v3, %v1358_v46  ;;  %2016 = vmatpush.bf16.msrb.mxu3 %v4753_v57 }
 0x626   :  { %v1319_v18 = vsel %vm180_vm0, %v1313_v48, %v1317_v0  ;;  %v5562_v48 = vld [vmem:[#allocation4 + $0x140] sm:$0xf0]  ;;  %1981 = vmatpush.bf16.msrb.mxu0 %v4701_v62 }
 0x627   :  { %v1372_v17 = vadd.f32 %v1368_v8, %v1362_v7  ;;  %v1323_v23 = vmul.f32 %v1319_v18, %v1311_v11  ;;  %v4833_v5 = vor.u32 %v5562_v48, %v4832_v1  ;;  %v4905_v8 = vor.u32 %v5580_v6, %v4904_v4  ;;  %v4738_v11 = vld [vmem:[#allocation4 + $0x84] sm:$0xf0]  ;;  %v5564_v1 = vld [vmem:[#allocation4 + $0x154] sm:$0xf]  ;;  %v4784_v6 = vld [vmem:[#allocation4 + $0xd8] sm:$0xf] }
 0x628   :  { %v4689_v18 = vor.u32 %v5526_v15, %v4688_v13  ;;  %v5525_v13 = vld [vmem:[#allocation4 + $0x1c] sm:$0xf]  ;;  %v4690_v15 = vld [vmem:[#allocation4 + $0x24] sm:$0xf0] }
 0x629   :  { %v1376_v30 = vrot.slane %v1372_v17, 1  ;;  %v1377_v31 = vrot.slane %v1372_v17, 2  ;;  %v1378_v32 = vrot.slane %v1372_v17, 3  ;;  %v1327_v34 = vmul.f32 0.5, %v1323_v23  ;;  %1991 = vmatpush.bf16.msrb.mxu1 %v4833_v5  ;;  %2006 = vmatpush.bf16.msrb.mxu2 %v4905_v8  ;;  %v5577_v23 = vld [vmem:[#allocation4 + $0x1b8] sm:$0xf0] }
 0x62a   :  { %1982 = vmatpush.bf16.msrb.mxu0 %v4689_v18  ;;  %v4893_v28 = vor.u32 %v5577_v23, %v4892_v22  ;;  %v5545_v5 = vld [vmem:[#allocation4 + $0xb8] sm:$0xf0]  ;;  %v4693_v22 = vor.u32 %v5525_v13, %v4690_v15  ;;  %v4798_v13 = vld [vmem:[#allocation4 + $0xfc] sm:$0xf0] }
 0x62b   :  { %v1382_v38 = vsel %vm444_vm12, %v1372_v17, %v1376_v30  ;;  %v1384_v24 = vsel %vm1383_vm9, %v1377_v31, %v1378_v32  ;;  %v1387_v39 = vsel %vm1386_vm10, %v1372_v17, %v1376_v30  ;;  %v1389_v10 = vsel %vm1388_vm11, %v1377_v31, %v1378_v32  ;;  %v4726_v30 = vld [vmem:[#allocation4 + $0x6c] sm:$0xf0]  ;;  %v4676_v31 = vld [vmem:[#allocation4] sm:$0xf]  ;;  %v5585_v15 = vld [vmem:[#allocation4 + $0x1fc] sm:$0xf] }
 0x62c   :  { %v1385_v42 = vsel %vm180_vm0, %v1382_v38, %v1384_v24  ;;  %v1391_v16 = vsel %vm1390_vm14, %v1387_v39, %v1389_v10  ;;  %v6278_v44 = vadd.f32 %v1327_v34, %v1325_v9  ;;  %v4741_v17 = vor.u32 %v5537_v63, %v4738_v11  ;;  %v4808_v9 = vld [vmem:[#allocation4 + $0x108] sm:$0xf]  ;;  %v5556_v34 = vld [vmem:[#allocation4 + $0x110] sm:$0xf0]  ;;  %v4880_v38 = vld [vmem:[#allocation4 + $0x198] sm:$0xf] }
 0x62d   :  { %v1392_v50 = vrot.slane %v1391_v16, 1  ;;  %v1404_v51 = vrot.slane %v1385_v42, 1  ;;  %v4729_v32 = vor.u32 %v5534_v25, %v4726_v30  ;;  %1992 = vmatpush.bf16.msrb.mxu1 %v4821_v21  ;;  %v4677_v36 = vor.u32 %v5523_v33, %v4676_v31  ;;  %v5574_v24 = vld [vmem:[#allocation4 + $0x1a0] sm:$0xf0]  ;;  %v5531_v39 = vld [vmem:[#allocation4 + $0x4c] sm:$0xf]  ;;  %2007 = vmatpush.bf16.msrb.mxu2 %v4893_v28 }
 0x62e   :  { %v1335_v54 = vmul.f32 0.2, %v6278_v44  ;;  %v1339_v55 = vmin.f32 %v6278_v44, 0.0  ;;  %vm1333_vm15 = vcmp.gt.f32.partialorder %v6278_v44, 0.0  ;;  %v1331_v3 = vmax.f32 %v6278_v44, 0.0  ;;  %2017 = vmatpush.bf16.msrb.mxu3 %v4741_v17 }
 0x62f   :  { %v1405_v56 = vrot.slane %v1392_v50, 1  ;;  %v1408_v43 = vperm.slane %v1404_v51, 0  ;;  %v4809_v37 = vor.u32 %v5556_v34, %v4808_v9  ;;  %v4881_v12 = vor.u32 %v5574_v24, %v4880_v38  ;;  %1983 = vmatpush.bf16.msrb.mxu0 %v4677_v36  ;;  %v4858_v16 = vld [vmem:[#allocation4 + $0x174] sm:$0xf0]  ;;  %v5550_v63 = vld [vmem:[#allocation4 + $0xe0] sm:$0xf0] }
 0x630   :  { %v1342_v61 = vmul.f32 1.442695, %v1339_v55  ;;  %v1337_v0 = vsel %vm1333_vm15, %v6278_v44, %v1335_v54  ;;  %v1351_v26 = vmul.f32 0.25, %v1331_v3  ;;  %v4861_v49 = vor.u32 %v5567_v41, %v4858_v16  ;;  %v5553_v54 = vld [vmem:[#allocation4 + $0xf8] sm:$0xf0] }
 0x631   :  { %v1409_v2 = vperm.slane %v1405_v56, 0  ;;  %v6285_v46 = vsel %vm444_vm12, %v1385_v42, %v1408_v43  ;;  %v1353_v27 = vmul.f32 0.25, %v1337_v0  ;;  %v4717_v42 = vor.u32 %v5531_v39, %v4714_v40  ;;  %1993 = vmatpush.bf16.msrb.mxu1 %v4809_v37  ;;  %2008 = vmatpush.bf16.msrb.mxu2 %v4881_v12  ;;  %v4868_v56 = vld [vmem:[#allocation4 + $0x180] sm:$0xf]  ;;  %v5571_v43 = vld [vmem:[#allocation4 + $0x188] sm:$0xf0] }
 0x632   :  { %1424 = vst [vmem:[#allocation1] ss:$4 sm:$0xff] %v6285_v46  ;;  %5762 = vpow2.f32 %v1342_v61  ;;  %2018 = vmatpush.bf16.msrb.mxu3 %v4729_v32  ;;  %v1367_v51 = vrot.slane %v1365_v60, 6  ;;  %v4869_v58 = vor.u32 %v5571_v43, %v4868_v56  ;;  %v4702_v61 = vld [vmem:[#allocation4 + $0x3c] sm:$0xf0]  ;;  %v4785_v11 = vor.u32 %v5550_v63, %v4784_v6 }
 0x633   :  { %v6290_v7 = vsel %vm444_vm12, %v1392_v50, %v1409_v2  ;;  %5764 = vtanh.f32 %v6278_v44  ;;  %v4796_v50 = vld [vmem:[#allocation4 + $0xf0] sm:$0xf]  ;;  %v1355_v52 = vadd.f32 %v1353_v27, %v1351_v26  ;;  %2028 = vmatpush.bf16.msra.mxu0 %v4861_v49  ;;  %v4705_v62 = vor.u32 %v5528_v59, %v4702_v61  ;;  %v4846_v2 = vld [vmem:[#allocation4 + $0x15c] sm:$0xf0]  ;;  %v5561_v17 = vld [vmem:[#allocation4 + $0x13c] sm:$0xf] }
 0x634   :  { %1426 = vst [vmem:[#allocation1 + $0x1] ss:$4 sm:$0xff] %v6290_v7  ;;  %v4797_v55 = vor.u32 %v5553_v54, %v4796_v50  ;;  %v4768_v3 = vld [vmem:[#allocation4 + $0xb0] sm:$0xf]  ;;  %v4849_v4 = vor.u32 %v5564_v1, %v4846_v2  ;;  %v1369_v0 = vsel %vm180_vm0, %v1365_v60, %v1367_v51  ;;  %v5542_v21 = vld [vmem:[#allocation4 + $0xa0] sm:$0xf0]  ;;  %v4837_v23 = vor.u32 %v5561_v17, %v4834_v19 }
 0x635   :  { %2009 = vmatpush.bf16.msrb.mxu2 %v4869_v58  ;;  %v4769_v8 = vor.u32 %v5545_v5, %v4768_v3  ;;  %v4757_v25 = vor.u32 %v5542_v21, %v4756_v20  ;;  %v4772_v26 = vld [vmem:[#allocation4 + $0xc0] sm:$0xf]  ;;  %v5522_v27 = vld [vmem:[#allocation4 + $0x4] sm:$0xf]  ;;  %v4678_v34 = vld [vmem:[#allocation4 + $0xc] sm:$0xf0] }
 0x636   :  { %2019 = vmatpush.bf16.msrb.mxu3 %v4717_v42  ;;  %1994 = vmatpush.bf16.msrb.mxu1 %v4797_v55  ;;  %v4773_v32 = vor.u32 %v5547_v29, %v4772_v26  ;;  %v5558_v24 = vld [vmem:[#allocation4 + $0x124] sm:$0xf]  ;;  %v4822_v39 = vld [vmem:[#allocation4 + $0x12c] sm:$0xf0]  ;;  %v4954_v41 = vld [vmem:[#allocation4 + $0x234] sm:$0xf0] }
 0x637   :  { %2029 = vmatpush.bf16.msra.mxu0 %v4849_v4  ;;  %v5539_v49 = vld [vmem:[#allocation4 + $0x88] sm:$0xf0]  ;;  %v4864_v50 = vld [vmem:[#allocation4 + $0x170] sm:$0xf]  ;;  %v5569_v51 = vld [vmem:[#allocation4 + $0x178] sm:$0xf0] }
 0x638   :  { %v5763_v35 = vpop.eup %5762  ;;  %v4865_v55 = vor.u32 %v5569_v51, %v4864_v50  ;;  %v5555_v56 = vld [vmem:[#allocation4 + $0x10c] sm:$0xf]  ;;  %v4810_v43 = vld [vmem:[#allocation4 + $0x114] sm:$0xf0]  ;;  %v4942_v58 = vld [vmem:[#allocation4 + $0x21c] sm:$0xf0] }
 0x639   :  { %v4673_v10 = vadd.f32 -1.0, %v5763_v35  ;;  %v5765_v14 = vpop.eup %5764  ;;  %2054 = vmatpush.bf16.msra.mxu2 %v4769_v8  ;;  %v4732_v59 = vld [vmem:[#allocation4 + $0x68] sm:$0xf]  ;;  %v5536_v2 = vld [vmem:[#allocation4 + $0x70] sm:$0xf0] }
 0x63a   :  { %v1361_v57 = vmul.f32 0.25, %v5765_v14  ;;  %2020 = vmatpush.bf16.msrb.mxu3 %v4705_v62  ;;  %1995 = vmatpush.bf16.msrb.mxu1 %v4785_v11  ;;  %v4825_v14 = vor.u32 %v5558_v24, %v4822_v39  ;;  %v4852_v3 = vld [vmem:[#allocation4 + $0x158] sm:$0xf]  ;;  %v4733_v4 = vor.u32 %v5536_v2, %v4732_v59  ;;  %v5552_v8 = vld [vmem:[#allocation4 + $0xf4] sm:$0xf] }
 0x63b   :  { %v6297_v45 = vld.sshfl [vmem:[#allocation1] sm:$0xff pattern:$0x73625140]  ;;  %v1347_v47 = vsel %vm1333_vm15, %v6278_v44, %v4673_v10  ;;  %2030 = vmatpush.bf16.msra.mxu0 %v4837_v23  ;;  %v4930_v19 = vld [vmem:[#allocation4 + $0x204] sm:$0xf0] }
 0x63c   :  { %1439 = vst [vmem:[#allocation1] ss:$4 sm:$0xff] %v6285_v46  ;;  %v1357_v53 = vmul.f32 0.25, %v1347_v47  ;;  %v1433_v33 = vrot.slane %v6297_v45, 7  ;;  %v4744_v47 = vld [vmem:[#allocation4 + $0x80] sm:$0xf] }
 0x63d   :  { %1441 = vst [vmem:[#allocation1 + $0x1] ss:$4 sm:$0xff] %v6290_v7  ;;  %2055 = vmatpush.bf16.msra.mxu2 %v4757_v25  ;;  %v4745_v54 = vor.u32 %v5539_v49, %v4744_v47  ;;  %v4720_v20 = vld [vmem:[#allocation4 + $0x50] sm:$0xf]  ;;  %v5533_v21 = vld [vmem:[#allocation4 + $0x58] sm:$0xf0] }
 0x63e   :  { %v1359_v44 = vadd.f32 %v1357_v53, %v1355_v52  ;;  %2021 = vmatpush.bf16.msrb.mxu3 %v4693_v22  ;;  %1996 = vmatpush.bf16.msrb.mxu1 %v4773_v32  ;;  %v1437_v5 = vsel %vm444_vm12, 0.0, %v1433_v33  ;;  %v4933_v22 = vor.u32 %v5585_v15, %v4930_v19  ;;  %v4721_v23 = vor.u32 %v5533_v21, %v4720_v20  ;;  %v4840_v25 = vld [vmem:[#allocation4 + $0x140] sm:$0xf]  ;;  %v5563_v26 = vld [vmem:[#allocation4 + $0x148] sm:$0xf0] }
 0x63f   :  { %2031 = vmatpush.bf16.msra.mxu0 %v4825_v14  ;;  %v4841_v29 = vor.u32 %v5563_v26, %v4840_v25  ;;  %v4708_v32 = vld [vmem:[#allocation4 + $0x38] sm:$0xf]  ;;  %v5530_v33 = vld [vmem:[#allocation4 + $0x40] sm:$0xf0]  ;;  %v4774_v24 = vld [vmem:[#allocation4 + $0xcc] sm:$0xf0] }
 0x640   :  { %v1363_v48 = vadd.f32 %v1361_v57, %v1359_v44  ;;  %v4813_v44 = vor.u32 %v5555_v56, %v4810_v43  ;;  %v5588_v57 = vld [vmem:[#allocation4 + $0x214] sm:$0xf]  ;;  %v5579_v39 = vld [vmem:[#allocation4 + $0x1cc] sm:$0xf]  ;;  %v5557_v14 = vld [vmem:[#allocation4 + $0x118] sm:$0xf0] }
 0x641   :  { %2056 = vmatpush.bf16.msra.mxu2 %v4745_v54  ;;  %v4945_v1 = vor.u32 %v5588_v57, %v4942_v58  ;;  %v5576_v47 = vld [vmem:[#allocation4 + $0x1b4] sm:$0xf]  ;;  %v4894_v49 = vld [vmem:[#allocation4 + $0x1bc] sm:$0xf0]  ;;  %v4684_v50 = vld [vmem:[#allocation4 + $0x8] sm:$0xf] }
 0x642   :  { %v1373_v18 = vadd.f32 %v1369_v0, %v1363_v48  ;;  %v5566_v0 = vld [vmem:[#allocation4 + $0x160] sm:$0xf0]  ;;  %v4897_v51 = vor.u32 %v5576_v47, %v4894_v49  ;;  %v5573_v43 = vld [vmem:[#allocation4 + $0x19c] sm:$0xf]  ;;  %v4792_v57 = vld [vmem:[#allocation4 + $0xe0] sm:$0xf] }
 0x643   :  { %2032 = vmatpush.bf16.msra.mxu0 %v4813_v44  ;;  %v4853_v11 = vor.u32 %v5566_v0, %v4852_v3  ;;  %v5554_v54 = vld [vmem:[#allocation4 + $0x100] sm:$0xf0]  ;;  %v4882_v44 = vld [vmem:[#allocation4 + $0x1a4] sm:$0xf0]  ;;  %v5551_v58 = vld [vmem:[#allocation4 + $0xe8] sm:$0xf0] }
 0x644   :  { %v1442_v60 = vld.sshfl [vmem:[#allocation1] sm:$0xff pattern:$0x73625140]  ;;  %v1379_v28 = vrot.slane %v1373_v18, 1  ;;  %v1380_v30 = vrot.slane %v1373_v18, 2  ;;  %v1381_v31 = vrot.slane %v1373_v18, 3 }
 0x645   :  { %v1448_v9 = vrot.slane %v1442_v60, 1  ;;  %1455 = vst [vmem:[#allocation1] ss:$4 sm:$0xff] %v6285_v46  ;;  %v4681_v46 = vor.u32 %v5522_v27, %v4678_v34  ;;  %2057 = vmatpush.bf16.msra.mxu2 %v4733_v4  ;;  %v5549_v27 = vld [vmem:[#allocation4 + $0xdc] sm:$0xf]  ;;  %v4709_v34 = vor.u32 %v5530_v33, %v4708_v32 }
 0x646   :  { %1457 = vst [vmem:[#allocation1 + $0x1] ss:$4 sm:$0xff] %v6290_v7  ;;  %v1393_v35 = vsel %vm444_vm12, %v1373_v18, %v1379_v28  ;;  %v1394_v36 = vsel %vm1383_vm9, %v1380_v30, %v1381_v31  ;;  %v1396_v37 = vsel %vm1386_vm10, %v1373_v18, %v1379_v28  ;;  %v1397_v38 = vsel %vm1388_vm11, %v1380_v30, %v1381_v31  ;;  %v5591_v7 = vld [vmem:[#allocation4 + $0x22c] sm:$0xf]  ;;  %v4786_v60 = vld [vmem:[#allocation4 + $0xe4] sm:$0xf0] }
 0x647   :  { %v1453_v10 = vsel %vm1452_vm1, %v1448_v9, 0.0  ;;  %v1395_v12 = vsel %vm180_vm0, %v1393_v35, %v1394_v36  ;;  %v1398_v40 = vsel %vm1390_vm14, %v1396_v37, %v1397_v38  ;;  %v4957_v45 = vor.u32 %v5591_v7, %v4954_v41  ;;  %2022 = vmatpush.bf16.msrb.mxu3 %v4681_v46  ;;  %v5582_v28 = vld [vmem:[#allocation4 + $0x1e4] sm:$0xf]  ;;  %v4918_v31 = vld [vmem:[#allocation4 + $0x1ec] sm:$0xf0] }
 0x648   :  { %1476 = vst [vmem:[#allocation1 + $0x10] ss:$2 sm:$0xff] %v1453_v10  ;;  %v1399_v42 = vrot.slane %v1398_v40, 1  ;;  %v1406_v16 = vrot.slane %v1395_v12, 1  ;;  %v4801_v18 = vor.u32 %v5552_v8, %v4798_v13  ;;  %v4789_v30 = vor.u32 %v5549_v27, %v4786_v60  ;;  %v4828_v35 = vld [vmem:[#allocation4 + $0x128] sm:$0xf] }
 0x649   :  { %2041 = vmatpush.bf16.msra.mxu1 %v4957_v45  ;;  %2058 = vmatpush.bf16.msra.mxu2 %v4721_v23  ;;  %v4921_v9 = vor.u32 %v5582_v28, %v4918_v31  ;;  %v5560_v36 = vld [vmem:[#allocation4 + $0x130] sm:$0xf0]  ;;  %v5546_v37 = vld [vmem:[#allocation4 + $0xc4] sm:$0xf]  ;;  %v4906_v10 = vld [vmem:[#allocation4 + $0x1d4] sm:$0xf0] }
 0x64a   :  { %v1407_v52 = vrot.slane %v1399_v42, 1  ;;  %v1410_v53 = vperm.slane %v1406_v16, 0  ;;  %2033 = vmatpush.bf16.msra.mxu0 %v4801_v18  ;;  %v4829_v38 = vor.u32 %v5560_v36, %v4828_v35  ;;  %v4696_v40 = vld [vmem:[#allocation4 + $0x20] sm:$0xf]  ;;  %v4777_v46 = vor.u32 %v5546_v37, %v4774_v24  ;;  %v5527_v41 = vld [vmem:[#allocation4 + $0x28] sm:$0xf0] }
 0x64b   :  { %2067 = vmatpush.bf16.msra.mxu3 %v4865_v55  ;;  %v4909_v7 = vor.u32 %v5579_v39, %v4906_v10  ;;  %v4816_v16 = vld [vmem:[#allocation4 + $0x110] sm:$0xf]  ;;  %v5593_v20 = vld [vmem:[#allocation4 + $0x238] sm:$0xf0]  ;;  %v5590_v27 = vld [vmem:[#allocation4 + $0x220] sm:$0xf0] }
 0x64c   :  { %v1411_v61 = vperm.slane %v1407_v52, 0  ;;  %v6320_v62 = vsel %vm444_vm12, %v1395_v12, %v1410_v53  ;;  %v4817_v45 = vor.u32 %v5557_v14, %v4816_v16  ;;  %v5524_v52 = vld [vmem:[#allocation4 + $0x10] sm:$0xf0]  ;;  %v4804_v53 = vld [vmem:[#allocation4 + $0xf8] sm:$0xf]  ;;  %vm2287_vm14 = vcmask 130048  }
 0x64d   :  { %v1458_v48 = vld.sshfl [vmem:[#allocation1] sm:$0xff pattern:$0x73625140]  ;;  %1429 = vst [vmem:[#allocation1 + $0x20] ss:$4 sm:$0xff] %v6320_v62  ;;  %2042 = vmatpush.bf16.msra.mxu1 %v4945_v1  ;;  %2059 = vmatpush.bf16.msra.mxu2 %v4709_v34  ;;  %v4685_v55 = vor.u32 %v5524_v52, %v4684_v50  ;;  %v4805_v56 = vor.u32 %v5554_v54, %v4804_v53 }
 0x64e   :  { %v1468_v6 = vrot.slane %v1458_v48, 4  ;;  %v6325_v63 = vsel %vm444_vm12, %v1399_v42, %v1411_v61  ;;  %2034 = vmatpush.bf16.msra.mxu0 %v4789_v30  ;;  %v4697_v42 = vor.u32 %v5527_v41, %v4696_v40  ;;  %v4885_v61 = vor.u32 %v5573_v43, %v4882_v44  ;;  %v5570_v1 = vld [vmem:[#allocation4 + $0x184] sm:$0xf]  ;;  %v4870_v3 = vld [vmem:[#allocation4 + $0x18c] sm:$0xf0] }
 0x64f   :  { %1431 = vst [vmem:[#allocation1 + $0x21] ss:$4 sm:$0xff] %v6325_v63  ;;  %2068 = vmatpush.bf16.msra.mxu3 %v4853_v11  ;;  %v4793_v48 = vor.u32 %v5551_v58, %v4792_v57  ;;  %v4873_v0 = vor.u32 %v5570_v1, %v4870_v3  ;;  %v4960_v19 = vld [vmem:[#allocation4 + $0x230] sm:$0xf]  ;;  %v4936_v28 = vld [vmem:[#allocation4 + $0x200] sm:$0xf] }
 0x650   :  { %v1470_v17 = vsel %vm470_vm13, %v1437_v5, %v1468_v6  ;;  %v4780_v5 = vld [vmem:[#allocation4 + $0xc8] sm:$0xf]  ;;  %v5548_v6 = vld [vmem:[#allocation4 + $0xd0] sm:$0xf0]  ;;  %v4961_v23 = vor.u32 %v5593_v20, %v4960_v19  ;;  %v5587_v30 = vld [vmem:[#allocation4 + $0x208] sm:$0xf0] }
 0x651   :  { %1472 = vst [vmem:[#allocation1] ss:$2 sm:$0xff] %v1470_v17  ;;  %2043 = vmatpush.bf16.msra.mxu1 %v4933_v22  ;;  %2060 = vmatpush.bf16.msra.mxu2 %v4697_v42  ;;  %v4781_v8 = vor.u32 %v5548_v6, %v4780_v5  ;;  %v4937_v31 = vor.u32 %v5587_v30, %v4936_v28  ;;  %v4924_v32 = vld [vmem:[#allocation4 + $0x1e8] sm:$0xf]  ;;  %v5584_v33 = vld [vmem:[#allocation4 + $0x1f0] sm:$0xf0] }
 0x652   :  { %2035 = vmatpush.bf16.msra.mxu0 %v4777_v46  ;;  %v4912_v34 = vld [vmem:[#allocation4 + $0x1d0] sm:$0xf]  ;;  %v5581_v35 = vld [vmem:[#allocation4 + $0x1d8] sm:$0xf0]  ;;  %v4900_v37 = vld [vmem:[#allocation4 + $0x1b8] sm:$0xf] }
 0x653   :  { %2069 = vmatpush.bf16.msra.mxu3 %v4841_v29  ;;  %v4948_v29 = vld [vmem:[#allocation4 + $0x218] sm:$0xf]  ;;  %v4913_v36 = vor.u32 %v5581_v35, %v4912_v34  ;;  %v4888_v39 = vld [vmem:[#allocation4 + $0x1a0] sm:$0xf]  ;;  %v5575_v10 = vld [vmem:[#allocation4 + $0x1a8] sm:$0xf0] }
 0x654   :  { %v4949_v60 = vor.u32 %v5590_v27, %v4948_v29  ;;  %v4876_v40 = vld [vmem:[#allocation4 + $0x188] sm:$0xf]  ;;  %v5572_v46 = vld [vmem:[#allocation4 + $0x190] sm:$0xf0] }
 0x655   :  { %2044 = vmatpush.bf16.msra.mxu1 %v4921_v9  ;;  %2061 = vmatpush.bf16.msra.mxu2 %v4685_v55  ;;  %v4925_v9 = vor.u32 %v5584_v33, %v4924_v32 }
 0x656   :  { %v1432_v12 = vld.sshfl [vmem:[#allocation1 + $0x20] sm:$0xff pattern:$0x73625140] }
 0x657   :  { %1444 = vst [vmem:[#allocation1 + $0x20] ss:$4 sm:$0xff] %v6320_v62  ;;  %2070 = vmatpush.bf16.msra.mxu3 %v4829_v38  ;;  %v1434_v11 = vrot.slane %v1432_v12, 7  ;;  %v5578_v38 = vld [vmem:[#allocation4 + $0x1c0] sm:$0xf0]  ;;  %v4889_v12 = vor.u32 %v5575_v10, %v4888_v39 }
 0x658   :  { %1446 = vst [vmem:[#allocation1 + $0x21] ss:$4 sm:$0xff] %v6325_v63  ;;  %v4901_v24 = vor.u32 %v5578_v38, %v4900_v37 }
 0x659   :  { %2045 = vmatpush.bf16.msra.mxu1 %v4909_v7  ;;  %v1438_v15 = vsel %vm444_vm12, 0.0, %v1434_v11  ;;  %v4877_v7 = vor.u32 %v5572_v46, %v4876_v40 }
 0x65b   :  { %2071 = vmatpush.bf16.msra.mxu3 %v4817_v45  ;;  %v1584_v45 = vld [vmem:[%s7047_s8] sm:$0x7]  ;;  %s5908_s8 = smov 112  }
 0x65c   :  { %v1588_v52 = vperm.slane %v1584_v45, 2  ;;  %v1587_v53 = vperm.slane %v1584_v45, 1 }
 0x65d   :  { %2046 = vmatpush.bf16.msra.mxu1 %v4897_v51  ;;  %v1586_v51 = vperm.slane %v1584_v45, 0 }
 0x65f   :  { %v1447_v59 = vld.sshfl [vmem:[#allocation1 + $0x20] sm:$0xff pattern:$0x73625140]  ;;  %2072 = vmatpush.bf16.msra.mxu3 %v4805_v56 }
 0x660   :  { %1460 = vst [vmem:[#allocation1 + $0x20] ss:$4 sm:$0xff] %v6320_v62  ;;  %v1449_v2 = vrot.slane %v1447_v59, 1 }
 0x661   :  { %1462 = vst [vmem:[#allocation1 + $0x21] ss:$4 sm:$0xff] %v6325_v63  ;;  %2047 = vmatpush.bf16.msra.mxu1 %v4885_v61 }
 0x662   :  { %v1454_v4 = vsel %vm1452_vm1, %v1449_v2, 0.0 }
 0x663   :  { %1478 = vst [vmem:[#allocation1 + $0x11] ss:$2 sm:$0xff] %v1454_v4  ;;  %2073 = vmatpush.bf16.msra.mxu3 %v4793_v48 }
 0x665   :  { %2048 = vmatpush.bf16.msra.mxu1 %v4873_v0 }
 0x667   :  { %2074 = vmatpush.bf16.msra.mxu3 %v4781_v8 }
 0x668   :  { %v1463_v13 = vld.sshfl [vmem:[#allocation1 + $0x20] sm:$0xff pattern:$0x73625140] }
 0x669   :  { %v1469_v62 = vrot.slane %v1463_v13, 4 }
 0x66a   :  { %v1481_v17 = vld.sshfl [vmem:[#allocation1 + $0x10] sm:$0xff pattern:$0x75316420] }
 0x66b   :  { %v1471_v63 = vsel %vm470_vm13, %v1438_v15, %v1469_v62  ;;  %v1487_v18 = vpack.c.bf16 %v1481_v17, %v1481_v17 }
 0x66c   :  { %1474 = vst [vmem:[#allocation1 + $0x1] ss:$2 sm:$0xff] %v1471_v63 }
 0x66d   :  { %2010 = vmatmul.bf16.vlgmr.msrb.gmra.mxu2 %v1487_v18 }
 0x673   :  { %v1479_v21 = vld.sshfl [vmem:[#allocation1] sm:$0xff pattern:$0x75316420]  ;;  %v1480_v22 = vld.sshfl [vmem:[#allocation1 + $0x8] sm:$0xff pattern:$0x75316420] }
 0x674   :  { %v1485_v25 = vpack.c.bf16 %v1479_v21, %v1479_v21  ;;  %v1486_v26 = vpack.c.bf16 %v1480_v22, %v1480_v22 }
 0x676   :  { %1984 = vmatmul.bf16.vlgmr.msrb.gmra.mxu0 %v1485_v25  ;;  %1997 = vmatmul.bf16.vlgmr.msrb.gmra.mxu1 %v1486_v26 }
 0x677   :  { %2023 = vmatmul.bf16.vlgmr.msrb.gmra.mxu3 %v1485_v25  ;;  %2080 = vmatpush.bf16.msrb.mxu0 %v4961_v23 }
 0x67b   :  { %2081 = vmatpush.bf16.msrb.mxu0 %v4949_v60 }
 0x67d   :  { %2062 = vmatmul.bf16.vlgmr.msra.gmra.mxu2 %v1485_v25 }
 0x67f   :  { %2082 = vmatpush.bf16.msrb.mxu0 %v4937_v31 }
 0x683   :  { %2083 = vmatpush.bf16.msrb.mxu0 %v4925_v9 }
 0x686   :  { %2036 = vmatmul.bf16.vlgmr.msra.gmra.mxu0 %v1486_v26  ;;  %2049 = vmatmul.bf16.vlgmr.msra.gmra.mxu1 %v1487_v18 }
 0x687   :  { %2075 = vmatmul.bf16.vlgmr.msra.gmra.mxu3 %v1486_v26  ;;  %2084 = vmatpush.bf16.msrb.mxu0 %v4913_v36 }
 0x68b   :  { %2085 = vmatpush.bf16.msrb.mxu0 %v4901_v24 }
 0x68f   :  { %2086 = vmatpush.bf16.msrb.mxu0 %v4889_v12 }
 0x693   :  { %2087 = vmatpush.bf16.msrb.mxu0 %v4877_v7 }
 0x696   :  { %2088 = vmatmul.bf16.vlgmr.msrb.gmra.mxu0 %v1487_v18 }
 0x6f0   :  { %v2011_v41 = vpop.f32.mrf.mxu2 }
 0x6f3   :  { %v1985_v42 = vpop.f32.mrf.mxu0  ;;  %v1998_v16 = vpop.f32.mrf.mxu1 }
 0x6f4   :  { %v1986_v54 = vadd.f32 %v1985_v42, %v1586_v51 }
 0x6f6   :  { %v1999_v59 = vadd.f32 %v1998_v16, %v1986_v54 }
 0x6f8   :  { %v2013_v14 = vpop.f32.mrf.mxu2  ;;  %v2012_v2 = vadd.f32 %v2011_v41, %v1999_v59 }
 0x6fa   :  { %v2024_v47 = vpop.f32.mrf.mxu3 }
 0x6fb   :  { %v1987_v49 = vpop.f32.mrf.mxu0  ;;  %v2000_v50 = vpop.f32.mrf.mxu1  ;;  %v2025_v43 = vadd.f32 %v2024_v47, %v1587_v53 }
 0x700   :  { %v2063_v55 = vpop.f32.mrf.mxu2 }
 0x701   :  { %v2064_v56 = vadd.f32 %v2063_v55, %v1588_v52 }
 0x702   :  { %v2026_v44 = vpop.f32.mrf.mxu3 }
 0x703   :  { %v2037_v57 = vpop.f32.mrf.mxu0  ;;  %v2050_v58 = vpop.f32.mrf.mxu1 }
 0x704   :  { %v2038_v61 = vadd.f32 %v2037_v57, %v2025_v43 }
 0x706   :  { %v2051_v1 = vadd.f32 %v2050_v58, %v2038_v61 }
 0x708   :  { %v2095_v3 = vrot.slane %v2051_v1, 4  ;;  %v2065_v48 = vpop.f32.mrf.mxu2 }
 0x70a   :  { %v6340_v4 = vsel %vm470_vm13, %v2012_v2, %v2095_v3  ;;  %v2097_v5 = vsel %vm470_vm13, %v2095_v3, %v2012_v2  ;;  %v2076_v6 = vpop.f32.mrf.mxu3 }
 0x70b   :  { %v6343_v0 = vrot.slane %v2097_v5, 4  ;;  %2101 = vst [vmem:[#allocation1] ss:$2 sm:$0xff] %v6340_v4  ;;  %v2077_v8 = vadd.f32 %v2076_v6, %v2064_v56  ;;  %v2039_v11 = vpop.f32.mrf.mxu0  ;;  %v2052_v13 = vpop.f32.mrf.mxu1  ;;  %v2140_v62 = vmul.f32 %v6340_v4, %v6340_v4 }
 0x70d   :  { %2105 = vst [vmem:[#allocation1 + $0x10] ss:$2 sm:$0xff] %v6343_v0  ;;  %v2141_v18 = vmul.f32 %v6343_v0, %v6343_v0 }
 0x712   :  { %v2102_v15 = vld.sshfl [vmem:[#allocation1] sm:$0xff pattern:$0x75316420]  ;;  %v2103_v17 = vld.sshfl [vmem:[#allocation1 + $0x8] sm:$0xff pattern:$0x75316420]  ;;  %v2078_v63 = vpop.f32.mrf.mxu3 }
 0x713   :  { %2144 = vst [vmem:[#allocation1] ss:$2 sm:$0xff] %v2140_v62  ;;  %v2089_v19 = vpop.f32.mrf.mxu0  ;;  %v2112_v20 = vsel %vm470_vm13, %v2102_v15, 0.0  ;;  %v2119_v21 = vsel %vm470_vm13, %v2103_v17, 0.0 }
 0x714   :  { %v2106_v22 = vld.sshfl [vmem:[#allocation1 + $0x10] sm:$0xff pattern:$0x75316420]  ;;  %v2107_v23 = vld.sshfl [vmem:[#allocation1 + $0x18] sm:$0xff pattern:$0x75316420]  ;;  %v6353_v25 = vadd.f32 %v2089_v19, %v2077_v8 }
 0x715   :  { %2148 = vst [vmem:[#allocation1 + $0x10] ss:$2 sm:$0xff] %v2141_v18  ;;  %v2113_v26 = vrot.slane %v2112_v20, 4  ;;  %v2120_v29 = vrot.slane %v2119_v21, 4  ;;  %v2126_v27 = vsel %vm470_vm13, %v2106_v22, 0.0  ;;  %v2133_v60 = vsel %vm470_vm13, %v2107_v23, 0.0 }
 0x716   :  { %v2127_v28 = vrot.slane %v2126_v27, 4  ;;  %v2134_v30 = vrot.slane %v2133_v60, 4 }
 0x717   :  { %v2114_v31 = vadd.f32 %v2113_v26, %v2112_v20  ;;  %v2121_v32 = vadd.f32 %v2120_v29, %v2119_v21 }
 0x718   :  { %v2128_v33 = vadd.f32 %v2127_v28, %v2126_v27  ;;  %v2135_v9 = vadd.f32 %v2134_v30, %v2133_v60 }
 0x719   :  { %v2115_v34 = vrot.slane %v2114_v31, 2  ;;  %v2122_v35 = vrot.slane %v2121_v32, 2 }
 0x71a   :  { %v2145_v36 = vld.sshfl [vmem:[#allocation1] sm:$0xff pattern:$0x75316420]  ;;  %v2146_v37 = vld.sshfl [vmem:[#allocation1 + $0x8] sm:$0xff pattern:$0x75316420] }
 0x71b   :  { %v2091_v38 = vpop.f32.mrf.mxu0  ;;  %v2116_v24 = vadd.f32 %v2115_v34, %v2114_v31  ;;  %v2123_v39 = vadd.f32 %v2122_v35, %v2121_v32  ;;  %v2129_v10 = vrot.slane %v2128_v33, 2  ;;  %v2136_v12 = vrot.slane %v2135_v9, 2 }
 0x71c   :  { %v2149_v40 = vld.sshfl [vmem:[#allocation1 + $0x10] sm:$0xff pattern:$0x75316420]  ;;  %v2150_v46 = vld.sshfl [vmem:[#allocation1 + $0x18] sm:$0xff pattern:$0x75316420] }
 0x71d   :  { %v2117_v7 = vrot.slane %v2116_v24, 1  ;;  %v2124_v41 = vrot.slane %v2123_v39, 1  ;;  %v2130_v42 = vadd.f32 %v2129_v10, %v2128_v33  ;;  %v2137_v16 = vadd.f32 %v2136_v12, %v2135_v9 }
 0x71e   :  { %v2155_v14 = vsel %vm470_vm13, %v2145_v36, 0.0  ;;  %v2162_v45 = vsel %vm470_vm13, %v2146_v37, 0.0  ;;  %v2169_v47 = vsel %vm470_vm13, %v2149_v40, 0.0  ;;  %v2176_v49 = vsel %vm470_vm13, %v2150_v46, 0.0 }
 0x71f   :  { %v2118_v50 = vadd.f32 %v2117_v7, %v2116_v24  ;;  %v2125_v51 = vadd.f32 %v2124_v41, %v2123_v39  ;;  %v2131_v52 = vrot.slane %v2130_v42, 1  ;;  %v2138_v53 = vrot.slane %v2137_v16, 1 }
 0x720   :  { %v2156_v54 = vrot.slane %v2155_v14, 4  ;;  %v2163_v55 = vrot.slane %v2162_v45, 4  ;;  %v2170_v56 = vrot.slane %v2169_v47, 4  ;;  %v2177_v43 = vrot.slane %v2176_v49, 4 }
 0x721   :  { %v2183_v44 = vadd.f32 %v2125_v51, %v2118_v50  ;;  %v2132_v57 = vadd.f32 %v2131_v52, %v2130_v42  ;;  %v2139_v58 = vadd.f32 %v2138_v53, %v2137_v16 }
 0x722   :  { %v2157_v59 = vadd.f32 %v2156_v54, %v2155_v14  ;;  %v2164_v61 = vadd.f32 %v2163_v55, %v2162_v45  ;;  %v2171_v1 = vadd.f32 %v2170_v56, %v2169_v47  ;;  %v2178_v2 = vadd.f32 %v2177_v43, %v2176_v49 }
 0x723   :  { %2187 = vrot.lane.b32.xlu0 %v2183_v44, %s5905_s6  ;;  %v2184_v3 = vadd.f32 %v2139_v58, %v2132_v57 }
 0x724   :  { %v2158_v48 = vrot.slane %v2157_v59, 2  ;;  %v2165_v5 = vrot.slane %v2164_v61, 2  ;;  %v2172_v6 = vrot.slane %v2171_v1, 2  ;;  %v2179_v8 = vrot.slane %v2178_v2, 2 }
 0x725   :  { %2189 = vrot.lane.b32.xlu2 %v2184_v3, %s5905_s6 }
 0x726   :  { %v2159_v11 = vadd.f32 %v2158_v48, %v2157_v59  ;;  %v2166_v13 = vadd.f32 %v2165_v5, %v2164_v61  ;;  %v2173_v62 = vadd.f32 %v2172_v6, %v2171_v1  ;;  %v2180_v15 = vadd.f32 %v2179_v8, %v2178_v2 }
 0x728   :  { %v2160_v17 = vrot.slane %v2159_v11, 1  ;;  %v2167_v63 = vrot.slane %v2166_v13, 1  ;;  %v2174_v18 = vrot.slane %v2173_v62, 1  ;;  %v2181_v19 = vrot.slane %v2180_v15, 1 }
 0x72a   :  { %v2161_v20 = vadd.f32 %v2160_v17, %v2159_v11  ;;  %v2168_v21 = vadd.f32 %v2167_v63, %v2166_v13  ;;  %v2175_v22 = vadd.f32 %v2174_v18, %v2173_v62  ;;  %v2182_v23 = vadd.f32 %v2181_v19, %v2180_v15 }
 0x72c   :  { %v2215_v26 = vadd.f32 %v2168_v21, %v2161_v20  ;;  %v2216_v29 = vadd.f32 %v2182_v23, %v2175_v22 }
 0x72e   :  { %2219 = vrot.lane.b32.xlu1 %v2215_v26, %s5905_s6  ;;  %2221 = vrot.lane.b32.xlu0 %v2216_v29, %s5905_s6 }
 0x77f   :  { %v2190_v27 = vpop.permute.xlu2 %2189 }
 0x780   :  { %v2194_v60 = vadd.f32 %v2190_v27, %v2184_v3 }
 0x782   :  { %2199 = vrot.lane.b32.xlu1 %v2194_v60, %s5906_s20 }
 0x795   :  { %v2188_v28 = vpop.permute.xlu0 %2187 }
 0x796   :  { %v2193_v30 = vadd.f32 %v2188_v28, %v2183_v44 }
 0x798   :  { %2197 = vrot.lane.b32.xlu2 %v2193_v30, %s5906_s20 }
 0x7a0   :  { %v2220_v31 = vpop.permute.xlu1 %2219  ;;  %v2222_v32 = vpop.permute.xlu0 %2221 }
 0x7a1   :  { %v2225_v33 = vadd.f32 %v2220_v31, %v2215_v26  ;;  %v2226_v9 = vadd.f32 %v2222_v32, %v2216_v29  ;;  %v5050_v32 = vld [vmem:[#allocation6 + $0xa8] sm:$0xf] }
 0x7a3   :  { %2229 = vrot.lane.b32.xlu0 %v2225_v33, %s5906_s20  ;;  %2231 = vrot.lane.b32.xlu2 %v2226_v9, %s5906_s20 }
 0x7f2   :  { %v2198_v34 = vpop.permute.xlu2 %2197 }
 0x7f3   :  { %v2203_v35 = vadd.f32 %v2198_v34, %v2193_v30  ;;  %v5038_v34 = vld [vmem:[#allocation6 + $0x90] sm:$0xf] }
 0x7f4   :  { %v2200_v36 = vpop.permute.xlu1 %2199 }
 0x7f5   :  { %v2204_v37 = vadd.f32 %v2200_v36, %v2194_v60  ;;  %2207 = vrot.lane.b32.xlu1 %v2203_v35, %s5908_s8 }
 0x7f7   :  { %2209 = vrot.lane.b32.xlu0 %v2204_v37, %s5908_s8 }
 0x7fd   :  { %v2232_v38 = vpop.permute.xlu2 %2231 }
 0x7fe   :  { %v2236_v24 = vadd.f32 %v2232_v38, %v2226_v9  ;;  %v5610_v38 = vld [vmem:[#allocation6 + $0x80] sm:$0xf0] }
 0x800   :  { %2241 = vrot.lane.b32.xlu1 %v2236_v24, %s5908_s8 }
 0x815   :  { %v2230_v39 = vpop.permute.xlu0 %2229 }
 0x816   :  { %v2235_v10 = vadd.f32 %v2230_v39, %v2225_v33  ;;  %v5616_v33 = vld [vmem:[#allocation6 + $0xb0] sm:$0xf0] }
 0x817   :  { %v5051_v9 = vor.u32 %v5616_v33, %v5050_v32 }
 0x818   :  { %2239 = vrot.lane.b32.xlu2 %v2235_v10, %s5908_s8 }
 0x819   :  { %3036 = vmatpush.bf16.msrb.mxu1 %v5051_v9  ;;  %v4966_v9 = vld [vmem:[#allocation6] sm:$0xf] }
 0x867   :  { %v2208_v12 = vpop.permute.xlu1 %2207 }
 0x868   :  { %v2213_v40 = vadd.f32 %v2208_v12, %v2203_v35  ;;  %v5613_v35 = vld [vmem:[#allocation6 + $0x98] sm:$0xf0]  ;;  %v5014_v12 = vld [vmem:[#allocation6 + $0x60] sm:$0xf] }
 0x869   :  { %v2210_v46 = vpop.permute.xlu0 %2209  ;;  %v5039_v36 = vor.u32 %v5613_v35, %v5038_v34  ;;  %v5595_v34 = vld [vmem:[#allocation6 + $0x8] sm:$0xf0] }
 0x86a   :  { %v2247_v7 = vmul.f32 0.015625, %v2213_v40  ;;  %v2214_v41 = vadd.f32 %v2210_v46, %v2204_v37  ;;  %v5026_v37 = vld [vmem:[#allocation6 + $0x78] sm:$0xf]  ;;  %v5607_v40 = vld [vmem:[#allocation6 + $0x68] sm:$0xf0] }
 0x86b   :  { %3037 = vmatpush.bf16.msrb.mxu1 %v5039_v36 }
 0x86c   :  { %v2248_v42 = vmul.f32 0.015625, %v2214_v41  ;;  %2281 = vrot.lane.b32.xlu0 %v2247_v7, %s5909_s23  ;;  %v2251_v49 = vmul.f32 %v2247_v7, %v2247_v7  ;;  %v5015_v41 = vor.u32 %v5607_v40, %v5014_v12  ;;  %v5004_v40 = vld [vmem:[#allocation6 + $0x54] sm:$0xf0] }
 0x86e   :  { %2283 = vrot.lane.b32.xlu2 %v2248_v42, %s5909_s23  ;;  %v2252_v52 = vmul.f32 %v2248_v42, %v2248_v42 }
 0x872   :  { %v2240_v16 = vpop.permute.xlu2 %2239  ;;  %v2242_v14 = vpop.permute.xlu1 %2241 }
 0x873   :  { %v2245_v45 = vadd.f32 %v2240_v16, %v2235_v10  ;;  %v2246_v47 = vadd.f32 %v2242_v14, %v2236_v24  ;;  %v5027_v24 = vor.u32 %v5610_v38, %v5026_v37  ;;  %v5052_v16 = vld [vmem:[#allocation6 + $0xb4] sm:$0xf0]  ;;  %v4967_v37 = vor.u32 %v5595_v34, %v4966_v9 }
 0x874   :  { %v5218_v38 = vld [vmem:[#allocation6 + $0x1f8] sm:$0xf] }
 0x875   :  { %v2249_v50 = vmul.f32 0.015625, %v2245_v45  ;;  %v2250_v51 = vmul.f32 0.015625, %v2246_v47  ;;  %3038 = vmatpush.bf16.msrb.mxu1 %v5027_v24  ;;  %v5658_v24 = vld [vmem:[#allocation6 + $0x200] sm:$0xf0] }
 0x876   :  { %v5219_v12 = vor.u32 %v5658_v24, %v5218_v38  ;;  %v5154_v24 = vld [vmem:[#allocation6 + $0x170] sm:$0xf] }
 0x877   :  { %v2253_v53 = vsub.f32 %v2249_v50, %v2251_v49  ;;  %v2254_v54 = vsub.f32 %v2250_v51, %v2252_v52  ;;  %v5002_v49 = vld [vmem:[#allocation6 + $0x48] sm:$0xf]  ;;  %v5604_v50 = vld [vmem:[#allocation6 + $0x50] sm:$0xf0] }
 0x878   :  { %v5003_v51 = vor.u32 %v5604_v50, %v5002_v49  ;;  %v5612_v52 = vld [vmem:[#allocation6 + $0x94] sm:$0xf]  ;;  %v2365_v49 = vmul.f32 0.5, %v6343_v0 }
 0x879   :  { %v2255_v55 = vmax.f32 %v2253_v53, 0.0  ;;  %v2256_v56 = vmax.f32 %v2254_v54, 0.0  ;;  %3039 = vmatpush.bf16.msrb.mxu1 %v5015_v41  ;;  %v5040_v53 = vld [vmem:[#allocation6 + $0x9c] sm:$0xf0]  ;;  %v2364_v41 = vmul.f32 0.5, %v6340_v4 }
 0x87a   :  { %v5043_v54 = vor.u32 %v5612_v52, %v5040_v53  ;;  %v5206_v53 = vld [vmem:[#allocation6 + $0x1e0] sm:$0xf] }
 0x87b   :  { %v2257_v43 = vadd.f32 1e-05, %v2255_v55  ;;  %v2258_v44 = vadd.f32 1e-05, %v2256_v56 }
 0x87d   :  { %5766 = vrsqrt.f32 %v2257_v43  ;;  %vm2265_vm3 = vweird.f32 %v2257_v43  ;;  %vm2275_vm5 = vweird.f32 %v2258_v44  ;;  %3040 = vmatpush.bf16.msrb.mxu1 %v5003_v51 }
 0x87e   :  { %5768 = vrsqrt.f32 %v2258_v44 }
 0x883   :  { %v5767_v57 = vpop.eup %5766 }
 0x884   :  { %v5769_v58 = vpop.eup %5768  ;;  %v2260_v59 = vmul.f32 %v5767_v57, %v2257_v43  ;;  %vm2266_vm0 = vweird.f32 %v5767_v57  ;;  %v4990_v43 = vld [vmem:[#allocation6 + $0x30] sm:$0xf] }
 0x885   :  { %v2270_v61 = vmul.f32 %v5769_v58, %v2258_v44  ;;  %vm2276_vm2 = vweird.f32 %v5769_v58  ;;  %vm2267_vm4 = vmor %vm2265_vm3, %vm2266_vm0  ;;  %v5601_v44 = vld [vmem:[#allocation6 + $0x38] sm:$0xf0] }
 0x886   :  { %v2261_v1 = vmul.f32 %v5767_v57, %v2260_v59  ;;  %vm2277_vm8 = vmor %vm2275_vm5, %vm2276_vm2  ;;  %v5664_v59 = vld [vmem:[#allocation6 + $0x230] sm:$0xf0]  ;;  %vm2523_vm2 = vcmask 1046528  }
 0x887   :  { %v2271_v2 = vmul.f32 %v5769_v58, %v2270_v61  ;;  %v5609_v61 = vld [vmem:[#allocation6 + $0x7c] sm:$0xf]  ;;  %vm6516_vm3 = vmpackc.low %vm2523_vm2, %vm2523_vm2 }
 0x888   :  { %v2262_v3 = vmul.f32 0.5, %v2261_v1 }
 0x889   :  { %v2272_v48 = vmul.f32 0.5, %v2271_v2 }
 0x88a   :  { %v2263_v5 = vsub.f32 1.5, %v2262_v3  ;;  %v5028_v3 = vld [vmem:[#allocation6 + $0x84] sm:$0xf0] }
 0x88b   :  { %v2273_v6 = vsub.f32 1.5, %v2272_v48 }
 0x88c   :  { %v2264_v8 = vmul.f32 %v5767_v57, %v2263_v5 }
 0x88d   :  { %v2274_v11 = vmul.f32 %v5769_v58, %v2273_v6  ;;  %v5031_v6 = vor.u32 %v5609_v61, %v5028_v3 }
 0x88e   :  { %v2268_v13 = vsel %vm2267_vm4, %v5767_v57, %v2264_v8  ;;  %v4991_v57 = vor.u32 %v5601_v44, %v4990_v43  ;;  %v4992_v43 = vld [vmem:[#allocation6 + $0x3c] sm:$0xf0]  ;;  %v6410_v44 = vrot.slane %v6353_v25, 4 }
 0x88f   :  { %2312 = vrot.lane.b32.xlu1 %v2268_v13, %s5909_s23  ;;  %v2278_v62 = vsel %vm2277_vm8, %v5769_v58, %v2274_v11  ;;  %v5242_v58 = vld [vmem:[#allocation6 + $0x228] sm:$0xf] }
 0x890   :  { %2314 = vrot.lane.b32.xlu0 %v2278_v62, %s5909_s23  ;;  %v5243_v2 = vor.u32 %v5664_v59, %v5242_v58  ;;  %3041 = vmatpush.bf16.msrb.mxu1 %v4991_v57  ;;  %v5636_v57 = vld [vmem:[#allocation6 + $0x154] sm:$0xf]  ;;  %v5136_v58 = vld [vmem:[#allocation6 + $0x15c] sm:$0xf0] }
 0x892   :  { %3064 = vmatpush.bf16.msrb.mxu3 %v5243_v2 }
 0x8c8   :  { %v2284_v15 = vpop.permute.xlu2 %2283 }
 0x8c9   :  { %v2289_v17 = vsel %vm2287_vm14, %v2248_v42, %v2284_v15  ;;  %v5615_v42 = vld [vmem:[#allocation6 + $0xac] sm:$0xf]  ;;  %v5598_v15 = vld [vmem:[#allocation6 + $0x20] sm:$0xf0] }
 0x8ca   :  { %2294 = vrot.lane.b32.xlu1 %v2289_v17, %s5907_s21  ;;  %v5055_v14 = vor.u32 %v5615_v42, %v5052_v16 }
 0x8cc   :  { %3078 = vmatpush.bf16.msra.mxu0 %v5055_v14 }
 0x8d0   :  { %3079 = vmatpush.bf16.msra.mxu0 %v5043_v54  ;;  %v5655_v54 = vld [vmem:[#allocation6 + $0x1e8] sm:$0xf0] }
 0x8d4   :  { %3080 = vmatpush.bf16.msra.mxu0 %v5031_v6 }
 0x8de   :  { %v2282_v63 = vpop.permute.xlu0 %2281 }
 0x8df   :  { %v2288_v18 = vsel %vm2287_vm14, %v2247_v7, %v2282_v63 }
 0x8e0   :  { %2292 = vrot.lane.b32.xlu2 %v2288_v18, %s5907_s21 }
 0x901   :  { %v2313_v19 = vpop.permute.xlu1 %2312 }
 0x902   :  { %v2318_v20 = vsel %vm2287_vm14, %v2268_v13, %v2313_v19  ;;  %v2315_v21 = vpop.permute.xlu0 %2314  ;;  %v5230_v19 = vld [vmem:[#allocation6 + $0x210] sm:$0xf] }
 0x903   :  { %2322 = vrot.lane.b32.xlu0 %v2318_v20, %s5907_s21  ;;  %v2319_v22 = vsel %vm2287_vm14, %v2278_v62, %v2315_v21  ;;  %v4978_v62 = vld [vmem:[#allocation6 + $0x18] sm:$0xf] }
 0x904   :  { %2324 = vrot.lane.b32.xlu2 %v2319_v22, %s5907_s21 }
 0x93a   :  { %v2293_v23 = vpop.permute.xlu2 %2292 }
 0x93b   :  { %v2298_v26 = vsel %vm1266_vm6, %v2288_v18, %v2293_v23  ;;  %v4979_v18 = vor.u32 %v5598_v15, %v4978_v62  ;;  %v5606_v23 = vld [vmem:[#allocation6 + $0x64] sm:$0xf]  ;;  %v5597_v15 = vld [vmem:[#allocation6 + $0x1c] sm:$0xf] }
 0x93c   :  { %v2295_v29 = vpop.permute.xlu1 %2294  ;;  %2302 = vrot.lane.b32.xlu1 %v2298_v26, %s5905_s6 }
 0x93d   :  { %v2299_v27 = vsel %vm1266_vm6, %v2289_v17, %v2295_v29  ;;  %3042 = vmatpush.bf16.msrb.mxu1 %v4979_v18 }
 0x93e   :  { %2304 = vrot.lane.b32.xlu0 %v2299_v27, %s5905_s6 }
 0x941   :  { %3043 = vmatpush.bf16.msrb.mxu1 %v4967_v37  ;;  %v5112_v37 = vld [vmem:[#allocation6 + $0x12c] sm:$0xf0] }
 0x95e   :  { %v2325_v60 = vpop.permute.xlu2 %2324 }
 0x95f   :  { %v2329_v28 = vsel %vm1266_vm6, %v2319_v22, %v2325_v60 }
 0x960   :  { %2334 = vrot.lane.b32.xlu1 %v2329_v28, %s5905_s6 }
 0x975   :  { %v2323_v30 = vpop.permute.xlu0 %2322 }
 0x976   :  { %v2328_v31 = vsel %vm1266_vm6, %v2318_v20, %v2323_v30  ;;  %v5661_v20 = vld [vmem:[#allocation6 + $0x218] sm:$0xf0]  ;;  %v5640_v30 = vld [vmem:[#allocation6 + $0x170] sm:$0xf0] }
 0x977   :  { %2332 = vrot.lane.b32.xlu2 %v2328_v31, %s5905_s6  ;;  %v5231_v22 = vor.u32 %v5661_v20, %v5230_v19  ;;  %v4980_v20 = vld [vmem:[#allocation6 + $0x24] sm:$0xf0] }
 0x979   :  { %3065 = vmatpush.bf16.msrb.mxu3 %v5231_v22  ;;  %v5124_v22 = vld [vmem:[#allocation6 + $0x144] sm:$0xf0] }
 0x97d   :  { %3066 = vmatpush.bf16.msrb.mxu3 %v5219_v12 }
 0x9ae   :  { %v2303_v39 = vpop.permute.xlu1 %2302 }
 0x9af   :  { %v2308_v46 = vsel %vm1277_vm7, %v2298_v26, %v2303_v39  ;;  %v5016_v26 = vld [vmem:[#allocation6 + $0x6c] sm:$0xf0]  ;;  %v5603_v39 = vld [vmem:[#allocation6 + $0x4c] sm:$0xf] }
 0x9b0   :  { %v2305_v10 = vpop.permute.xlu0 %2304  ;;  %v2340_v45 = vperm.slane %v2308_v46, 0  ;;  %v5019_v60 = vor.u32 %v5606_v23, %v5016_v26  ;;  %v5639_v46 = vld [vmem:[#allocation6 + $0x16c] sm:$0xf]  ;;  %v5007_v16 = vor.u32 %v5603_v39, %v5004_v40  ;;  %v4983_v23 = vor.u32 %v5597_v15, %v4980_v20  ;;  %v5110_v26 = vld [vmem:[#allocation6 + $0x120] sm:$0xf] }
 0x9b1   :  { %v2309_v7 = vsel %vm1277_vm7, %v2299_v27, %v2305_v10  ;;  %v5641_v39 = vld [vmem:[#allocation6 + $0x178] sm:$0xf0]  ;;  %v5058_v15 = vld [vmem:[#allocation6 + $0xb0] sm:$0xf] }
 0x9b2   :  { %v2341_v47 = vperm.slane %v2309_v7, 0  ;;  %v2344_v55 = vrot.slane %v2340_v45, 4  ;;  %3081 = vmatpush.bf16.msra.mxu0 %v5019_v60  ;;  %v5148_v7 = vld [vmem:[#allocation6 + $0x174] sm:$0xf0]  ;;  %v5617_v20 = vld [vmem:[#allocation6 + $0xb8] sm:$0xf0] }
 0x9b3   :  { %v5151_v14 = vor.u32 %v5639_v46, %v5148_v7 }
 0x9b4   :  { %v2345_v56 = vrot.slane %v2341_v47, 4  ;;  %v2346_v8 = vsel %vm470_vm13, %v2340_v45, %v2344_v55  ;;  %v5134_v45 = vld [vmem:[#allocation6 + $0x150] sm:$0xf] }
 0x9b5   :  { %v2350_v29 = vsub.f32 %v6340_v4, %v2346_v8  ;;  %3092 = vmatpush.bf16.msra.mxu1 %v5151_v14  ;;  %v5207_v4 = vor.u32 %v5655_v54, %v5206_v53  ;;  %v5194_v8 = vld [vmem:[#allocation6 + $0x1c8] sm:$0xf]  ;;  %v5100_v54 = vld [vmem:[#allocation6 + $0x114] sm:$0xf0] }
 0x9b6   :  { %v2347_v17 = vsel %vm470_vm13, %v2341_v47, %v2345_v56  ;;  %v5637_v47 = vld [vmem:[#allocation6 + $0x158] sm:$0xf0]  ;;  %3082 = vmatpush.bf16.msra.mxu0 %v5007_v16  ;;  %v5600_v56 = vld [vmem:[#allocation6 + $0x34] sm:$0xf] }
 0x9b7   :  { %v5135_v51 = vor.u32 %v5637_v47, %v5134_v45  ;;  %3067 = vmatpush.bf16.msrb.mxu3 %v5207_v4  ;;  %v4995_v62 = vor.u32 %v5600_v56, %v4992_v43  ;;  %v5155_v45 = vor.u32 %v5641_v39, %v5154_v24  ;;  %v5646_v47 = vld [vmem:[#allocation6 + $0x1a0] sm:$0xf0]  ;;  %v5142_v4 = vld [vmem:[#allocation6 + $0x158] sm:$0xf]  ;;  %v2406_v43 = vrot.slane %v6410_v44, 4 }
 0x9b8   :  { %v5638_v56 = vld [vmem:[#allocation6 + $0x160] sm:$0xf0]  ;;  %v5632_v24 = vld [vmem:[#allocation6 + $0x130] sm:$0xf0]  ;;  %v5062_v39 = vld [vmem:[#allocation6 + $0xc0] sm:$0xf] }
 0x9ba   :  { %3083 = vmatpush.bf16.msra.mxu0 %v4995_v62  ;;  %v5088_v62 = vld [vmem:[#allocation6 + $0xfc] sm:$0xf0] }
 0x9be   :  { %3084 = vmatpush.bf16.msra.mxu0 %v4983_v23  ;;  %v5635_v23 = vld [vmem:[#allocation6 + $0x148] sm:$0xf0] }
 0x9d1   :  { %v2333_v1 = vpop.permute.xlu2 %2332 }
 0x9d2   :  { %v2338_v48 = vsel %vm1277_vm7, %v2328_v31, %v2333_v1  ;;  %v2335_v5 = vpop.permute.xlu1 %2334  ;;  %v2351_v31 = vsub.f32 %v6343_v0, %v2347_v17  ;;  %v5122_v1 = vld [vmem:[#allocation6 + $0x138] sm:$0xf] }
 0x9d3   :  { %v2352_v11 = vperm.slane %v2338_v48, 0  ;;  %v2339_v13 = vsel %vm1277_vm7, %v2329_v28, %v2335_v5  ;;  %v5146_v28 = vld [vmem:[#allocation6 + $0x168] sm:$0xf]  ;;  %v5634_v5 = vld [vmem:[#allocation6 + $0x140] sm:$0xf0] }
 0x9d4   :  { %v2353_v63 = vperm.slane %v2339_v13, 0  ;;  %v5147_v33 = vor.u32 %v5640_v30, %v5146_v28  ;;  %v5123_v18 = vor.u32 %v5634_v5, %v5122_v1  ;;  %v5643_v5 = vld [vmem:[#allocation6 + $0x188] sm:$0xf0] }
 0x9d5   :  { %v2356_v21 = vrot.slane %v2352_v11, 4 }
 0x9d6   :  { %v2357_v27 = vrot.slane %v2353_v63, 4  ;;  %3050 = vmatpush.bf16.msrb.mxu2 %v5147_v33  ;;  %v4968_v33 = vld [vmem:[#allocation6 + $0xc] sm:$0xf0] }
 0x9d7   :  { %v2358_v32 = vsel %vm470_vm13, %v2352_v11, %v2356_v21  ;;  %v5652_v11 = vld [vmem:[#allocation6 + $0x1d0] sm:$0xf0]  ;;  %v5633_v21 = vld [vmem:[#allocation6 + $0x13c] sm:$0xf] }
 0x9d8   :  { %v2362_v35 = vmul.f32 %v2358_v32, %v2350_v29  ;;  %v2359_v36 = vsel %vm470_vm13, %v2353_v63, %v2357_v27  ;;  %v5139_v63 = vor.u32 %v5636_v57, %v5136_v58  ;;  %v5195_v19 = vor.u32 %v5652_v11, %v5194_v8  ;;  %v5631_v29 = vld [vmem:[#allocation6 + $0x128] sm:$0xf0]  ;;  %v5182_v27 = vld [vmem:[#allocation6 + $0x1b0] sm:$0xf]  ;;  %v5594_v32 = vld [vmem:[#allocation6 + $0x4] sm:$0xf] }
 0x9d9   :  { %v2363_v10 = vmul.f32 %v2359_v36, %v2351_v31  ;;  %v5127_v28 = vor.u32 %v5633_v21, %v5124_v22  ;;  %v5111_v30 = vor.u32 %v5631_v29, %v5110_v26  ;;  %v5649_v31 = vld [vmem:[#allocation6 + $0x1b8] sm:$0xf0]  ;;  %v5630_v36 = vld [vmem:[#allocation6 + $0x124] sm:$0xf]  ;;  %v4971_v7 = vor.u32 %v5594_v32, %v4968_v33  ;;  %v5086_v58 = vld [vmem:[#allocation6 + $0xf0] sm:$0xf] }
 0x9da   :  { %v2366_v42 = vmul.f32 0.5, %v2362_v35  ;;  %3051 = vmatpush.bf16.msrb.mxu2 %v5135_v51  ;;  %3093 = vmatpush.bf16.msra.mxu1 %v5139_v63  ;;  %v5183_v35 = vor.u32 %v5649_v31, %v5182_v27  ;;  %v5115_v14 = vor.u32 %v5630_v36, %v5112_v37  ;;  %v5130_v21 = vld [vmem:[#allocation6 + $0x140] sm:$0xf]  ;;  %v5059_v22 = vor.u32 %v5617_v20, %v5058_v15  ;;  %v5074_v26 = vld [vmem:[#allocation6 + $0xd8] sm:$0xf] }
 0x9db   :  { %v2367_v50 = vmul.f32 0.5, %v2363_v10  ;;  %3068 = vmatpush.bf16.msrb.mxu3 %v5195_v19  ;;  %v5098_v10 = vld [vmem:[#allocation6 + $0x108] sm:$0xf]  ;;  %3085 = vmatpush.bf16.msra.mxu0 %v4971_v7  ;;  %v5622_v29 = vld [vmem:[#allocation6 + $0xe0] sm:$0xf0]  ;;  %v2407_v31 = vsel %vm470_vm13, %v6353_v25, %v6410_v44  ;;  %v5131_v33 = vor.u32 %v5635_v23, %v5130_v21 }
 0x9dc   :  { %v6405_v52 = vadd.f32 %v2366_v42, %v2364_v41  ;;  %v5628_v41 = vld [vmem:[#allocation6 + $0x110] sm:$0xf0]  ;;  %v5170_v42 = vld [vmem:[#allocation6 + $0x198] sm:$0xf] }
 0x9dd   :  { %v6407_v55 = vadd.f32 %v2367_v50, %v2365_v49  ;;  %v5627_v49 = vld [vmem:[#allocation6 + $0x10c] sm:$0xf]  ;;  %v5099_v51 = vor.u32 %v5628_v41, %v5098_v10  ;;  %v5171_v53 = vor.u32 %v5646_v47, %v5170_v42  ;;  %v5660_v15 = vld [vmem:[#allocation6 + $0x214] sm:$0xf] }
 0x9de   :  { %v2378_v0 = vmin.f32 %v6405_v52, 0.0  ;;  %v2370_v59 = vmax.f32 %v6405_v52, 0.0  ;;  %vm2372_vm15 = vcmp.gt.f32.partialorder %v6405_v52, 0.0  ;;  %v2374_v61 = vmul.f32 0.2, %v6405_v52  ;;  %3052 = vmatpush.bf16.msrb.mxu2 %v5123_v18  ;;  %3094 = vmatpush.bf16.msra.mxu1 %v5127_v28 }
 0x9df   :  { %v2371_v3 = vmax.f32 %v6407_v55, 0.0  ;;  %v2379_v48 = vmin.f32 %v6407_v55, 0.0  ;;  %5770 = vtanh.f32 %v6405_v52  ;;  %v2375_v6 = vmul.f32 0.2, %v6407_v55  ;;  %3069 = vmatpush.bf16.msrb.mxu3 %v5183_v35  ;;  %3134 = vmatpush.bf16.msrb.mxu0 %v5155_v45  ;;  %v5621_v28 = vld [vmem:[#allocation6 + $0xdc] sm:$0xf] }
 0x9e0   :  { %v2380_v2 = vmul.f32 1.442695, %v2378_v0  ;;  %vm2373_vm1 = vcmp.gt.f32.partialorder %v6407_v55, 0.0  ;;  %v2376_v17 = vsel %vm2372_vm15, %v6405_v52, %v2374_v61  ;;  %v2390_v9 = vmul.f32 0.25, %v2370_v59  ;;  %v5625_v59 = vld [vmem:[#allocation6 + $0xf8] sm:$0xf0] }
 0x9e1   :  { %v2382_v13 = vmul.f32 1.442695, %v2379_v48  ;;  %v2377_v60 = vsel %vm2373_vm1, %v6407_v55, %v2375_v6  ;;  %v2392_v34 = vmul.f32 0.25, %v2376_v17  ;;  %v2391_v40 = vmul.f32 0.25, %v2371_v3  ;;  %v5158_v48 = vld [vmem:[#allocation6 + $0x180] sm:$0xf] }
 0x9e2   :  { %5772 = vpow2.f32 %v2380_v2  ;;  %v2393_v46 = vmul.f32 0.25, %v2377_v60  ;;  %3053 = vmatpush.bf16.msrb.mxu2 %v5111_v30  ;;  %3095 = vmatpush.bf16.msra.mxu1 %v5115_v14  ;;  %v5103_v11 = vor.u32 %v5627_v49, %v5100_v54  ;;  %v5087_v18 = vor.u32 %v5625_v59, %v5086_v58  ;;  %v5076_v30 = vld [vmem:[#allocation6 + $0xe4] sm:$0xf0]  ;;  %v5619_v10 = vld [vmem:[#allocation6 + $0xc8] sm:$0xf0] }
 0x9e3   :  { %5774 = vpow2.f32 %v2382_v13  ;;  %v2394_v61 = vadd.f32 %v2392_v34, %v2390_v9  ;;  %v5143_v13 = vor.u32 %v5638_v56, %v5142_v4  ;;  %3070 = vmatpush.bf16.msrb.mxu3 %v5171_v53  ;;  %v5159_v19 = vor.u32 %v5643_v5, %v5158_v48  ;;  %v5046_v9 = vld [vmem:[#allocation6 + $0x98] sm:$0xf]  ;;  %v5614_v34 = vld [vmem:[#allocation6 + $0xa0] sm:$0xf0]  ;;  %v5118_v35 = vld [vmem:[#allocation6 + $0x128] sm:$0xf] }
 0x9e4   :  { %5776 = vtanh.f32 %v6407_v55  ;;  %v2395_v3 = vadd.f32 %v2393_v46, %v2391_v40  ;;  %v5047_v25 = vor.u32 %v5614_v34, %v5046_v9  ;;  %v5663_v40 = vld [vmem:[#allocation6 + $0x22c] sm:$0xf]  ;;  %v5244_v46 = vld [vmem:[#allocation6 + $0x234] sm:$0xf0]  ;;  %v5079_v42 = vor.u32 %v5621_v28, %v5076_v30  ;;  %v5064_v49 = vld [vmem:[#allocation6 + $0xcc] sm:$0xf0] }
 0x9e5   :  { %v5771_v38 = vpop.eup %5770  ;;  %3135 = vmatpush.bf16.msrb.mxu0 %v5143_v13  ;;  %v5119_v14 = vor.u32 %v5632_v24, %v5118_v35  ;;  %v5063_v45 = vor.u32 %v5619_v10, %v5062_v39  ;;  %v5247_v47 = vor.u32 %v5663_v40, %v5244_v46  ;;  %v5106_v56 = vld [vmem:[#allocation6 + $0x110] sm:$0xf]  ;;  %v5220_v24 = vld [vmem:[#allocation6 + $0x204] sm:$0xf0] }
 0x9e6   :  { %v2400_v2 = vmul.f32 0.25, %v5771_v38  ;;  %3054 = vmatpush.bf16.msrb.mxu2 %v5099_v51  ;;  %3096 = vmatpush.bf16.msra.mxu1 %v5103_v11  ;;  %v5075_v38 = vor.u32 %v5622_v29, %v5074_v26  ;;  %v5611_v51 = vld [vmem:[#allocation6 + $0x88] sm:$0xf0]  ;;  %v5626_v26 = vld [vmem:[#allocation6 + $0x100] sm:$0xf0] }
 0x9e7   :  { %3071 = vmatpush.bf16.msrb.mxu3 %v5159_v19  ;;  %v5094_v19 = vld [vmem:[#allocation6 + $0xf8] sm:$0xf]  ;;  %v5010_v39 = vld [vmem:[#allocation6 + $0x50] sm:$0xf] }
 0x9e8   :  { %v5773_v12 = vpop.eup %5772 }
 0x9e9   :  { %v4962_v16 = vadd.f32 -1.0, %v5773_v12  ;;  %v5775_v50 = vpop.eup %5774  ;;  %v2408_v12 = vsel %vm470_vm13, %v6410_v44, %v2406_v43  ;;  %3136 = vmatpush.bf16.msrb.mxu0 %v5131_v33  ;;  %v5629_v43 = vld [vmem:[#allocation6 + $0x118] sm:$0xf0]  ;;  %vm6485_vm13 = vmneg %vm444_vm12 }
 0x9ea   :  { %v4963_v57 = vadd.f32 -1.0, %v5775_v50  ;;  %v5777_v6 = vpop.eup %5776  ;;  %3055 = vmatpush.bf16.msrb.mxu2 %v5087_v18  ;;  %v5034_v50 = vld [vmem:[#allocation6 + $0x80] sm:$0xf]  ;;  %v5608_v18 = vld [vmem:[#allocation6 + $0x70] sm:$0xf0]  ;;  %vm6494_vm0 = vmpackc.low %vm6485_vm13, %vm6485_vm13 }
 0x9eb   :  { %v2386_v0 = vsel %vm2372_vm15, %v6405_v52, %v4962_v16  ;;  %v5624_v52 = vld [vmem:[#allocation6 + $0xf4] sm:$0xf]  ;;  %v2401_v60 = vmul.f32 0.25, %v5777_v6  ;;  %3120 = vmatpush.bf16.msra.mxu3 %v5059_v22  ;;  %v5618_v16 = vld [vmem:[#allocation6 + $0xc4] sm:$0xf] }
 0x9ec   :  { %v2396_v1 = vmul.f32 0.25, %v2386_v0  ;;  %v2387_v8 = vsel %vm2373_vm1, %v6407_v55, %v4963_v57  ;;  %v5091_v32 = vor.u32 %v5624_v52, %v5088_v62 }
 0x9ed   :  { %v2397_v63 = vmul.f32 0.25, %v2387_v8  ;;  %3137 = vmatpush.bf16.msrb.mxu0 %v5119_v14 }
 0x9ee   :  { %v2398_v17 = vadd.f32 %v2396_v1, %v2394_v61  ;;  %3097 = vmatpush.bf16.msra.mxu1 %v5091_v32  ;;  %3056 = vmatpush.bf16.msrb.mxu2 %v5075_v38  ;;  %v5067_v1 = vor.u32 %v5618_v16, %v5064_v49  ;;  %v5657_v32 = vld [vmem:[#allocation6 + $0x1fc] sm:$0xf]  ;;  %v5095_v38 = vor.u32 %v5626_v26, %v5094_v19 }
 0x9ef   :  { %v2399_v27 = vadd.f32 %v2397_v63, %v2395_v3  ;;  %3121 = vmatpush.bf16.msra.mxu3 %v5047_v25  ;;  %v5107_v3 = vor.u32 %v5629_v43, %v5106_v56  ;;  %v5022_v63 = vld [vmem:[#allocation6 + $0x68] sm:$0xf]  ;;  %v5223_v46 = vor.u32 %v5657_v32, %v5220_v24  ;;  %v5620_v43 = vld [vmem:[#allocation6 + $0xd0] sm:$0xf0] }
 0x9f0   :  { %v2402_v55 = vadd.f32 %v2400_v2, %v2398_v17  ;;  %v5035_v2 = vor.u32 %v5611_v51, %v5034_v50  ;;  %v5232_v17 = vld [vmem:[#allocation6 + $0x21c] sm:$0xf0]  ;;  %v5654_v50 = vld [vmem:[#allocation6 + $0x1e4] sm:$0xf]  ;;  %v5208_v51 = vld [vmem:[#allocation6 + $0x1ec] sm:$0xf0] }
 0x9f1   :  { %v2403_v37 = vadd.f32 %v2401_v60, %v2399_v27  ;;  %3138 = vmatpush.bf16.msrb.mxu0 %v5107_v3  ;;  %v5070_v56 = vld [vmem:[#allocation6 + $0xc8] sm:$0xf]  ;;  %v5599_v3 = vld [vmem:[#allocation6 + $0x28] sm:$0xf0] }
 0x9f2   :  { %v2411_v36 = vadd.f32 %v2407_v31, %v2402_v55  ;;  %3098 = vmatpush.bf16.msra.mxu1 %v5079_v42  ;;  %3057 = vmatpush.bf16.msrb.mxu2 %v5063_v45  ;;  %v5082_v45 = vld [vmem:[#allocation6 + $0xe0] sm:$0xf] }
 0x9f3   :  { %v2412_v41 = vadd.f32 %v2408_v12, %v2403_v37  ;;  %3122 = vmatpush.bf16.msra.mxu3 %v5035_v2  ;;  %v5023_v37 = vor.u32 %v5608_v18, %v5022_v63  ;;  %v5238_v18 = vld [vmem:[#allocation6 + $0x218] sm:$0xf] }
 0x9f4   :  { %v2415_v7 = vrot.slane %v2411_v36, 3 }
 0x9f5   :  { %v2416_v61 = vrot.slane %v2412_v41, 3  ;;  %3139 = vmatpush.bf16.msrb.mxu0 %v5095_v38 }
 0x9f6   :  { %v2417_v53 = vsel %vm444_vm12, %v2411_v36, %v2415_v7  ;;  %v2418_v44 = vsel %vm1386_vm10, %v2411_v36, %v2415_v7  ;;  %v2420_v54 = vsel %vm1383_vm9, %v2411_v36, %v2415_v7  ;;  %v2422_v4 = vsel %vm1388_vm11, %v2411_v36, %v2415_v7  ;;  %3106 = vmatpush.bf16.msra.mxu2 %v5247_v47  ;;  %v5605_v7 = vld [vmem:[#allocation6 + $0x58] sm:$0xf0]  ;;  %v5623_v47 = vld [vmem:[#allocation6 + $0xe8] sm:$0xf0] }
 0x9f7   :  { %v2419_v0 = vrot.slane %v2418_v44, 1  ;;  %v2421_v57 = vrot.slane %v2420_v54, 2  ;;  %v2423_v58 = vrot.slane %v2422_v4, 3  ;;  %v2439_v59 = vrot.slane %v2417_v53, 1  ;;  %3099 = vmatpush.bf16.msra.mxu1 %v5067_v1  ;;  %3123 = vmatpush.bf16.msra.mxu3 %v5023_v37  ;;  %v4998_v44 = vld [vmem:[#allocation6 + $0x38] sm:$0xf] }
 0x9f8   :  { %v2424_v11 = vsel %vm444_vm12, %v2412_v41, %v2416_v61  ;;  %v2425_v13 = vsel %vm1386_vm10, %v2412_v41, %v2416_v61  ;;  %v2427_v52 = vsel %vm1383_vm9, %v2412_v41, %v2416_v61  ;;  %v2429_v62 = vsel %vm1388_vm11, %v2412_v41, %v2416_v61  ;;  %v5602_v54 = vld [vmem:[#allocation6 + $0x40] sm:$0xf0]  ;;  %v4986_v61 = vld [vmem:[#allocation6 + $0x20] sm:$0xf]  ;;  %v5250_v1 = vld [vmem:[#allocation6 + $0x230] sm:$0xf] }
 0x9f9   :  { %v2440_v48 = vrot.slane %v2419_v0, 1  ;;  %v2441_v5 = vrot.slane %v2421_v57, 1  ;;  %v2442_v6 = vrot.slane %v2423_v58, 1  ;;  %v2447_v8 = vperm.slane %v2439_v59, 0  ;;  %v5196_v59 = vld [vmem:[#allocation6 + $0x1d4] sm:$0xf0] }
 0x9fa   :  { %v2426_v29 = vrot.slane %v2425_v13, 1  ;;  %v2428_v55 = vrot.slane %v2427_v52, 2  ;;  %v2430_v27 = vrot.slane %v2429_v62, 3  ;;  %v2443_v60 = vrot.slane %v2424_v11, 1  ;;  %v5184_v13 = vld [vmem:[#allocation6 + $0x1bc] sm:$0xf0] }
 0x9fb   :  { %v2448_v20 = vperm.slane %v2440_v48, 0  ;;  %v2449_v21 = vperm.slane %v2441_v5, 0  ;;  %v2450_v22 = vperm.slane %v2442_v6, 0  ;;  %v6449_v23 = vsel %vm444_vm12, %v2417_v53, %v2447_v8  ;;  %v5665_v5 = vld [vmem:[#allocation6 + $0x238] sm:$0xf0] }
 0x9fc   :  { %2479 = vst [vmem:[#allocation1] ss:$4 sm:$0xff] %v6449_v23  ;;  %v2444_v33 = vrot.slane %v2426_v29, 1  ;;  %v2445_v9 = vrot.slane %v2428_v55, 1  ;;  %v2446_v34 = vrot.slane %v2430_v27, 1  ;;  %v2451_v35 = vperm.slane %v2443_v60, 0 }
 0x9fd   :  { %v6453_v28 = vsel %vm444_vm12, %v2419_v0, %v2448_v20  ;;  %v6456_v30 = vsel %vm444_vm12, %v2421_v57, %v2449_v21  ;;  %v6459_v31 = vsel %vm444_vm12, %v2423_v58, %v2450_v22  ;;  %v5235_v36 = vor.u32 %v5660_v15, %v5232_v17  ;;  %v5651_v58 = vld [vmem:[#allocation6 + $0x1cc] sm:$0xf]  ;;  %v5648_v8 = vld [vmem:[#allocation6 + $0x1b4] sm:$0xf]  ;;  %v4974_v15 = vld [vmem:[#allocation6 + $0x8] sm:$0xf] }
 0x9fe   :  { %2481 = vst [vmem:[#allocation1 + $0x1] ss:$4 sm:$0xff] %v6453_v28  ;;  %v2452_v10 = vperm.slane %v2444_v33, 0  ;;  %v2453_v12 = vperm.slane %v2445_v9, 0  ;;  %v2454_v25 = vperm.slane %v2446_v34, 0  ;;  %v6465_v40 = vsel %vm444_vm12, %v2424_v11, %v2451_v35 }
 0x9ff   :  { %2483 = vst [vmem:[#allocation1 + $0x2] ss:$4 sm:$0xff] %v6456_v30  ;;  %3107 = vmatpush.bf16.msra.mxu2 %v5235_v36  ;;  %v5011_v14 = vor.u32 %v5605_v7, %v5010_v39  ;;  %v5083_v49 = vor.u32 %v5623_v47, %v5082_v45  ;;  %v5211_v53 = vor.u32 %v5654_v50, %v5208_v51  ;;  %v5596_v20 = vld [vmem:[#allocation6 + $0x10] sm:$0xf0]  ;;  %v5662_v22 = vld [vmem:[#allocation6 + $0x220] sm:$0xf0] }
 0xa00   :  { %2485 = vst [vmem:[#allocation1 + $0x3] ss:$4 sm:$0xff] %v6459_v31  ;;  %v6469_v41 = vsel %vm444_vm12, %v2426_v29, %v2452_v10  ;;  %v6472_v42 = vsel %vm444_vm12, %v2428_v55, %v2453_v12  ;;  %v6475_v16 = vsel %vm444_vm12, %v2430_v27, %v2454_v25  ;;  %v4999_v4 = vor.u32 %v5602_v54, %v4998_v44  ;;  %v5645_v29 = vld [vmem:[#allocation6 + $0x19c] sm:$0xf]  ;;  %v5172_v55 = vld [vmem:[#allocation6 + $0x1a4] sm:$0xf0] }
 0xa01   :  { %2488 = vst [vmem:[#allocation1 + $0x20] ss:$4 sm:$0xff] %v6465_v40  ;;  %3124 = vmatpush.bf16.msra.mxu3 %v5011_v14  ;;  %3140 = vmatpush.bf16.msrb.mxu0 %v5083_v49  ;;  %v5071_v57 = vor.u32 %v5620_v43, %v5070_v56  ;;  %v5199_v2 = vor.u32 %v5651_v58, %v5196_v59  ;;  %v5226_v27 = vld [vmem:[#allocation6 + $0x200] sm:$0xf]  ;;  %v5659_v33 = vld [vmem:[#allocation6 + $0x208] sm:$0xf0] }
 0xa02   :  { %2490 = vst [vmem:[#allocation1 + $0x21] ss:$4 sm:$0xff] %v6469_v41  ;;  %v4987_v6 = vor.u32 %v5599_v3, %v4986_v61  ;;  %v5251_v63 = vor.u32 %v5665_v5, %v5250_v1  ;;  %v5187_v19 = vor.u32 %v5648_v8, %v5184_v13  ;;  %v4975_v26 = vor.u32 %v5596_v20, %v4974_v15  ;;  %v5642_v34 = vld [vmem:[#allocation6 + $0x184] sm:$0xf]  ;;  %v5160_v35 = vld [vmem:[#allocation6 + $0x18c] sm:$0xf0] }
 0xa03   :  { %2492 = vst [vmem:[#allocation1 + $0x22] ss:$4 sm:$0xff] %v6472_v42  ;;  %3108 = vmatpush.bf16.msra.mxu2 %v5223_v46  ;;  %v5239_v32 = vor.u32 %v5662_v22, %v5238_v18  ;;  %v5175_v9 = vor.u32 %v5645_v29, %v5172_v55  ;;  %v5227_v36 = vor.u32 %v5659_v33, %v5226_v27  ;;  %v5214_v37 = vld [vmem:[#allocation6 + $0x1e8] sm:$0xf]  ;;  %v5656_v39 = vld [vmem:[#allocation6 + $0x1f0] sm:$0xf0] }
 0xa04   :  { %2494 = vst [vmem:[#allocation1 + $0x23] ss:$4 sm:$0xff] %v6475_v16  ;;  %v5163_v38 = vor.u32 %v5642_v34, %v5160_v35  ;;  %v5202_v12 = vld [vmem:[#allocation6 + $0x1d0] sm:$0xf]  ;;  %v5653_v25 = vld [vmem:[#allocation6 + $0x1d8] sm:$0xf0] }
 0xa05   :  { %3125 = vmatpush.bf16.msra.mxu3 %v4999_v4  ;;  %3141 = vmatpush.bf16.msrb.mxu0 %v5071_v57  ;;  %v5190_v46 = vld [vmem:[#allocation6 + $0x1b8] sm:$0xf]  ;;  %v5650_v7 = vld [vmem:[#allocation6 + $0x1c0] sm:$0xf0]  ;;  %v5178_v47 = vld [vmem:[#allocation6 + $0x1a0] sm:$0xf] }
 0xa06   :  { %v5191_v45 = vor.u32 %v5650_v7, %v5190_v46  ;;  %v5647_v49 = vld [vmem:[#allocation6 + $0x1a8] sm:$0xf0]  ;;  %v5166_v50 = vld [vmem:[#allocation6 + $0x188] sm:$0xf]  ;;  %v5644_v51 = vld [vmem:[#allocation6 + $0x190] sm:$0xf0] }
 0xa07   :  { %v2486_v0 = vld.sshfl [vmem:[#allocation1] sm:$0xff pattern:$0x73625140]  ;;  %3109 = vmatpush.bf16.msra.mxu2 %v5211_v53  ;;  %v5167_v53 = vor.u32 %v5644_v51, %v5166_v50 }
 0xa08   :  { %2502 = vst [vmem:[#allocation1] ss:$4 sm:$0xff] %v6449_v23  ;;  %v2496_v52 = vrot.slane %v2486_v0, 7  ;;  %v6534_v54 = vld [vmem:[%s7049_s10] sm:$0x7]  ;;  %s5910_s10 = smov 120  }
 0xa09   :  { %2504 = vst [vmem:[#allocation1 + $0x1] ss:$4 sm:$0xff] %v6453_v28  ;;  %3126 = vmatpush.bf16.msra.mxu3 %v4987_v6  ;;  %v2646_v4 = vperm.slane %v6534_v54, 0  ;;  %v2647_v6 = vperm.slane %v6534_v54, 1 }
 0xa0a   :  { %2506 = vst [vmem:[#allocation1 + $0x2] ss:$4 sm:$0xff] %v6456_v30 }
 0xa0b   :  { %2508 = vst [vmem:[#allocation1 + $0x3] ss:$4 sm:$0xff] %v6459_v31  ;;  %v2495_v11 = vld.sshfl [vmem:[#allocation1 + $0x20] sm:$0xff pattern:$0x73625140]  ;;  %3110 = vmatpush.bf16.msra.mxu2 %v5199_v2 }
 0xa0c   :  { %2511 = vst [vmem:[#allocation1 + $0x20] ss:$4 sm:$0xff] %v6465_v40  ;;  %v2497_v62 = vrot.slane %v2495_v11, 7 }
 0xa0d   :  { %2513 = vst [vmem:[#allocation1 + $0x21] ss:$4 sm:$0xff] %v6469_v41  ;;  %3127 = vmatpush.bf16.msra.mxu3 %v4975_v26 }
 0xa0e   :  { %2515 = vst [vmem:[#allocation1 + $0x22] ss:$4 sm:$0xff] %v6472_v42  ;;  %v6499_v21 = vpack.c.bf16 %v2497_v62, %v2496_v52 }
 0xa0f   :  { %2517 = vst [vmem:[#allocation1 + $0x23] ss:$4 sm:$0xff] %v6475_v16  ;;  %3111 = vmatpush.bf16.msra.mxu2 %v5187_v19 }
 0xa10   :  { %5256 = vmatmul.msk.bf16.vlgmr.msrb.gmra.mxu1 %vm6494_vm0, %v6499_v21  ;;  %5264 = vmatmul.msk.bf16.vlgmr.msra.gmra.mxu0 %vm6494_vm0, %v6499_v21 }
 0xa11   :  { %3148 = vmatpush.bf16.msrb.mxu1 %v5251_v63 }
 0xa12   :  { %v2509_v60 = vld.sshfl [vmem:[#allocation1] sm:$0xff pattern:$0x73625140] }
 0xa13   :  { %2526 = vst [vmem:[#allocation1] ss:$4 sm:$0xff] %v6449_v23  ;;  %3112 = vmatpush.bf16.msra.mxu2 %v5175_v9  ;;  %v2519_v23 = vrot.slane %v2509_v60, 1 }
 0xa14   :  { %2528 = vst [vmem:[#allocation1 + $0x1] ss:$4 sm:$0xff] %v6453_v28 }
 0xa15   :  { %2530 = vst [vmem:[#allocation1 + $0x2] ss:$4 sm:$0xff] %v6456_v30  ;;  %3149 = vmatpush.bf16.msrb.mxu1 %v5239_v32 }
 0xa16   :  { %2532 = vst [vmem:[#allocation1 + $0x3] ss:$4 sm:$0xff] %v6459_v31  ;;  %v2518_v24 = vld.sshfl [vmem:[#allocation1 + $0x20] sm:$0xff pattern:$0x73625140]  ;;  %v5215_v31 = vor.u32 %v5656_v39, %v5214_v37 }
 0xa17   :  { %2535 = vst [vmem:[#allocation1 + $0x20] ss:$4 sm:$0xff] %v6465_v40  ;;  %v2520_v10 = vrot.slane %v2518_v24, 1  ;;  %3113 = vmatpush.bf16.msra.mxu2 %v5163_v38  ;;  %v5203_v40 = vor.u32 %v5653_v25, %v5202_v12 }
 0xa18   :  { %2537 = vst [vmem:[#allocation1 + $0x21] ss:$4 sm:$0xff] %v6469_v41 }
 0xa19   :  { %2539 = vst [vmem:[#allocation1 + $0x22] ss:$4 sm:$0xff] %v6472_v42  ;;  %v5258_v30 = vpack.c.bf16 %v2520_v10, %v2519_v23  ;;  %3150 = vmatpush.bf16.msrb.mxu1 %v5227_v36 }
 0xa1a   :  { %2541 = vst [vmem:[#allocation1 + $0x23] ss:$4 sm:$0xff] %v6475_v16  ;;  %v5179_v16 = vor.u32 %v5647_v49, %v5178_v47 }
 0xa1b   :  { %5259 = vmatmul.msk.bf16.vlgmr.msrb.gmra.mxu3 %vm6516_vm3, %v5258_v30 }
 0xa1d   :  { %3151 = vmatpush.bf16.msrb.mxu1 %v5215_v31  ;;  %v2533_v41 = vld.sshfl [vmem:[#allocation1] sm:$0xff pattern:$0x73625140] }
 0xa21   :  { %v2542_v14 = vld.sshfl [vmem:[#allocation1 + $0x20] sm:$0xff pattern:$0x73625140]  ;;  %3152 = vmatpush.bf16.msrb.mxu1 %v5203_v40 }
 0xa22   :  { %v2546_v42 = vpack.c.bf16 %v2542_v14, %v2533_v41 }
 0xa24   :  { %3058 = vmatmul.bf16.vlgmr.msrb.gmra.mxu2 %v2546_v42  ;;  %3100 = vmatmul.bf16.vlgmr.msra.gmra.mxu1 %v2546_v42 }
 0xa25   :  { %3142 = vmatmul.bf16.vlgmr.msrb.gmra.mxu0 %v2546_v42  ;;  %3153 = vmatpush.bf16.msrb.mxu1 %v5191_v45 }
 0xa29   :  { %3154 = vmatpush.bf16.msrb.mxu1 %v5179_v16 }
 0xa2b   :  { %5272 = vmatmul.msk.bf16.vlgmr.msra.gmra.mxu3 %vm6494_vm0, %v6499_v21 }
 0xa2d   :  { %3155 = vmatpush.bf16.msrb.mxu1 %v5167_v53 }
 0xa34   :  { %5267 = vmatmul.msk.bf16.vlgmr.msra.gmra.mxu2 %vm6516_vm3, %v5258_v30  ;;  %5275 = vmatmul.msk.bf16.vlgmr.msrb.gmra.mxu1 %vm6516_vm3, %v5258_v30  ;;  %vm3338_vm3 = vcmask 64512  }
 0xa8d   :  { %v3045_v44 = vpop.f32.mrf.mxu1  ;;  %v3087_v2 = vpop.f32.mrf.mxu0 }
 0xa8e   :  { %v3046_v56 = vadd.f32 %v3045_v44, %v2646_v4  ;;  %v3088_v17 = vadd.f32 %v3087_v2, %v2647_v6 }
 0xa95   :  { %v3047_v43 = vpop.f32.mrf.mxu1  ;;  %v3089_v29 = vpop.f32.mrf.mxu0 }
 0xa96   :  { %v3048_v1 = vadd.f32 %v3047_v43, %v2646_v4  ;;  %v3090_v35 = vadd.f32 %v3089_v29, %v2647_v6 }
 0xa9e   :  { %v3073_v0 = vpop.f32.mrf.mxu3 }
 0xaa1   :  { %v3101_v11 = vpop.f32.mrf.mxu1 }
 0xaa2   :  { %v3102_v19 = vadd.f32 %v3101_v11, %v3088_v17 }
 0xaa6   :  { %v3075_v13 = vpop.f32.mrf.mxu3 }
 0xaa7   :  { %v3059_v57 = vpop.f32.mrf.mxu2 }
 0xaa8   :  { %v3060_v58 = vadd.f32 %v3059_v57, %v3046_v56 }
 0xaa9   :  { %v3103_v33 = vpop.f32.mrf.mxu1 }
 0xaaa   :  { %v6537_v59 = vadd.f32 %v3073_v0, %v3060_v58  ;;  %v3104_v39 = vadd.f32 %v3103_v33, %v3090_v35 }
 0xaac   :  { %v3186_v61 = vmul.f32 %v6537_v59, %v6537_v59  ;;  %v3162_v5 = vrot.slane %v6537_v59, 4 }
 0xaae   :  { %v3190_v52 = vrot.slane %v3186_v61, 4  ;;  %v3163_v15 = vadd.f32 %v3162_v5, %v6537_v59 }
 0xaaf   :  { %v3061_v3 = vpop.f32.mrf.mxu2 }
 0xab0   :  { %v3062_v8 = vadd.f32 %v3061_v3, %v3048_v1  ;;  %v3191_v63 = vadd.f32 %v3190_v52, %v3186_v61  ;;  %v3164_v21 = vrot.slane %v3163_v15, 2 }
 0xab2   :  { %v6543_v62 = vadd.f32 %v3075_v13, %v3062_v8  ;;  %v3192_v55 = vrot.slane %v3191_v63, 2  ;;  %v3165_v9 = vadd.f32 %v3164_v21, %v3163_v15 }
 0xab4   :  { %v3188_v18 = vmul.f32 %v6543_v62, %v6543_v62  ;;  %v3174_v22 = vrot.slane %v6543_v62, 4  ;;  %v3193_v38 = vadd.f32 %v3192_v55, %v3191_v63  ;;  %v3166_v30 = vrot.slane %v3165_v9, 1 }
 0xab6   :  { %v3202_v27 = vrot.slane %v3188_v18, 4  ;;  %v3175_v34 = vadd.f32 %v3174_v22, %v6543_v62  ;;  %v3194_v46 = vrot.slane %v3193_v38, 1  ;;  %v3167_v47 = vadd.f32 %v3166_v30, %v3165_v9 }
 0xab7   :  { %v3115_v20 = vpop.f32.mrf.mxu2 }
 0xab8   :  { %v6549_v26 = vadd.f32 %v3115_v20, %v3102_v19  ;;  %v3203_v24 = vadd.f32 %v3202_v27, %v3188_v18  ;;  %v3176_v31 = vrot.slane %v3175_v34, 2  ;;  %v3195_v44 = vadd.f32 %v3194_v46, %v3193_v38 }
 0xaba   :  { %v3168_v60 = vrot.slane %v6549_v26, 4  ;;  %v3187_v32 = vmul.f32 %v6549_v26, %v6549_v26  ;;  %v3204_v7 = vrot.slane %v3203_v24, 2  ;;  %v3177_v49 = vadd.f32 %v3176_v31, %v3175_v34 }
 0xabc   :  { %v3169_v36 = vadd.f32 %v3168_v60, %v6549_v26  ;;  %v3196_v37 = vrot.slane %v3187_v32, 4  ;;  %v3205_v4 = vadd.f32 %v3204_v7, %v3203_v24  ;;  %v3178_v61 = vrot.slane %v3177_v49, 1 }
 0xabe   :  { %v3170_v23 = vrot.slane %v3169_v36, 2  ;;  %v3197_v10 = vadd.f32 %v3196_v37, %v3187_v32  ;;  %v3206_v5 = vrot.slane %v3205_v4, 1  ;;  %v3179_v8 = vadd.f32 %v3178_v61, %v3177_v49 }
 0xabf   :  { %v3117_v28 = vpop.f32.mrf.mxu2 }
 0xac0   :  { %v6556_v12 = vadd.f32 %v3117_v28, %v3104_v39  ;;  %v3171_v25 = vadd.f32 %v3170_v23, %v3169_v36  ;;  %v3198_v40 = vrot.slane %v3197_v10, 2  ;;  %v3207_v15 = vadd.f32 %v3206_v5, %v3205_v4 }
 0xac2   :  { %v3172_v41 = vrot.slane %v3171_v25, 1  ;;  %v3199_v14 = vadd.f32 %v3198_v40, %v3197_v10  ;;  %v3180_v45 = vrot.slane %v6556_v12, 4  ;;  %v3189_v42 = vmul.f32 %v6556_v12, %v6556_v12 }
 0xac4   :  { %v3173_v16 = vadd.f32 %v3172_v41, %v3171_v25  ;;  %v3200_v50 = vrot.slane %v3199_v14, 1  ;;  %v3181_v51 = vadd.f32 %v3180_v45, %v6556_v12  ;;  %v3208_v53 = vrot.slane %v3189_v42, 4 }
 0xac6   :  { %v3214_v56 = vadd.f32 %v3173_v16, %v3167_v47  ;;  %v3201_v43 = vadd.f32 %v3200_v50, %v3199_v14  ;;  %v3182_v0 = vrot.slane %v3181_v51, 2  ;;  %v3209_v57 = vadd.f32 %v3208_v53, %v3189_v42 }
 0xac8   :  { %3218 = vrot.lane.b32.xlu0 %v3214_v56, %s5905_s6  ;;  %v3256_v58 = vadd.f32 %v3201_v43, %v3195_v44  ;;  %v3183_v1 = vadd.f32 %v3182_v0, %v3181_v51  ;;  %v3210_v2 = vrot.slane %v3209_v57, 2 }
 0xaca   :  { %3260 = vrot.lane.b32.xlu2 %v3256_v58, %s5905_s6  ;;  %v3184_v3 = vrot.slane %v3183_v1, 1  ;;  %v3211_v6 = vadd.f32 %v3210_v2, %v3209_v57 }
 0xacc   :  { %v3185_v11 = vadd.f32 %v3184_v3, %v3183_v1  ;;  %v3212_v13 = vrot.slane %v3211_v6, 1 }
 0xace   :  { %v3215_v52 = vadd.f32 %v3185_v11, %v3179_v8  ;;  %v3213_v17 = vadd.f32 %v3212_v13, %v3211_v6 }
 0xad0   :  { %3220 = vrot.lane.b32.xlu1 %v3215_v52, %s5905_s6  ;;  %v3257_v63 = vadd.f32 %v3213_v17, %v3207_v15 }
 0xad2   :  { %3262 = vrot.lane.b32.xlu0 %v3257_v63, %s5905_s6 }
 0xb24   :  { %v3261_v18 = vpop.permute.xlu2 %3260 }
 0xb25   :  { %v3266_v19 = vadd.f32 %v3261_v18, %v3256_v58 }
 0xb27   :  { %3270 = vrot.lane.b32.xlu1 %v3266_v19, %s5906_s20 }
 0xb3a   :  { %v3219_v20 = vpop.permute.xlu0 %3218 }
 0xb3b   :  { %v3224_v21 = vadd.f32 %v3219_v20, %v3214_v56 }
 0xb3d   :  { %3228 = vrot.lane.b32.xlu2 %v3224_v21, %s5906_s20 }
 0xb42   :  { %v3221_v22 = vpop.permute.xlu1 %3220 }
 0xb43   :  { %v3225_v29 = vadd.f32 %v3221_v22, %v3215_v52 }
 0xb44   :  { %v3263_v55 = vpop.permute.xlu0 %3262 }
 0xb45   :  { %v3267_v27 = vadd.f32 %v3263_v55, %v3257_v63  ;;  %3230 = vrot.lane.b32.xlu0 %v3225_v29, %s5906_s20 }
 0xb47   :  { %3272 = vrot.lane.b32.xlu2 %v3267_v27, %s5906_s20 }
 0xb97   :  { %v3229_v60 = vpop.permute.xlu2 %3228 }
 0xb98   :  { %v3234_v32 = vadd.f32 %v3229_v60, %v3224_v21 }
 0xb99   :  { %v3271_v33 = vpop.permute.xlu1 %3270 }
 0xb9a   :  { %v3276_v9 = vadd.f32 %v3271_v33, %v3266_v19  ;;  %3238 = vrot.lane.b32.xlu1 %v3234_v32, %s5908_s8 }
 0xb9c   :  { %3280 = vrot.lane.b32.xlu0 %v3276_v9, %s5908_s8 }
 0xba1   :  { %v3273_v34 = vpop.permute.xlu2 %3272 }
 0xba2   :  { %v3277_v35 = vadd.f32 %v3273_v34, %v3267_v27 }
 0xba4   :  { %3282 = vrot.lane.b32.xlu1 %v3277_v35, %s5908_s8 }
 0xbb7   :  { %v3231_v36 = vpop.permute.xlu0 %3230 }
 0xbb8   :  { %v3235_v37 = vadd.f32 %v3231_v36, %v3225_v29 }
 0xbba   :  { %3240 = vrot.lane.b32.xlu2 %v3235_v37, %s5908_s8 }
 0xc0c   :  { %v3239_v38 = vpop.permute.xlu1 %3238 }
 0xc0d   :  { %v3244_v24 = vadd.f32 %v3239_v38, %v3234_v32 }
 0xc0e   :  { %v3281_v39 = vpop.permute.xlu0 %3280 }
 0xc0f   :  { %v3286_v23 = vadd.f32 %v3281_v39, %v3276_v9  ;;  %3248 = vrot.lane.b32.xlu0 %v3244_v24, %s5910_s10 }
 0xc11   :  { %3290 = vrot.lane.b32.xlu2 %v3286_v23, %s5910_s10 }
 0xc14   :  { %v3241_v10 = vpop.permute.xlu2 %3240 }
 0xc15   :  { %v3245_v28 = vadd.f32 %v3241_v10, %v3235_v37 }
 0xc16   :  { %v3283_v30 = vpop.permute.xlu1 %3282 }
 0xc17   :  { %v3287_v31 = vadd.f32 %v3283_v30, %v3277_v35  ;;  %3250 = vrot.lane.b32.xlu1 %v3245_v28, %s5910_s10 }
 0xc19   :  { %3292 = vrot.lane.b32.xlu0 %v3287_v31, %s5910_s10 }
 0xc6b   :  { %v3291_v25 = vpop.permute.xlu2 %3290 }
 0xc6c   :  { %v3296_v46 = vadd.f32 %v3291_v25, %v3286_v23 }
 0xc6e   :  { %v3300_v14 = vmul.f32 0.00390625, %v3296_v46 }
 0xc81   :  { %v3249_v40 = vpop.permute.xlu0 %3248 }
 0xc82   :  { %v3254_v7 = vadd.f32 %v3249_v40, %v3244_v24 }
 0xc84   :  { %v3298_v41 = vmul.f32 0.00390625, %v3254_v7 }
 0xc86   :  { %v3302_v45 = vmul.f32 %v3298_v41, %v3298_v41  ;;  %3332 = vrot.lane.b32.xlu2 %v3298_v41, %s5911_s26 }
 0xc88   :  { %v3304_v42 = vsub.f32 %v3300_v14, %v3302_v45 }
 0xc89   :  { %v3251_v47 = vpop.permute.xlu1 %3250 }
 0xc8a   :  { %v3306_v49 = vmax.f32 %v3304_v42, 0.0  ;;  %v3255_v16 = vadd.f32 %v3251_v47, %v3245_v28 }
 0xc8b   :  { %v3293_v50 = vpop.permute.xlu0 %3292 }
 0xc8c   :  { %v3308_v51 = vadd.f32 1e-05, %v3306_v49  ;;  %v3299_v53 = vmul.f32 0.00390625, %v3255_v16  ;;  %v3297_v44 = vadd.f32 %v3293_v50, %v3287_v31 }
 0xc8e   :  { %5778 = vrsqrt.f32 %v3308_v51  ;;  %v3303_v4 = vmul.f32 %v3299_v53, %v3299_v53  ;;  %v3301_v56 = vmul.f32 0.00390625, %v3297_v44  ;;  %3334 = vrot.lane.b32.xlu0 %v3299_v53, %s5911_s26  ;;  %vm3316_vm5 = vweird.f32 %v3308_v51 }
 0xc90   :  { %v3305_v43 = vsub.f32 %v3301_v56, %v3303_v4 }
 0xc92   :  { %v3307_v0 = vmax.f32 %v3305_v43, 0.0 }
 0xc94   :  { %v5779_v57 = vpop.eup %5778  ;;  %v3309_v58 = vadd.f32 1e-05, %v3307_v0 }
 0xc95   :  { %v3311_v61 = vmul.f32 %v5779_v57, %v3308_v51  ;;  %vm3317_vm4 = vweird.f32 %v5779_v57 }
 0xc96   :  { %5780 = vrsqrt.f32 %v3309_v58  ;;  %vm3318_vm8 = vmor %vm3316_vm5, %vm3317_vm4  ;;  %vm3326_vm1 = vweird.f32 %v3309_v58 }
 0xc97   :  { %v3312_v1 = vmul.f32 %v5779_v57, %v3311_v61 }
 0xc99   :  { %v3313_v2 = vmul.f32 0.5, %v3312_v1 }
 0xc9b   :  { %v3314_v3 = vsub.f32 1.5, %v3313_v2 }
 0xc9c   :  { %v5781_v5 = vpop.eup %5780 }
 0xc9d   :  { %v3321_v6 = vmul.f32 %v5781_v5, %v3309_v58  ;;  %v3315_v8 = vmul.f32 %v5779_v57, %v3314_v3  ;;  %vm3327_vm15 = vweird.f32 %v5781_v5 }
 0xc9e   :  { %vm3328_vm0 = vmor %vm3326_vm1, %vm3327_vm15  ;;  %vm5912_vm1 = vmmov 1  }
 0xc9f   :  { %v3319_v11 = vsel %vm3318_vm8, %v5779_v57, %v3315_v8  ;;  %v3322_v13 = vmul.f32 %v5781_v5, %v3321_v6  ;;  %v5673_v8 = vld [vmem:[%s7050_s11 + $0x38] sm:$0xff] }
 0xca0   :  { %3373 = vrot.lane.b32.xlu1 %v3319_v11, %s5911_s26  ;;  %3928 = vmatpush.bf16.msrb.mxu2 %v5673_v8 }
 0xca1   :  { %v3323_v52 = vmul.f32 0.5, %v3322_v13 }
 0xca3   :  { %v3324_v15 = vsub.f32 1.5, %v3323_v52 }
 0xca5   :  { %v3325_v17 = vmul.f32 %v5781_v5, %v3324_v15 }
 0xca7   :  { %v3329_v63 = vsel %vm3328_vm0, %v5781_v5, %v3325_v17  ;;  %v3425_v5 = vmul.f32 0.5, %v6543_v62  ;;  %v3424_v17 = vmul.f32 0.5, %v6549_v26  ;;  %vm6857_vm0 = vmpackc.low %vm5912_vm1, %vm6485_vm13 }
 0xca8   :  { %3375 = vrot.lane.b32.xlu2 %v3329_v63, %s5911_s26 }
 0xce0   :  { %v3333_v18 = vpop.permute.xlu2 %3332 }
 0xce1   :  { %v3339_v19 = vsel %vm3338_vm3, %v3298_v41, %v3333_v18 }
 0xce2   :  { %3343 = vrot.lane.b32.xlu1 %v3339_v19, %s5909_s23 }
 0xd00   :  { %v3335_v20 = vpop.permute.xlu0 %3334 }
 0xd01   :  { %v3340_v21 = vsel %vm3338_vm3, %v3299_v53, %v3335_v20  ;;  %v3426_v53 = vmul.f32 0.5, %v6556_v12  ;;  %v3129_v20 = vpop.f32.mrf.mxu3 }
 0xd02   :  { %v3376_v22 = vpop.permute.xlu2 %3375  ;;  %3345 = vrot.lane.b32.xlu2 %v3340_v21, %s5909_s23 }
 0xd03   :  { %v3380_v29 = vsel %vm3338_vm3, %v3329_v63, %v3376_v22  ;;  %v5672_v63 = vld [vmem:[%s7050_s11 + $0x30] sm:$0xff] }
 0xd04   :  { %3385 = vrot.lane.b32.xlu1 %v3380_v29, %s5909_s23  ;;  %3929 = vmatpush.bf16.msrb.mxu2 %v5672_v63 }
 0xd12   :  { %v3374_v55 = vpop.permute.xlu1 %3373 }
 0xd13   :  { %v3379_v27 = vsel %vm3338_vm3, %v3319_v11, %v3374_v55 }
 0xd14   :  { %3383 = vrot.lane.b32.xlu0 %v3379_v27, %s5909_s23 }
 0xd54   :  { %v3344_v60 = vpop.permute.xlu1 %3343 }
 0xd55   :  { %v3349_v32 = vsel %vm2287_vm14, %v3339_v19, %v3344_v60 }
 0xd56   :  { %3353 = vrot.lane.b32.xlu0 %v3349_v32, %s5907_s21 }
 0xd5c   :  { %v3346_v33 = vpop.permute.xlu2 %3345 }
 0xd5d   :  { %v3350_v9 = vsel %vm2287_vm14, %v3340_v21, %v3346_v33  ;;  %v5671_v21 = vld [vmem:[%s7050_s11 + $0x28] sm:$0xff] }
 0xd5e   :  { %3355 = vrot.lane.b32.xlu1 %v3350_v9, %s5907_s21  ;;  %3930 = vmatpush.bf16.msrb.mxu2 %v5671_v21 }
 0xd76   :  { %v3386_v34 = vpop.permute.xlu1 %3385 }
 0xd77   :  { %v3390_v35 = vsel %vm2287_vm14, %v3380_v29, %v3386_v34  ;;  %v3143_v34 = vpop.f32.mrf.mxu0 }
 0xd78   :  { %3395 = vrot.lane.b32.xlu0 %v3390_v35, %s5907_s21 }
 0xd86   :  { %v3384_v36 = vpop.permute.xlu0 %3383 }
 0xd87   :  { %v3389_v37 = vsel %vm2287_vm14, %v3379_v27, %v3384_v36 }
 0xd88   :  { %3393 = vrot.lane.b32.xlu2 %v3389_v37, %s5907_s21 }
 0xdc8   :  { %v3354_v38 = vpop.permute.xlu0 %3353 }
 0xdc9   :  { %v3359_v24 = vsel %vm1266_vm6, %v3349_v32, %v3354_v38  ;;  %v5670_v32 = vld [vmem:[%s7050_s11 + $0x20] sm:$0xff] }
 0xdca   :  { %3363 = vrot.lane.b32.xlu2 %v3359_v24, %s5905_s6  ;;  %3931 = vmatpush.bf16.msrb.mxu2 %v5670_v32 }
 0xdd0   :  { %v3356_v39 = vpop.permute.xlu1 %3355 }
 0xdd1   :  { %v3360_v23 = vsel %vm1266_vm6, %v3350_v9, %v3356_v39 }
 0xdd2   :  { %3365 = vrot.lane.b32.xlu0 %v3360_v23, %s5905_s6 }
 0xde2   :  { %v3394_v10 = vpop.permute.xlu2 %3393 }
 0xde3   :  { %v3399_v28 = vsel %vm1266_vm6, %v3389_v37, %v3394_v10 }
 0xde4   :  { %3403 = vrot.lane.b32.xlu1 %v3399_v28, %s5905_s6 }
 0xdea   :  { %v3396_v30 = vpop.permute.xlu0 %3395 }
 0xdeb   :  { %v3400_v31 = vsel %vm1266_vm6, %v3390_v35, %v3396_v30  ;;  %v2648_v35 = vperm.slane %v6534_v54, 2  ;;  %v6646_v54 = vld [vmem:[%s7050_s11 + $0xb8] sm:$0xff] }
 0xdec   :  { %3405 = vrot.lane.b32.xlu2 %v3400_v31, %s5905_s6  ;;  %3966 = vmatpush.bf16.msra.mxu0 %v6646_v54 }
 0xe24   :  { %v3364_v25 = vpop.permute.xlu2 %3363 }
 0xe25   :  { %v3369_v49 = vsel %vm1277_vm7, %v3359_v24, %v3364_v25  ;;  %v3131_v25 = vpop.f32.mrf.mxu3 }
 0xe26   :  { %v3411_v51 = vperm.slane %v3369_v49, 0 }
 0xe28   :  { %v3413_v0 = vsub.f32 %v6537_v59, %v3411_v51  ;;  %v3414_v57 = vsub.f32 %v6549_v26, %v3411_v51  ;;  %v5668_v51 = vld [vmem:[%s7050_s11 + $0x10] sm:$0xff] }
 0xe44   :  { %v3366_v40 = vpop.permute.xlu0 %3365 }
 0xe45   :  { %v3370_v46 = vsel %vm1277_vm7, %v3360_v23, %v3366_v40 }
 0xe46   :  { %v3412_v7 = vperm.slane %v3370_v46, 0  ;;  %v3406_v41 = vpop.permute.xlu2 %3405 }
 0xe47   :  { %v3410_v14 = vsel %vm1277_vm7, %v3400_v31, %v3406_v41  ;;  %v3130_v31 = vadd.f32 %v3129_v20, %v2648_v35 }
 0xe48   :  { %v3416_v45 = vsub.f32 %v6556_v12, %v3412_v7  ;;  %v3418_v42 = vperm.slane %v3410_v14, 0  ;;  %v3415_v16 = vsub.f32 %v6543_v62, %v3412_v7  ;;  %v3423_v12 = vmul.f32 0.5, %v6537_v59 }
 0xe4a   :  { %v3422_v47 = vmul.f32 %v3418_v42, %v3416_v45  ;;  %v3421_v44 = vmul.f32 %v3418_v42, %v3415_v16 }
 0xe4c   :  { %v3430_v50 = vmul.f32 0.5, %v3422_v47  ;;  %v3429_v61 = vmul.f32 0.5, %v3421_v44  ;;  %v3157_v47 = vpop.f32.mrf.mxu1 }
 0xe4e   :  { %v6604_v4 = vadd.f32 %v3430_v50, %v3426_v53  ;;  %v6615_v11 = vadd.f32 %v3429_v61, %v3425_v5  ;;  %v6667_v53 = vld [vmem:[%s7050_s11 + $0xb0] sm:$0xff]  ;;  %v3144_v61 = vadd.f32 %v3143_v34, %v3130_v31  ;;  %v5681_v34 = vld [vmem:[%s7050_s11 + $0x78] sm:$0xff] }
 0xe4f   :  { %3967 = vmatpush.bf16.msra.mxu0 %v6667_v53  ;;  %3947 = vmatpush.bf16.msrb.mxu3 %v5681_v34 }
 0xe50   :  { %v3454_v1 = vmin.f32 %v6604_v4, 0.0  ;;  %v3453_v62 = vmin.f32 %v6615_v11, 0.0  ;;  %v3446_v27 = vmul.f32 0.2, %v6604_v4  ;;  %vm3442_vm5 = vcmp.gt.f32.partialorder %v6604_v4, 0.0 }
 0xe51   :  { %v3438_v38 = vmax.f32 %v6604_v4, 0.0  ;;  %v3445_v40 = vmul.f32 0.2, %v6615_v11  ;;  %vm3441_vm15 = vcmp.gt.f32.partialorder %v6615_v11, 0.0 }
 0xe52   :  { %v3461_v13 = vmul.f32 1.442695, %v3454_v1  ;;  %v3459_v22 = vmul.f32 1.442695, %v3453_v62  ;;  %v3450_v24 = vsel %vm3442_vm5, %v6604_v4, %v3446_v27  ;;  %v3158_v27 = vadd.f32 %v3157_v47, %v3144_v61 }
 0xe53   :  { %v3478_v41 = vmul.f32 0.25, %v3438_v38  ;;  %v3482_v14 = vmul.f32 0.25, %v3450_v24 }
 0xe54   :  { %5782 = vpow2.f32 %v3461_v13 }
 0xe55   :  { %v3486_v1 = vadd.f32 %v3482_v14, %v3478_v41 }
 0xe56   :  { %v3404_v56 = vpop.permute.xlu1 %3403 }
 0xe57   :  { %v3409_v43 = vsel %vm1277_vm7, %v3399_v28, %v3404_v56  ;;  %v5669_v28 = vld [vmem:[%s7050_s11 + $0x18] sm:$0xff] }
 0xe58   :  { %v3417_v58 = vperm.slane %v3409_v43, 0  ;;  %3932 = vmatpush.bf16.msrb.mxu2 %v5669_v28  ;;  %v3437_v43 = vmax.f32 %v6615_v11, 0.0 }
 0xe5a   :  { %v3419_v2 = vmul.f32 %v3417_v58, %v3413_v0  ;;  %v3420_v3 = vmul.f32 %v3417_v58, %v3414_v57  ;;  %v5783_v55 = vpop.eup %5782 }
 0xe5b   :  { %v5279_v36 = vadd.f32 -1.0, %v5783_v55 }
 0xe5c   :  { %v3427_v6 = vmul.f32 0.5, %v3419_v2  ;;  %v3428_v52 = vmul.f32 0.5, %v3420_v3  ;;  %3933 = vmatpush.bf16.msrb.mxu2 %v5668_v51  ;;  %v6728_v51 = vld [vmem:[%s7050_s11 + $0x90] sm:$0xff] }
 0xe5d   :  { %v3470_v46 = vsel %vm3442_vm5, %v6604_v4, %v5279_v36  ;;  %v3159_v36 = vpop.f32.mrf.mxu1 }
 0xe5e   :  { %v3431_v15 = vadd.f32 %v3427_v6, %v3423_v12  ;;  %v6622_v59 = vadd.f32 %v3428_v52, %v3424_v17  ;;  %v3490_v56 = vmul.f32 0.25, %v3470_v46  ;;  %v3145_v12 = vpop.f32.mrf.mxu0  ;;  %v3449_v6 = vsel %vm3441_vm15, %v6615_v11, %v3445_v40  ;;  %v5667_v52 = vld [vmem:[%s7050_s11 + $0x8] sm:$0xff] }
 0xe60   :  { %v3451_v18 = vmin.f32 %v3431_v15, 0.0  ;;  %v3443_v29 = vmul.f32 0.2, %v3431_v15  ;;  %v3452_v26 = vmin.f32 %v6622_v59, 0.0  ;;  %vm3439_vm4 = vcmp.gt.f32.partialorder %v3431_v15, 0.0  ;;  %3934 = vmatpush.bf16.msrb.mxu2 %v5667_v52 }
 0xe61   :  { %v3435_v60 = vmax.f32 %v3431_v15, 0.0  ;;  %v3444_v39 = vmul.f32 0.2, %v6622_v59  ;;  %vm3440_vm8 = vcmp.gt.f32.partialorder %v6622_v59, 0.0  ;;  %v3436_v45 = vmax.f32 %v6622_v59, 0.0 }
 0xe62   :  { %v3455_v19 = vmul.f32 1.442695, %v3451_v18  ;;  %v3447_v33 = vsel %vm3439_vm4, %v3431_v15, %v3443_v29  ;;  %v3457_v9 = vmul.f32 1.442695, %v3452_v26  ;;  %v3494_v63 = vadd.f32 %v3490_v56, %v3486_v1  ;;  %v6742_v1 = vld [vmem:[%s7050_s11 + $0x88] sm:$0xff] }
 0xe63   :  { %v3475_v23 = vmul.f32 0.25, %v3435_v60  ;;  %v3479_v10 = vmul.f32 0.25, %v3447_v33  ;;  %v3448_v49 = vsel %vm3440_vm8, %v6622_v59, %v3444_v39  ;;  %v3476_v2 = vmul.f32 0.25, %v3436_v45  ;;  %v5666_v60 = vld [vmem:[%s7050_s11] sm:$0xff] }
 0xe64   :  { %5784 = vpow2.f32 %v3455_v19  ;;  %v3480_v3 = vmul.f32 0.25, %v3448_v49  ;;  %v3477_v19 = vmul.f32 0.25, %v3437_v43  ;;  %3935 = vmatpush.bf16.msrb.mxu2 %v5666_v60 }
 0xe65   :  { %5786 = vpow2.f32 %v3459_v22  ;;  %v3483_v16 = vadd.f32 %v3479_v10, %v3475_v23  ;;  %v3481_v22 = vmul.f32 0.25, %v3449_v6  ;;  %v6711_v23 = vld [vmem:[%s7050_s11 + $0x98] sm:$0xff] }
 0xe66   :  { %5788 = vtanh.f32 %v3431_v15  ;;  %v3484_v26 = vadd.f32 %v3480_v3, %v3476_v2  ;;  %v6747_v2 = vld [vmem:[%s7052_s13 + $0x38] sm:$0xff] }
 0xe67   :  { %5790 = vpow2.f32 %v3457_v9  ;;  %v3485_v24 = vadd.f32 %v3481_v22, %v3477_v19  ;;  %4086 = vmatpush.bf16.msra.mxu1 %v6747_v2 }
 0xe68   :  { %5792 = vtanh.f32 %v6604_v4  ;;  %v3132_v4 = vadd.f32 %v3131_v25, %v2648_v35  ;;  %5698 = vmatpush.bf16.msra.mxu2 %v6646_v54  ;;  %v5680_v25 = vld [vmem:[%s7050_s11 + $0x70] sm:$0xff] }
 0xe69   :  { %5794 = vtanh.f32 %v6622_v59  ;;  %3948 = vmatpush.bf16.msrb.mxu3 %v5680_v25 }
 0xe6a   :  { %v5785_v37 = vpop.eup %5784  ;;  %5796 = vtanh.f32 %v6615_v11  ;;  %v3146_v17 = vadd.f32 %v3145_v12, %v3132_v4 }
 0xe6b   :  { %v5276_v30 = vadd.f32 -1.0, %v5785_v37  ;;  %v5787_v7 = vpop.eup %5786 }
 0xe6c   :  { %v5789_v44 = vpop.eup %5788  ;;  %v5278_v0 = vadd.f32 -1.0, %v5787_v7  ;;  %v6705_v38 = vadd.f32 %v3159_v36, %v3146_v17  ;;  %5699 = vmatpush.bf16.msra.mxu2 %v6667_v53  ;;  %v5678_v17 = vld [vmem:[%s7050_s11 + $0x60] sm:$0xff] }
 0xe6d   :  { %v3467_v42 = vsel %vm3439_vm4, %v3431_v15, %v5276_v30  ;;  %v5791_v58 = vpop.eup %5790  ;;  %v3495_v13 = vmul.f32 0.25, %v5789_v44  ;;  %v6682_v15 = vld [vmem:[%s7050_s11 + $0xa8] sm:$0xff] }
 0xe6e   :  { %v3487_v50 = vmul.f32 0.25, %v3467_v42  ;;  %v5793_v5 = vpop.eup %5792  ;;  %v5277_v8 = vadd.f32 -1.0, %v5791_v58  ;;  %v3469_v18 = vsel %vm3441_vm15, %v6615_v11, %v5278_v0  ;;  %3968 = vmatpush.bf16.msra.mxu0 %v6682_v15  ;;  %v6697_v11 = vld [vmem:[%s7050_s11 + $0xa0] sm:$0xff]  ;;  %v5679_v44 = vld [vmem:[%s7050_s11 + $0x68] sm:$0xff] }
 0xe6f   :  { %v5795_v62 = vpop.eup %5794  ;;  %v3498_v29 = vmul.f32 0.25, %v5793_v5  ;;  %v3489_v32 = vmul.f32 0.25, %v3469_v18  ;;  %3949 = vmatpush.bf16.msrb.mxu3 %v5679_v44 }
 0xe70   :  { %v3491_v57 = vadd.f32 %v3487_v50, %v3483_v16  ;;  %v3468_v20 = vsel %vm3440_vm8, %v6622_v59, %v5277_v8  ;;  %v3496_v9 = vmul.f32 0.25, %v5795_v62  ;;  %v5797_v35 = vpop.eup %5796  ;;  %5700 = vmatpush.bf16.msra.mxu2 %v6682_v15  ;;  %v6783_v15 = vld [vmem:[%s7050_s11 + $0x80] sm:$0xff] }
 0xe71   :  { %v3488_v55 = vmul.f32 0.25, %v3468_v20  ;;  %v3502_v59 = vadd.f32 %v3498_v29, %v3494_v63  ;;  %v3493_v10 = vadd.f32 %v3489_v32, %v3485_v24  ;;  %v3497_v28 = vmul.f32 0.25, %v5797_v35  ;;  %v5676_v24 = vld [vmem:[%s7050_s11 + $0x50] sm:$0xff] }
 0xe72   :  { %v3499_v21 = vadd.f32 %v3495_v13, %v3491_v57  ;;  %3969 = vmatpush.bf16.msra.mxu0 %v6697_v11 }
 0xe73   :  { %v3492_v33 = vadd.f32 %v3488_v55, %v3484_v26  ;;  %v6714_v30 = vadd.f32 %v3502_v59, %v6705_v38  ;;  %v3501_v8 = vadd.f32 %v3497_v28, %v3493_v10  ;;  %3950 = vmatpush.bf16.msrb.mxu3 %v5678_v17  ;;  %v5677_v26 = vld [vmem:[%s7050_s11 + $0x58] sm:$0xff] }
 0xe74   :  { %v6702_v37 = vadd.f32 %v3499_v21, %v3158_v27  ;;  %5701 = vmatpush.bf16.msra.mxu2 %v6697_v11 }
 0xe75   :  { %v3500_v39 = vadd.f32 %v3496_v9, %v3492_v33  ;;  %v3546_v18 = vrot.slane %v6714_v30, 1  ;;  %v3547_v20 = vrot.slane %v6714_v30, 2  ;;  %v3505_v22 = vadd.f32 %v3501_v8, %v6705_v38 }
 0xe76   :  { %v3509_v40 = vrot.slane %v6702_v37, 1  ;;  %v3510_v46 = vrot.slane %v6702_v37, 2  ;;  %v3511_v54 = vrot.slane %v6702_v37, 3  ;;  %v3512_v7 = vrot.slane %v6702_v37, 4  ;;  %3970 = vmatpush.bf16.msra.mxu0 %v6711_v23 }
 0xe77   :  { %v3504_v31 = vadd.f32 %v3500_v39, %v3158_v27  ;;  %v3513_v57 = vrot.slane %v6702_v37, 5  ;;  %v3514_v13 = vrot.slane %v6702_v37, 6  ;;  %v3515_v63 = vrot.slane %v6702_v37, 7  ;;  %3951 = vmatpush.bf16.msrb.mxu3 %v5677_v26  ;;  %v5696_v39 = vld [vmem:[%s7052_s13 + $0x30] sm:$0xff] }
 0xe78   :  { %v3548_v29 = vrot.slane %v6714_v30, 3  ;;  %v3549_v55 = vrot.slane %v6714_v30, 4  ;;  %v3561_v27 = vperm.slane %v6714_v30, 0  ;;  %v3550_v60 = vrot.slane %v6714_v30, 5  ;;  %5702 = vmatpush.bf16.msra.mxu2 %v6711_v23  ;;  %4087 = vmatpush.bf16.msra.mxu1 %v5696_v39 }
 0xe79   :  { %v3539_v41 = vrot.slane %v3504_v31, 1  ;;  %v3540_v14 = vrot.slane %v3504_v31, 2  ;;  %v3541_v45 = vrot.slane %v3504_v31, 3  ;;  %v3542_v42 = vrot.slane %v3504_v31, 4 }
 0xe7a   :  { %v3543_v47 = vrot.slane %v3504_v31, 5  ;;  %v3544_v49 = vrot.slane %v3504_v31, 6  ;;  %v3545_v16 = vrot.slane %v3504_v31, 7  ;;  %v3553_v50 = vperm.slane %v3504_v31, 0  ;;  %3971 = vmatpush.bf16.msra.mxu0 %v6728_v51 }
 0xe7b   :  { %v3554_v4 = vperm.slane %v3539_v41, 0  ;;  %v3555_v56 = vperm.slane %v3540_v14, 0  ;;  %v3556_v43 = vperm.slane %v3541_v45, 0  ;;  %v3557_v0 = vperm.slane %v3542_v42, 0  ;;  %3952 = vmatpush.bf16.msrb.mxu3 %v5676_v24  ;;  %v5675_v45 = vld [vmem:[%s7050_s11 + $0x48] sm:$0xff] }
 0xe7c   :  { %v3558_v53 = vperm.slane %v3543_v47, 0  ;;  %v3559_v58 = vperm.slane %v3544_v49, 0  ;;  %v6736_v61 = vsel %vm444_vm12, %v6702_v37, %v3553_v50  ;;  %v3560_v3 = vperm.slane %v3545_v16, 0  ;;  %5703 = vmatpush.bf16.msra.mxu2 %v6728_v51  ;;  %v5694_v51 = vld [vmem:[%s7052_s13 + $0x20] sm:$0xff] }
 0xe7d   :  { %v6750_v5 = vsel %vm444_vm12, %v3509_v40, %v3554_v4  ;;  %v6753_v12 = vsel %vm444_vm12, %v3510_v46, %v3555_v56  ;;  %v6756_v6 = vsel %vm444_vm12, %v3511_v54, %v3556_v43  ;;  %3617 = vst [vmem:[#allocation1] ss:$4 sm:$0xff] %v6736_v61  ;;  %v6761_v52 = vsel %vm444_vm12, %v3512_v7, %v3557_v0  ;;  %v5695_v46 = vld [vmem:[%s7052_s13 + $0x28] sm:$0xff]  ;;  %v5674_v0 = vld [vmem:[%s7050_s11 + $0x40] sm:$0xff] }
 0xe7e   :  { %3619 = vst [vmem:[#allocation1 + $0x1] ss:$4 sm:$0xff] %v6750_v5  ;;  %v6770_v62 = vsel %vm444_vm12, %v3513_v57, %v3558_v53  ;;  %v6776_v19 = vsel %vm444_vm12, %v3514_v13, %v3559_v58  ;;  %3972 = vmatpush.bf16.msra.mxu0 %v6742_v1  ;;  %v6787_v21 = vsel %vm444_vm12, %v3515_v63, %v3560_v3  ;;  %v3562_v32 = vperm.slane %v3546_v18, 0  ;;  %v5692_v13 = vld [vmem:[%s7052_s13 + $0x10] sm:$0xff] }
 0xe7f   :  { %3621 = vst [vmem:[#allocation1 + $0x2] ss:$4 sm:$0xff] %v6753_v12  ;;  %v3551_v59 = vrot.slane %v6714_v30, 6  ;;  %v3563_v11 = vperm.slane %v3547_v20, 0  ;;  %v3516_v33 = vrot.slane %v3505_v22, 1  ;;  %v3517_v9 = vrot.slane %v3505_v22, 2  ;;  %4088 = vmatpush.bf16.msra.mxu1 %v5695_v46  ;;  %3953 = vmatpush.bf16.msrb.mxu3 %v5675_v45 }
 0xe80   :  { %3623 = vst [vmem:[#allocation1 + $0x3] ss:$4 sm:$0xff] %v6756_v6  ;;  %v3552_v34 = vrot.slane %v6714_v30, 7  ;;  %v3564_v35 = vperm.slane %v3548_v29, 0  ;;  %v3565_v36 = vperm.slane %v3549_v55, 0  ;;  %v6807_v37 = vsel %vm444_vm12, %v3505_v22, %v3561_v27  ;;  %5704 = vmatpush.bf16.msra.mxu2 %v6742_v1  ;;  %v5690_v55 = vld [vmem:[%s7052_s13] sm:$0xff] }
 0xe81   :  { %3625 = vst [vmem:[#allocation1 + $0x20] ss:$4 sm:$0xff] %v6761_v52  ;;  %v3518_v10 = vrot.slane %v3505_v22, 3  ;;  %v3566_v28 = vperm.slane %v3550_v60, 0  ;;  %v6816_v30 = vsel %vm444_vm12, %v3516_v33, %v3562_v32  ;;  %v3519_v23 = vrot.slane %v3505_v22, 4 }
 0xe82   :  { %3627 = vst [vmem:[#allocation1 + $0x21] ss:$4 sm:$0xff] %v6770_v62  ;;  %3973 = vmatpush.bf16.msra.mxu0 %v6783_v15  ;;  %v3520_v31 = vrot.slane %v3505_v22, 5  ;;  %v3567_v25 = vperm.slane %v3551_v59, 0  ;;  %v6820_v40 = vsel %vm444_vm12, %v3517_v9, %v3563_v11  ;;  %v3521_v54 = vrot.slane %v3505_v22, 6 }
 0xe83   :  { %3629 = vst [vmem:[#allocation1 + $0x22] ss:$4 sm:$0xff] %v6776_v19  ;;  %v3568_v7 = vperm.slane %v3552_v34, 0  ;;  %v6827_v41 = vsel %vm444_vm12, %v3518_v10, %v3564_v35  ;;  %v6835_v42 = vsel %vm444_vm12, %v3519_v23, %v3565_v36  ;;  %v3522_v49 = vrot.slane %v3505_v22, 7  ;;  %4089 = vmatpush.bf16.msra.mxu1 %v5694_v51  ;;  %3954 = vmatpush.bf16.msrb.mxu3 %v5674_v0 }
 0xe84   :  { %3631 = vst [vmem:[#allocation1 + $0x23] ss:$4 sm:$0xff] %v6787_v21  ;;  %v6839_v16 = vsel %vm444_vm12, %v3520_v31, %v3566_v28  ;;  %v6843_v44 = vsel %vm444_vm12, %v3521_v54, %v3567_v25  ;;  %5705 = vmatpush.bf16.msra.mxu2 %v6783_v15  ;;  %v5691_v15 = vld [vmem:[%s7052_s13 + $0x8] sm:$0xff] }
 0xe85   :  { %v6850_v4 = vsel %vm444_vm12, %v3522_v49, %v3568_v7 }
 0xe87   :  { %v3632_v38 = vld.sshfl [vmem:[#allocation1] sm:$0xff pattern:$0x73625140]  ;;  %5706 = vmatpush.bf16.msra.mxu3 %v6747_v2  ;;  %v5693_v2 = vld [vmem:[%s7052_s13 + $0x18] sm:$0xff] }
 0xe88   :  { %3634 = vst [vmem:[#allocation1] ss:$4 sm:$0xff] %v6807_v37  ;;  %v3644_v14 = vrot.slane %v3632_v38, 7  ;;  %4090 = vmatpush.bf16.msra.mxu1 %v5693_v2 }
 0xe89   :  { %3635 = vst [vmem:[#allocation1 + $0x1] ss:$4 sm:$0xff] %v6816_v30 }
 0xe8a   :  { %3636 = vst [vmem:[#allocation1 + $0x2] ss:$4 sm:$0xff] %v6820_v40 }
 0xe8b   :  { %v3633_v47 = vld.sshfl [vmem:[#allocation1 + $0x20] sm:$0xff pattern:$0x73625140]  ;;  %3637 = vst [vmem:[#allocation1 + $0x3] ss:$4 sm:$0xff] %v6827_v41  ;;  %5707 = vmatpush.bf16.msra.mxu3 %v5696_v39 }
 0xe8c   :  { %3638 = vst [vmem:[#allocation1 + $0x20] ss:$4 sm:$0xff] %v6835_v42  ;;  %v3645_v50 = vrot.slane %v3633_v47, 7  ;;  %4091 = vmatpush.bf16.msra.mxu1 %v5692_v13 }
 0xe8d   :  { %3639 = vst [vmem:[#allocation1 + $0x21] ss:$4 sm:$0xff] %v6839_v16 }
 0xe8e   :  { %3640 = vst [vmem:[#allocation1 + $0x22] ss:$4 sm:$0xff] %v6843_v44  ;;  %v3646_v56 = vsel %vm444_vm12, %v3644_v14, %v3645_v50 }
 0xe8f   :  { %3641 = vst [vmem:[#allocation1 + $0x23] ss:$4 sm:$0xff] %v6850_v4  ;;  %v5378_v57 = vpack.c.bf16 %v3646_v56, %v3644_v14  ;;  %5708 = vmatpush.bf16.msra.mxu3 %v5695_v46 }
 0xe90   :  { %4092 = vmatpush.bf16.msra.mxu1 %v5691_v15 }
 0xe91   :  { %5379 = vmatmul.msk.bf16.vlgmr.msrb.gmra.mxu2 %vm6857_vm0, %v5378_v57 }
 0xe92   :  { %v3642_v48 = vld.sshfl [vmem:[#allocation1] sm:$0xff pattern:$0x73625140] }
 0xe93   :  { %3656 = vst [vmem:[#allocation1] ss:$4 sm:$0xff] %v6736_v61  ;;  %v3647_v58 = vrot.slane %v3642_v48, 7  ;;  %5709 = vmatpush.bf16.msra.mxu3 %v5694_v51  ;;  %v5732_v51 = vld [vmem:[%s7051_s12] ss:$0 sm:$0xff]  ;;  %s5913_s12 = smov 48  }
 0xe94   :  { %3658 = vst [vmem:[#allocation1 + $0x1] ss:$4 sm:$0xff] %v6750_v5  ;;  %4093 = vmatpush.bf16.msra.mxu1 %v5690_v55 }
 0xe95   :  { %3660 = vst [vmem:[#allocation1 + $0x2] ss:$4 sm:$0xff] %v6753_v12 }
 0xe96   :  { %v3643_v53 = vld.sshfl [vmem:[#allocation1 + $0x20] sm:$0xff pattern:$0x73625140]  ;;  %3662 = vst [vmem:[#allocation1 + $0x3] ss:$4 sm:$0xff] %v6756_v6 }
 0xe97   :  { %3664 = vst [vmem:[#allocation1 + $0x20] ss:$4 sm:$0xff] %v6761_v52  ;;  %v3648_v1 = vrot.slane %v3643_v53, 7  ;;  %5710 = vmatpush.bf16.msra.mxu3 %v5693_v2 }
 0xe98   :  { %3666 = vst [vmem:[#allocation1 + $0x21] ss:$4 sm:$0xff] %v6770_v62 }
 0xe99   :  { %3668 = vst [vmem:[#allocation1 + $0x22] ss:$4 sm:$0xff] %v6776_v19  ;;  %v3649_v3 = vsel %vm444_vm12, %v3647_v58, %v3648_v1  ;;  %vm6899_vm12 = vmpackc.low %vm2523_vm2, %vm5912_vm1 }
 0xe9a   :  { %3670 = vst [vmem:[#allocation1 + $0x23] ss:$4 sm:$0xff] %v6787_v21  ;;  %v5382_v17 = vpack.c.bf16 %v3649_v3, %v3647_v58 }
 0xe9b   :  { %5711 = vmatpush.bf16.msra.mxu3 %v5692_v13 }
 0xe9d   :  { %v3671_v8 = vld.sshfl [vmem:[#allocation1] sm:$0xff pattern:$0x73625140] }
 0xe9e   :  { %3673 = vst [vmem:[#allocation1] ss:$4 sm:$0xff] %v6807_v37  ;;  %v3683_v63 = vrot.slane %v3671_v8, 1 }
 0xe9f   :  { %3674 = vst [vmem:[#allocation1 + $0x1] ss:$4 sm:$0xff] %v6816_v30  ;;  %5712 = vmatpush.bf16.msra.mxu3 %v5691_v15 }
 0xea0   :  { %3675 = vst [vmem:[#allocation1 + $0x2] ss:$4 sm:$0xff] %v6820_v40 }
 0xea1   :  { %5383 = vmatmul.msk.bf16.gmra.mxu2 %vm6857_vm0, %v5382_v17  ;;  %v3672_v18 = vld.sshfl [vmem:[#allocation1 + $0x20] sm:$0xff pattern:$0x73625140]  ;;  %3676 = vst [vmem:[#allocation1 + $0x3] ss:$4 sm:$0xff] %v6827_v41 }
 0xea2   :  { %v3684_v20 = vrot.slane %v3672_v18, 1  ;;  %3677 = vst [vmem:[#allocation1 + $0x20] ss:$4 sm:$0xff] %v6835_v42 }
 0xea3   :  { %3678 = vst [vmem:[#allocation1 + $0x21] ss:$4 sm:$0xff] %v6839_v16  ;;  %5713 = vmatpush.bf16.msra.mxu3 %v5690_v55 }
 0xea4   :  { %v3685_v22 = vsel %vm2523_vm2, %v3683_v63, %v3684_v20  ;;  %3679 = vst [vmem:[#allocation1 + $0x22] ss:$4 sm:$0xff] %v6843_v44 }
 0xea5   :  { %v5385_v26 = vpack.c.bf16 %v3684_v20, %v3685_v22  ;;  %3680 = vst [vmem:[#allocation1 + $0x23] ss:$4 sm:$0xff] %v6850_v4 }
 0xea7   :  { %5386 = vmatmul.msk.bf16.vlgmr.msra.gmra.mxu0 %vm6899_vm12, %v5385_v26 }
 0xea8   :  { %v3681_v27 = vld.sshfl [vmem:[#allocation1] sm:$0xff pattern:$0x73625140] }
 0xea9   :  { %3695 = vst [vmem:[#allocation1] ss:$4 sm:$0xff] %v6736_v61  ;;  %v3686_v60 = vrot.slane %v3681_v27, 1 }
 0xeaa   :  { %3697 = vst [vmem:[#allocation1 + $0x1] ss:$4 sm:$0xff] %v6750_v5 }
 0xeab   :  { %3699 = vst [vmem:[#allocation1 + $0x2] ss:$4 sm:$0xff] %v6753_v12 }
 0xeac   :  { %v3682_v32 = vld.sshfl [vmem:[#allocation1 + $0x20] sm:$0xff pattern:$0x73625140]  ;;  %3701 = vst [vmem:[#allocation1 + $0x3] ss:$4 sm:$0xff] %v6756_v6 }
 0xead   :  { %3703 = vst [vmem:[#allocation1 + $0x20] ss:$4 sm:$0xff] %v6761_v52  ;;  %v3687_v59 = vrot.slane %v3682_v32, 1 }
 0xeae   :  { %3705 = vst [vmem:[#allocation1 + $0x21] ss:$4 sm:$0xff] %v6770_v62 }
 0xeaf   :  { %3707 = vst [vmem:[#allocation1 + $0x22] ss:$4 sm:$0xff] %v6776_v19  ;;  %v3688_v11 = vsel %vm2523_vm2, %v3686_v60, %v3687_v59 }
 0xeb0   :  { %3709 = vst [vmem:[#allocation1 + $0x23] ss:$4 sm:$0xff] %v6787_v21  ;;  %v5388_v33 = vpack.c.bf16 %v3687_v59, %v3688_v11 }
 0xeb2   :  { %5389 = vmatmul.msk.bf16.vlgmr.msra.gmra.mxu2 %vm6899_vm12, %v5388_v33 }
 0xeb3   :  { %v3710_v9 = vld.sshfl [vmem:[#allocation1] sm:$0xff pattern:$0x73625140] }
 0xeb4   :  { %3712 = vst [vmem:[#allocation1] ss:$4 sm:$0xff] %v6807_v37 }
 0xeb5   :  { %3713 = vst [vmem:[#allocation1 + $0x1] ss:$4 sm:$0xff] %v6816_v30 }
 0xeb6   :  { %3714 = vst [vmem:[#allocation1 + $0x2] ss:$4 sm:$0xff] %v6820_v40 }
 0xeb7   :  { %v3711_v34 = vld.sshfl [vmem:[#allocation1 + $0x20] sm:$0xff pattern:$0x73625140]  ;;  %3715 = vst [vmem:[#allocation1 + $0x3] ss:$4 sm:$0xff] %v6827_v41 }
 0xeb8   :  { %v3727_v35 = vpack.c.bf16 %v3711_v34, %v3710_v9  ;;  %3716 = vst [vmem:[#allocation1 + $0x20] ss:$4 sm:$0xff] %v6835_v42 }
 0xeb9   :  { %3717 = vst [vmem:[#allocation1 + $0x21] ss:$4 sm:$0xff] %v6839_v16 }
 0xeba   :  { %3955 = vmatmul.bf16.vlgmr.msrb.gmra.mxu3 %v3727_v35  ;;  %3718 = vst [vmem:[#allocation1 + $0x22] ss:$4 sm:$0xff] %v6843_v44 }
 0xebb   :  { %3719 = vst [vmem:[#allocation1 + $0x23] ss:$4 sm:$0xff] %v6850_v4 }
 0xebe   :  { %v3720_v36 = vld.sshfl [vmem:[#allocation1] sm:$0xff pattern:$0x73625140] }
 0xebf   :  { %3985 = vst [vmem:[#allocation1] ss:$4 sm:$0xff] %v6736_v61 }
 0xec0   :  { %3987 = vst [vmem:[#allocation1 + $0x1] ss:$4 sm:$0xff] %v6750_v5 }
 0xec1   :  { %3989 = vst [vmem:[#allocation1 + $0x2] ss:$4 sm:$0xff] %v6753_v12 }
 0xec2   :  { %v3721_v38 = vld.sshfl [vmem:[#allocation1 + $0x20] sm:$0xff pattern:$0x73625140]  ;;  %3991 = vst [vmem:[#allocation1 + $0x3] ss:$4 sm:$0xff] %v6756_v6 }
 0xec3   :  { %3993 = vst [vmem:[#allocation1 + $0x20] ss:$4 sm:$0xff] %v6761_v52  ;;  %v3730_v24 = vpack.c.bf16 %v3721_v38, %v3720_v36 }
 0xec4   :  { %3995 = vst [vmem:[#allocation1 + $0x21] ss:$4 sm:$0xff] %v6770_v62 }
 0xec5   :  { %3997 = vst [vmem:[#allocation1 + $0x22] ss:$4 sm:$0xff] %v6776_v19 }
 0xec6   :  { %3999 = vst [vmem:[#allocation1 + $0x23] ss:$4 sm:$0xff] %v6787_v21 }
 0xec9   :  { %v4000_v39 = vld.sshfl [vmem:[#allocation1] sm:$0xff pattern:$0x73625140] }
 0xeca   :  { %3960 = vmatmul.bf16.gmra.mxu3 %v3730_v24  ;;  %4002 = vst [vmem:[#allocation1] ss:$4 sm:$0xff] %v6807_v37  ;;  %v5733_v37 = vld [vmem:[%s7053_s14] ss:$0 sm:$0xff] }
 0xecb   :  { %4003 = vst [vmem:[#allocation1 + $0x1] ss:$4 sm:$0xff] %v6816_v30 }
 0xecc   :  { %4004 = vst [vmem:[#allocation1 + $0x2] ss:$4 sm:$0xff] %v6820_v40 }
 0xecd   :  { %v4001_v61 = vld.sshfl [vmem:[#allocation1 + $0x20] sm:$0xff pattern:$0x73625140]  ;;  %4005 = vst [vmem:[#allocation1 + $0x3] ss:$4 sm:$0xff] %v6827_v41 }
 0xece   :  { %v4016_v5 = vpack.c.bf16 %v4001_v61, %v4000_v39  ;;  %4006 = vst [vmem:[#allocation1 + $0x20] ss:$4 sm:$0xff] %v6835_v42 }
 0xecf   :  { %4007 = vst [vmem:[#allocation1 + $0x21] ss:$4 sm:$0xff] %v6839_v16 }
 0xed0   :  { %4094 = vmatmul.bf16.vlgmr.msra.gmra.mxu1 %v4016_v5  ;;  %4008 = vst [vmem:[#allocation1 + $0x22] ss:$4 sm:$0xff] %v6843_v44 }
 0xed1   :  { %4009 = vst [vmem:[#allocation1 + $0x23] ss:$4 sm:$0xff] %v6850_v4 }
 0xed4   :  { %v4010_v12 = vld.sshfl [vmem:[#allocation1] sm:$0xff pattern:$0x73625140] }
 0xed8   :  { %v4011_v6 = vld.sshfl [vmem:[#allocation1 + $0x20] sm:$0xff pattern:$0x73625140] }
 0xed9   :  { %v4017_v52 = vpack.c.bf16 %v4011_v6, %v4010_v12 }
 0xedb   :  { %4099 = vmatmul.bf16.vlgmr.msra.gmra.mxu3 %v4017_v52 }
 0xf14   :  { %v3937_v21 = vpop.f32.mrf.mxu2 }
 0xf15   :  { %v3938_v48 = vadd.f32 %v5732_v51, %v3937_v21 }
 0xf1c   :  { %v3939_v31 = vpop.f32.mrf.mxu2 }
 0xf1d   :  { %v3940_v56 = vadd.f32 %v5732_v51, %v3939_v31 }
 0xf24   :  { %v3942_v14 = vpop.f32.mrf.mxu2  ;;  %v3975_v42 = vpop.f32.mrf.mxu0 }
 0xf25   :  { %v3943_v22 = vadd.f32 %v5732_v51, %v3942_v14 }
 0xf2c   :  { %v3944_v43 = vpop.f32.mrf.mxu2  ;;  %v3977_v2 = vpop.f32.mrf.mxu0 }
 0xf2d   :  { %v3945_v52 = vadd.f32 %v5732_v51, %v3944_v43 }
 0xf35   :  { %v3980_v60 = vpop.f32.mrf.mxu2 }
 0xf3d   :  { %v3956_v62 = vpop.f32.mrf.mxu3 }
 0xf3e   :  { %v3957_v3 = vadd.f32 %v3956_v62, %v3938_v48 }
 0xf40   :  { %v3976_v29 = vadd.f32 %v3975_v42, %v3957_v3 }
 0xf45   :  { %v3958_v19 = vpop.f32.mrf.mxu3 }
 0xf46   :  { %v3959_v0 = vadd.f32 %v3958_v19, %v3940_v56 }
 0xf48   :  { %v3978_v17 = vadd.f32 %v3977_v2, %v3959_v0 }
 0xf4d   :  { %v4095_v10 = vpop.f32.mrf.mxu1  ;;  %v3961_v28 = vpop.f32.mrf.mxu3 }
 0xf4e   :  { %v4096_v30 = vadd.f32 %v5733_v37, %v4095_v10  ;;  %v3962_v59 = vadd.f32 %v3961_v28, %v3943_v22 }
 0xf50   :  { %v5422_v23 = vmul.f32 -1.442695, %v4096_v30  ;;  %v3981_v5 = vadd.f32 %v3980_v60, %v3962_v59 }
 0xf52   :  { %5798 = vpow2.f32 %v5422_v23 }
 0xf55   :  { %v4097_v25 = vpop.f32.mrf.mxu1  ;;  %v6948_v40 = vpop.f32.mrf.mxu3 }
 0xf56   :  { %v4098_v46 = vadd.f32 %v5733_v37, %v4097_v25  ;;  %v3964_v10 = vadd.f32 %v6948_v40, %v3945_v52 }
 0xf58   :  { %v5799_v54 = vpop.eup %5798  ;;  %v5423_v7 = vmul.f32 -1.442695, %v4098_v46 }
 0xf59   :  { %v6950_v41 = vadd.f32 1.0, %v5799_v54  ;;  %v3982_v54 = vpop.f32.mrf.mxu2 }
 0xf5a   :  { %5800 = vpow2.f32 %v5423_v7  ;;  %v3983_v14 = vadd.f32 %v3982_v54, %v3964_v10 }
 0xf5b   :  { %5802 = vrcp.f32 %v6950_v41  ;;  %v4136_v11 = vand.u32 2147483648, %v6950_v41  ;;  %vm4130_vm4 = vweird.f32 %v6950_v41  ;;  %v4134_v34 = vand.u32 2147483647, %v6950_v41 }
 0xf5d   :  { %v4137_v62 = vor.u32 1.1754944e-38, %v4136_v11  ;;  %vm4135_vm1 = vcmp.eq.f32.partialorder %v4134_v34, 8.507059e+37 }
 0xf5e   :  { %v4100_v45 = vpop.f32.mrf.mxu3 }
 0xf5f   :  { %v4101_v47 = vadd.f32 %v5733_v37, %v4100_v45 }
 0xf60   :  { %v5801_v49 = vpop.eup %5800 }
 0xf61   :  { %v6953_v16 = vpop.eup %5802  ;;  %v4122_v50 = vadd.f32 1.0, %v5801_v49  ;;  %v5424_v44 = vmul.f32 -1.442695, %v4101_v47 }
 0xf62   :  { %v4126_v4 = vmul.f32 %v6953_v16, %v6950_v41  ;;  %vm4131_vm2 = vweird.f32 %v6953_v16 }
 0xf63   :  { %5804 = vrcp.f32 %v4122_v50  ;;  %v4151_v26 = vand.u32 2147483648, %v4122_v50  ;;  %v4149_v27 = vand.u32 2147483647, %v4122_v50  ;;  %vm4145_vm3 = vweird.f32 %v4122_v50  ;;  %vm6966_vm8 = vmor %vm4130_vm4, %vm4131_vm2 }
 0xf64   :  { %5806 = vpow2.f32 %v5424_v44  ;;  %v4127_v53 = vsub.f32 1.0, %v4126_v4 }
 0xf65   :  { %v4152_v35 = vor.u32 1.1754944e-38, %v4151_v26  ;;  %vm4150_vm15 = vcmp.eq.f32.partialorder %v4149_v27, 8.507059e+37 }
 0xf66   :  { %v4102_v57 = vpop.f32.mrf.mxu3  ;;  %v4128_v18 = vmul.f32 %v6953_v16, %v4127_v53 }
 0xf67   :  { %v4103_v58 = vadd.f32 %v5733_v37, %v4102_v57 }
 0xf68   :  { %v4129_v32 = vadd.f32 %v6953_v16, %v4128_v18 }
 0xf69   :  { %v5805_v1 = vpop.eup %5804  ;;  %v5425_v8 = vmul.f32 -1.442695, %v4103_v58 }
 0xf6a   :  { %v5807_v13 = vpop.eup %5806  ;;  %v4141_v63 = vmul.f32 %v5805_v1, %v4122_v50  ;;  %vm4146_vm13 = vweird.f32 %v5805_v1  ;;  %v4133_v61 = vsel %vm6966_vm8, %v6953_v16, %v4129_v32 }
 0xf6b   :  { %v4123_v15 = vadd.f32 1.0, %v5807_v13  ;;  %5808 = vpow2.f32 %v5425_v8  ;;  %vm4147_vm5 = vmor %vm4145_vm3, %vm4146_vm13  ;;  %v4138_v37 = vsel %vm4135_vm1, %v4137_v62, %v4133_v61  ;;  %vm4272_vm1 = vcmask 654336  }
 0xf6c   :  { %v4142_v20 = vsub.f32 1.0, %v4141_v63 }
 0xf6d   :  { %5810 = vrcp.f32 %v4123_v15  ;;  %v4166_v30 = vand.u32 2147483648, %v4123_v15  ;;  %v4164_v25 = vand.u32 2147483647, %v4123_v15  ;;  %vm4160_vm12 = vweird.f32 %v4123_v15 }
 0xf6e   :  { %5812 = vtanh.f32 %v3978_v17  ;;  %v4143_v55 = vmul.f32 %v5805_v1, %v4142_v20 }
 0xf6f   :  { %5814 = vtanh.f32 %v3976_v29  ;;  %v4167_v42 = vor.u32 1.1754944e-38, %v4166_v30  ;;  %vm4165_vm2 = vcmp.eq.f32.partialorder %v4164_v25, 8.507059e+37 }
 0xf70   :  { %v4144_v33 = vadd.f32 %v5805_v1, %v4143_v55 }
 0xf71   :  { %v5809_v9 = vpop.eup %5808 }
 0xf72   :  { %v4148_v38 = vsel %vm4147_vm5, %v5805_v1, %v4144_v33  ;;  %v4124_v24 = vadd.f32 1.0, %v5809_v9 }
 0xf73   :  { %v5811_v39 = vpop.eup %5810  ;;  %v4153_v12 = vsel %vm4150_vm15, %v4152_v35, %v4148_v38  ;;  %vm4269_vm15 = vcmask 392192  }
 0xf74   :  { %v5813_v6 = vpop.eup %5812  ;;  %v4156_v19 = vmul.f32 %v5811_v39, %v4123_v15  ;;  %5816 = vrcp.f32 %v4124_v24  ;;  %vm4161_vm0 = vweird.f32 %v5811_v39  ;;  %v4181_v4 = vand.u32 2147483648, %v4124_v24 }
 0xf75   :  { %v6973_v21 = vmul.f32 %v5813_v6, %v4153_v12  ;;  %5818 = vtanh.f32 %v3981_v5  ;;  %v5815_v23 = vpop.eup %5814  ;;  %vm4162_vm13 = vmor %vm4160_vm12, %vm4161_vm0  ;;  %v4179_v43 = vand.u32 2147483647, %v4124_v24  ;;  %vm4175_vm4 = vweird.f32 %v4124_v24 }
 0xf76   :  { %v4157_v28 = vsub.f32 1.0, %v4156_v19  ;;  %v6976_v46 = vmul.f32 %v5815_v23, %v4138_v37  ;;  %5820 = vtanh.f32 %v3983_v14  ;;  %v4182_v48 = vor.u32 1.1754944e-38, %v4181_v4 }
 0xf77   :  { %v4193_v7 = vrot.slane %v6973_v21, 7  ;;  %v4219_v57 = vrot.slane %v6973_v21, 2  ;;  %vm4180_vm8 = vcmp.eq.f32.partialorder %v4179_v43, 8.507059e+37  ;;  %v4210_v3 = vrot.slane %v6973_v21, 1 }
 0xf78   :  { %v4158_v31 = vmul.f32 %v5811_v39, %v4157_v28  ;;  %v4218_v2 = vrot.slane %v6976_v46, 3  ;;  %v4200_v17 = vrot.slane %v6976_v46, 1  ;;  %v4209_v22 = vrot.slane %v6976_v46, 2 }
 0xf79   :  { %v4194_v40 = vsel %vm1386_vm10, %v4193_v7, %v6976_v46  ;;  %v4248_v35 = vrot.slane %v6973_v21, 5  ;;  %v4247_v36 = vrot.slane %v6976_v46, 6  ;;  %v4228_v61 = vrot.slane %v6973_v21, 3 }
 0xf7a   :  { %v5817_v41 = vpop.eup %5816  ;;  %v4159_v45 = vadd.f32 %v5811_v39, %v4158_v31  ;;  %v4220_v20 = vsel %vm1386_vm10, %v4219_v57, %v4218_v2  ;;  %v4201_v26 = vsel %vm1386_vm10, %v6973_v21, %v4200_v17  ;;  %v4211_v27 = vsel %vm1386_vm10, %v4210_v3, %v4209_v22 }
 0xf7b   :  { %v4171_v47 = vmul.f32 %v5817_v41, %v4124_v24  ;;  %v5819_v16 = vpop.eup %5818  ;;  %vm4176_vm3 = vweird.f32 %v5817_v41  ;;  %v4237_v12 = vrot.slane %v6976_v46, 5  ;;  %v4249_v62 = vsel %vm1386_vm10, %v4248_v35, %v4247_v36 }
 0xf7c   :  { %v4163_v49 = vsel %vm4162_vm13, %v5811_v39, %v4159_v45  ;;  %vm4177_vm5 = vmor %vm4175_vm4, %vm4176_vm3  ;;  %v5821_v8 = vpop.eup %5820  ;;  %v4238_v39 = vrot.slane %v6973_v21, 4  ;;  %v4227_v37 = vrot.slane %v6976_v46, 4  ;;  %v4258_v14 = vrot.slane %v6973_v21, 6 }
 0xf7d   :  { %v4168_v50 = vsel %vm4165_vm2, %v4167_v42, %v4163_v49  ;;  %v4172_v44 = vsub.f32 1.0, %v4171_v47  ;;  %v4257_v42 = vrot.slane %v6976_v46, 7 }
 0xf7e   :  { %v6981_v51 = vmul.f32 %v5819_v16, %v4168_v50  ;;  %v4239_v23 = vsel %vm1386_vm10, %v4238_v39, %v4237_v12  ;;  %v4229_v31 = vsel %vm1386_vm10, %v4228_v61, %v4227_v37 }
 0xf7f   :  { %v4173_v56 = vmul.f32 %v5817_v41, %v4172_v44 }
 0xf80   :  { %v4221_v53 = vrot.slane %v6981_v51, 1  ;;  %v4195_v58 = vrot.slane %v6981_v51, 6  ;;  %v4202_v63 = vrot.slane %v6981_v51, 7  ;;  %v4212_v59 = vsel %vm1383_vm9, %v6981_v51, %v4211_v27 }
 0xf81   :  { %v4174_v0 = vadd.f32 %v5817_v41, %v4173_v56  ;;  %v4250_v38 = vrot.slane %v6981_v51, 4  ;;  %v4240_v6 = vrot.slane %v6981_v51, 3  ;;  %v4230_v52 = vrot.slane %v6981_v51, 2 }
 0xf82   :  { %v4196_v18 = vsel %vm1383_vm9, %v4195_v58, %v4194_v40  ;;  %v4222_v29 = vsel %vm1383_vm9, %v4221_v53, %v4220_v20  ;;  %v4203_v11 = vsel %vm1383_vm9, %v4202_v63, %v4201_v26  ;;  %v4260_v45 = vrot.slane %v6981_v51, 5 }
 0xf83   :  { %v4178_v1 = vsel %vm4177_vm5, %v5817_v41, %v4174_v0  ;;  %v4251_v28 = vsel %vm1383_vm9, %v4250_v38, %v4249_v62  ;;  %v4241_v25 = vsel %vm1383_vm9, %v4240_v6, %v4239_v23  ;;  %v4231_v54 = vsel %vm1383_vm9, %v4230_v52, %v4229_v31 }
 0xf84   :  { %v4183_v13 = vsel %vm4180_vm8, %v4182_v48, %v4178_v1  ;;  %v4259_v40 = vsel %vm1386_vm10, %v4258_v14, %v4257_v42  ;;  %vm4276_vm10 = vcmask 916480  }
 0xf85   :  { %v4188_v15 = vmul.f32 %v5821_v8, %v4183_v13  ;;  %v4261_v49 = vsel %vm1383_vm9, %v4260_v45, %v4259_v40  ;;  %vm4274_vm9 = vcmask 785408  }
 0xf87   :  { %v4223_v55 = vsel %vm1388_vm11, %v4188_v15, %v4222_v29  ;;  %v4213_v60 = vrot.slane %v4188_v15, 7  ;;  %v4204_v32 = vrot.slane %v4188_v15, 6  ;;  %v4197_v33 = vrot.slane %v4188_v15, 5 }
 0xf88   :  { %4224 = vrot.lane.b32.xlu2 %v4223_v55, %s5913_s12  ;;  %v4252_v24 = vrot.slane %v4188_v15, 3  ;;  %v4242_v19 = vrot.slane %v4188_v15, 2  ;;  %v4232_v10 = vrot.slane %v4188_v15, 1  ;;  %v4262_v47 = vrot.slane %v4188_v15, 4 }
 0xf89   :  { %v4214_v9 = vsel %vm1388_vm11, %v4213_v60, %v4212_v59  ;;  %v4205_v34 = vsel %vm1388_vm11, %v4204_v32, %v4203_v11  ;;  %v4198_v5 = vsel %vm1388_vm11, %v4197_v33, %v4196_v18 }
 0xf8a   :  { %4215 = vrot.lane.b32.xlu0 %v4214_v9, %s5907_s21  ;;  %4206 = vrot.lane.b32.xlu1 %v4205_v34, %s5909_s23  ;;  %v4253_v30 = vsel %vm1388_vm11, %v4252_v24, %v4251_v28  ;;  %v4243_v7 = vsel %vm1388_vm11, %v4242_v19, %v4241_v25  ;;  %v4233_v41 = vsel %vm1388_vm11, %v4232_v10, %v4231_v54  ;;  %s5914_s21 = smov 80  }
 0xf8b   :  { %v4263_v16 = vsel %vm1388_vm11, %v4262_v47, %v4261_v49 }
 0xf90   :  { %4254 = vrot.lane.b32.xlu2 %v4253_v30, %s5906_s20 }
 0xf92   :  { %4244 = vrot.lane.b32.xlu0 %v4243_v7, %s5914_s21  ;;  %4234 = vrot.lane.b32.xlu1 %v4233_v41, %s5905_s6 }
 0xf9a   :  { %4264 = vrot.lane.b32.xlu1 %v4263_v16, %s5908_s8 }
 0xfe2   :  { %v4225_v56 = vpop.permute.xlu2 %4224 }
 0xfea   :  { %v4255_v48 = vpop.permute.xlu2 %4254 }
 0xffc   :  { %v4216_v50 = vpop.permute.xlu0 %4215  ;;  %v4207_v44 = vpop.permute.xlu1 %4206 }
 0xffd   :  { %v4267_v4 = vsel %vm2287_vm14, %v4198_v5, %v4207_v44 }
 0xffe   :  { %v4268_v21 = vsel %vm1266_vm6, %v4267_v4, %v4216_v50 }
 0xfff   :  { %v4270_v43 = vsel %vm4269_vm15, %v4268_v21, %v4225_v56 }
0x1004   :  { %v4235_v51 = vpop.permute.xlu1 %4234  ;;  %v4245_v46 = vpop.permute.xlu0 %4244 }
0x1005   :  { %v4271_v0 = vsel %vm1277_vm7, %v4270_v43, %v4235_v51 }
0x1006   :  { %v4273_v57 = vsel %vm4272_vm1, %v4271_v0, %v4245_v46 }
0x1007   :  { %v4275_v58 = vsel %vm4274_vm9, %v4273_v57, %v4255_v48 }
0x100c   :  { %v4265_v53 = vpop.permute.xlu1 %4264 }
0x100d   :  { %v4277_v1 = vsel %vm4276_vm10, %v4275_v58, %v4265_v53 }
0x100e   :  { %4278 = vst [vmem:[%s7054_s15] sm:$0xf] %v4277_v1 }
0x100f   :  { %4283 = vsyncpa [#allocation3], 1 }
0x1010   :  { %4284 = vsyncpa [#allocation5], 1 }

</bundles_post_ra>
